<compile_context>
chip_gen: v7x
topology: tpu7x:2x2x1
jax: 0.10.0
libtpu: 0.0.40
codegen_flags: <defaults>
</compile_context>

<pallas_src>
import functools
import math

import jax
import jax.numpy as jnp
from jax.experimental import pallas as pl
from jax.experimental.pallas import tpu as pltpu

LN_EPS = 1e-5
_VMEM = pl.BlockSpec(memory_space=pltpu.MemorySpace.VMEM)
_SMEM = pl.BlockSpec(memory_space=pltpu.MemorySpace.SMEM)


@functools.lru_cache(maxsize=1)
def _device_kind():
    try:
        return jax.devices()[0].device_kind.lower()
    except Exception:
        return ""


def _use_bf16_gelu():
    # v5e has no bf16 EUP/VPU; keep the sigmoid in fp32 there.
    return "v5" not in _device_kind()


@functools.lru_cache(maxsize=1)
def _vmem_limit_bytes():
    cap = None
    try:
        cap = int(pltpu.get_tpu_info().vmem_capacity_bytes)
    except Exception:
        cap = None
    if cap is None or cap <= 0:
        kind = _device_kind()
        cap = (64 << 20) if ("v7" in kind or "7x" in kind) else (128 << 20)
    # leave headroom for compiler-internal scratch; never exceed 100 MiB.
    return min(int(cap * 0.8), 100 << 20)


def _pick_batch_block(B, T, target_rows=256):
    """Smallest divisor Bb of B with Bb*T >= target_rows (else B)."""
    for d in range(1, B + 1):
        if B % d == 0 and d * T >= target_rows:
            return d
    return B


def _layernorm(x, w, b):
    """torch LayerNorm semantics (fp32 compute, biased variance, eps=1e-5)."""
    xf = x.astype(jnp.float32)
    mu = jnp.mean(xf, axis=-1, keepdims=True)
    var = jnp.mean(jnp.square(xf - mu), axis=-1, keepdims=True)
    return (xf - mu) * jax.lax.rsqrt(var + LN_EPS) * w + b


# ----------------------------------------------------------------------------
# Fused transformer: grid = (B // Bb, layer).
#   * batch axis "parallel" (megacore), layer axis "arbitrary"
#   * residual activation resident in a VMEM scratch across the layer loop
#   * l == 0  : x = image @ visual_w + visual_b + pe   (fused embed + pos-enc)
#   * l == L-1: write only the CLS row to HBM
# ----------------------------------------------------------------------------
def _transformer_kernel(img_ref, pe_ref, mask_ref, vw_ref, vb_ref,
                        ln1w, ln1b, wqkv, bqkv, wout, bout,
                        ln2w, ln2b, wfc, bfc, wproj, bproj,
                        o_ref, xs_ref, *, n_head, gelu_bf16):
    l = pl.program_id(1)
    Bb, T, W = xs_ref.shape
    Dv = img_ref.shape[2]
    hd = W // n_head
    scale = 1.0 / math.sqrt(hd)

    @pl.when(l == 0)
    def _():
        # fused visual_embed + AbsTimeEncoding
        img = img_ref[...].reshape(Bb * T, Dv)                      # bf16
        x0 = jnp.dot(img, vw_ref[...],
                     preferred_element_type=jnp.float32) + vb_ref[...]
        xs_ref[...] = x0.reshape(Bb, T, W) + pe_ref[...]

    x = xs_ref[...].reshape(Bb * T, W)                              # fp32 residual

    # --- multi-head self attention ---
    h = _layernorm(x, ln1w[...], ln1b[...])
    qkv = jnp.dot(h.astype(jnp.bfloat16), wqkv[...],
                  preferred_element_type=jnp.float32) + bqkv[...]   # (Bb*T, 3W)
    mb = mask_ref[...]                                              # (Bb, 1, T)

    # TODO(synk): for large T, pad T to a multiple of 128 (extend mask with
    # -1e30) and tile attention over query blocks with online softmax.
    ctx_heads = []
    for h_ in range(n_head):
        qh = qkv[:, 0 * W + h_ * hd: 0 * W + (h_ + 1) * hd]
        kh = qkv[:, 1 * W + h_ * hd: 1 * W + (h_ + 1) * hd]
        vh = qkv[:, 2 * W + h_ * hd: 2 * W + (h_ + 1) * hd]
        qh = qh.reshape(Bb, T, hd).astype(jnp.bfloat16)
        kh = kh.reshape(Bb, T, hd).astype(jnp.bfloat16)
        vh = vh.reshape(Bb, T, hd).astype(jnp.bfloat16)
        s = jnp.einsum('btd,bsd->bts', qh, kh,
                       preferred_element_type=jnp.float32) * scale  # (Bb,T,T)
        s = s + mb                                                  # key-pad bias
        s_max = jnp.max(s, axis=-1, keepdims=True)
        e = jnp.exp(s - s_max)
        p = e * pl.reciprocal(jnp.sum(e, axis=-1, keepdims=True), approx=True)
        ctx = jnp.einsum('bts,bsd->btd', p.astype(jnp.bfloat16), vh,
                         preferred_element_type=jnp.float32)        # (Bb,T,hd)
        ctx_heads.append(ctx.reshape(Bb * T, hd))
    # TODO(synk): replace the lane concat with a 2-batch-dim einsum
    # ('bthd,bshd->bhts') once Mosaic dot_general support is verified.
    attn = jnp.concatenate(ctx_heads, axis=-1) if n_head > 1 else ctx_heads[0]
    attn = jnp.dot(attn.astype(jnp.bfloat16), wout[...],
                   preferred_element_type=jnp.float32) + bout[...]
    x = x + attn

    # --- MLP (c_fc -> QuickGELU -> c_proj) ---
    h = _layernorm(x, ln2w[...], ln2b[...])
    f = jnp.dot(h.astype(jnp.bfloat16), wfc[...],
                preferred_element_type=jnp.float32) + bfc[...]
    if gelu_bf16:
        g = jax.nn.sigmoid((1.702 * f).astype(jnp.bfloat16)).astype(jnp.float32)
    else:
        g = jax.nn.sigmoid(1.702 * f)
    f = f * g                                                       # QuickGELU
    m = jnp.dot(f.astype(jnp.bfloat16), wproj[...],
                preferred_element_type=jnp.float32) + bproj[...]
    x = x + m

    xs_ref[...] = x.reshape(Bb, T, W)

    @pl.when(l == pl.num_programs(1) - 1)
    def _():
        o_ref[...] = x.reshape(Bb, T, W)[:, 0:1, :]                 # CLS row only


def transformer(image_bf16, pe, maskbias, p, n_head):
    B, T, Dv = image_bf16.shape
    L = p["ln1_w"].shape[0]
    W = p["visual_w"].shape[1]
    W3 = p["attn_in_w"].shape[2]
    W4 = p["fc_w"].shape[2]

    Bb = _pick_batch_block(B, T)
    nb = B // Bb

    def wspec(shape):
        n = len(shape)
        return pl.BlockSpec((None,) + shape, lambda b, l, n=n: (l,) + (0,) * n)

    def const_spec(shape):
        n = len(shape)
        return pl.BlockSpec(shape, lambda b, l, n=n: (0,) * n)

    in_specs = [
        pl.BlockSpec((Bb, T, Dv), lambda b, l: (b, 0, 0)),   # image (bf16)
        pl.BlockSpec((Bb, T, W), lambda b, l: (b, 0, 0)),    # pos encoding (f32)
        pl.BlockSpec((Bb, 1, T), lambda b, l: (b, 0, 0)),    # mask bias (f32)
        const_spec((Dv, W)), const_spec((1, W)),             # visual_embed w,b
        wspec((1, W)), wspec((1, W)),                        # ln1 w,b
        wspec((W, W3)), wspec((1, W3)),                      # attn in-proj w,b
        wspec((W, W)), wspec((1, W)),                        # attn out-proj w,b
        wspec((1, W)), wspec((1, W)),                        # ln2 w,b
        wspec((W, W4)), wspec((1, W4)),                      # mlp c_fc w,b
        wspec((W4, W)), wspec((1, W)),                       # mlp c_proj w,b
    ]

    # scheduler hints (weights are streamed once per (batch-block, layer))
    M = B * T
    flops = int(2 * M * Dv * W
                + L * (M * (2 * W * W3 + 2 * W * W + 4 * W * W4)
                       + 4 * B * T * T * W))
    trans = int(L * (n_head * B * T * T + M * W4))
    byt = int(nb * L * (W * W3 + W * W + 2 * W * W4) * 2
              + Dv * W * 2 + M * Dv * 2 + M * W * 4 + B * T * 4 + B * W * 4)

    # TODO(synk): on v7x megacore the "parallel" batch axis makes each core
    # stream the full weight stack; keep nb small (or 1) for tiny batches.
    return pl.pallas_call(
        functools.partial(_transformer_kernel, n_head=n_head,
                          gelu_bf16=_use_bf16_gelu()),
        grid=(nb, L),
        out_shape=jax.ShapeDtypeStruct((B, 1, W), jnp.float32),
        in_specs=in_specs,
        out_specs=pl.BlockSpec((Bb, 1, W), lambda b, l: (b, 0, 0)),
        scratch_shapes=[pltpu.VMEM((Bb, T, W), jnp.float32)],
        compiler_params=pltpu.CompilerParams(
            dimension_semantics=("parallel", "arbitrary"),
            vmem_limit_bytes=_vmem_limit_bytes()),
        cost_estimate=pl.CostEstimate(flops=flops, transcendentals=trans,
                                      bytes_accessed=byt),
    )(image_bf16, pe, maskbias,
      p["visual_w"], p["visual_b"],
      p["ln1_w"], p["ln1_b"], p["attn_in_w"], p["attn_in_b"],
      p["attn_out_w"], p["attn_out_b"], p["ln2_w"], p["ln2_b"],
      p["fc_w"], p["fc_b"], p["proj_w"], p["proj_b"])


# ----------------------------------------------------------------------------
# Head: textual MLP + ln_final + both projections + L2 norm + scaled logits,
# all fused in one kernel (everything is tiny and VMEM-resident).
# ----------------------------------------------------------------------------
def _head_kernel(cls_ref, txt_ref, lnw_ref, lnb_ref,
                 w1_ref, b1_ref, w2_ref, b2_ref, w3_ref, b3_ref,
                 vproj_ref, tproj_ref, scale_ref, li_ref):
    # image side: ln_final + vision_projection + L2 normalize
    i = _layernorm(cls_ref[...], lnw_ref[...], lnb_ref[...])
    i = jnp.dot(i.astype(jnp.bfloat16), vproj_ref[...],
                preferred_element_type=jnp.float32)
    i = i * jax.lax.rsqrt(jnp.sum(i * i, axis=1, keepdims=True))

    # text side: MLP (fc1-relu, fc2-relu, fc3) + text_projection + L2 normalize
    t = txt_ref[...].astype(jnp.bfloat16)
    t = jnp.maximum(jnp.dot(t, w1_ref[...],
                            preferred_element_type=jnp.float32) + b1_ref[...], 0.0)
    t = jnp.maximum(jnp.dot(t.astype(jnp.bfloat16), w2_ref[...],
                            preferred_element_type=jnp.float32) + b2_ref[...], 0.0)
    t = jnp.dot(t.astype(jnp.bfloat16), w3_ref[...],
                preferred_element_type=jnp.float32) + b3_ref[...]
    t = jnp.dot(t.astype(jnp.bfloat16), tproj_ref[...],
                preferred_element_type=jnp.float32)
    t = t * jax.lax.rsqrt(jnp.sum(t * t, axis=1, keepdims=True))

    logits = scale_ref[0] * jax.lax.dot_general(
        i, t, (((1,), (1,)), ((), ())), preferred_element_type=jnp.float32)
    li_ref[...] = logits.astype(li_ref.dtype)


def clip_head(img_cls, txt0, params, scale):
    B = img_cls.shape[0]
    return pl.pallas_call(
        _head_kernel,
        out_shape=jax.ShapeDtypeStruct((B, B), jnp.float32),
        in_specs=[_VMEM] * 12 + [_SMEM],
        out_specs=_VMEM,
    )(img_cls, txt0, params["lnf_w"], params["lnf_b"],
      params["t_fc1_w"], params["t_fc1_b"],
      params["t_fc2_w"], params["t_fc2_b"],
      params["t_fc3_w"], params["t_fc3_b"],
      params["vision_proj"], params["text_proj"], scale)


# ----------------------------------------------------------------------------
# Full CLIP forward
# ----------------------------------------------------------------------------
def clip_forward(params, image, text, padding, times, *, n_head):
    B, T, Dv = image.shape
    W = params["visual_w"].shape[1]

    image_bf16 = image.astype(jnp.bfloat16)          # halve image input DMA

    # AbsTimeEncoding (n_patches=1, dropout=0.0) -- plain JAX glue; the (B,T,W)
    # pe tensor is read once by the fused transformer kernel (added at l==0).
    div_term = jnp.exp(jnp.arange(0, W, 2, dtype=jnp.float32)
                       * (-(math.log(10000.0) / W)))
    tp = times.astype(jnp.float32)[:, :, None] * div_term[None, None, :]
    pe = jnp.stack([jnp.sin(tp), jnp.cos(tp)], axis=-1).reshape(B, T, W)

    # key_padding_mask: True (masked) where padding <= 0 -> additive -1e30 (fp32)
    maskbias = jnp.where(padding > 0, 0.0, -1e30).astype(jnp.float32)[:, None, :]

    # fused embed + positional encoding + transformer stack -> CLS rows only
    img_cls = transformer(image_bf16, pe, maskbias, params, n_head)   # (B,1,W)
    img_cls = img_cls.reshape(B, W)

    txt0 = text[:, 0, :].astype(jnp.float32)
    scale = jnp.exp(params["logit_scale"])           # scalar glue

    logits_per_image = clip_head(img_cls, txt0, params, scale)
    return logits_per_image, logits_per_image.T


# ----------------------------------------------------------------------------
# Parameter init (torch layout, matches CLIP.initialize_parameters) + prep into
# kernel-ready layout: (in, out) bf16 weights, stacked per-layer blocks.
# ----------------------------------------------------------------------------
def init_raw_params(key, vision_width, width, layers, heads, vocab, embed):
    ks = iter(jax.random.split(key, 6 + 4 * layers))

    def nrm(shape, std):
        return std * jax.random.normal(next(ks), shape, jnp.float32)

    attn_std = width ** -0.5
    proj_std = (width ** -0.5) * ((2 * layers) ** -0.5)
    fc_std = (2 * width) ** -0.5

    raw = {
        "visual_w": nrm((width, vision_width), vision_width ** -0.5),
        "visual_b": jnp.zeros((width,), jnp.float32),
        "lnf_w": jnp.ones((width,), jnp.float32),
        "lnf_b": jnp.zeros((width,), jnp.float32),
        "vision_proj": nrm((width, embed), width ** -0.5),
        "text_proj": nrm((vocab, embed), vocab ** -0.5),
        "t_fc1_w": nrm((4 * vocab, vocab), vocab ** -0.5),
        "t_fc1_b": jnp.zeros((4 * vocab,), jnp.float32),
        "t_fc2_w": nrm((4 * vocab, 4 * vocab), (4 * vocab) ** -0.5),
        "t_fc2_b": jnp.zeros((4 * vocab,), jnp.float32),
        "t_fc3_w": nrm((vocab, 4 * vocab), (4 * vocab) ** -0.5),
        "t_fc3_b": jnp.zeros((vocab,), jnp.float32),
        "logit_scale": jnp.full((), math.log(1.0 / 0.07), jnp.float32),
        "blocks": [],
    }
    for _ in range(layers):
        raw["blocks"].append({
            "ln1_w": jnp.ones((width,), jnp.float32),
            "ln1_b": jnp.zeros((width,), jnp.float32),
            "attn_in_w": nrm((3 * width, width), attn_std),
            "attn_in_b": jnp.zeros((3 * width,), jnp.float32),
            "attn_out_w": nrm((width, width), proj_std),
            "attn_out_b": jnp.zeros((width,), jnp.float32),
            "ln2_w": jnp.ones((width,), jnp.float32),
            "ln2_b": jnp.zeros((width,), jnp.float32),
            "fc_w": nrm((4 * width, width), fc_std),
            "fc_b": jnp.zeros((4 * width,), jnp.float32),
            "proj_w": nrm((width, 4 * width), proj_std),
            "proj_b": jnp.zeros((width,), jnp.float32),
        })
    return raw


def prepare_params(raw):
    def wT(w):                                # (out, in) -> (in, out) bf16
        return jnp.asarray(w.T, jnp.bfloat16)

    def row(b):                               # (D,) -> (1, D) fp32
        return jnp.asarray(b, jnp.float32)[None, :]

    blocks = raw["blocks"]

    def stack_wT(name):                       # (L, out, in) -> (L, in, out) bf16
        return jnp.transpose(jnp.stack([b[name] for b in blocks], 0),
                             (0, 2, 1)).astype(jnp.bfloat16)

    def stack_row(name):                      # (L, D) -> (L, 1, D) fp32
        return jnp.stack([b[name] for b in blocks], 0)[:, None, :]

    return {
        "visual_w": wT(raw["visual_w"]), "visual_b": row(raw["visual_b"]),
        "t_fc1_w": wT(raw["t_fc1_w"]), "t_fc1_b": row(raw["t_fc1_b"]),
        "t_fc2_w": wT(raw["t_fc2_w"]), "t_fc2_b": row(raw["t_fc2_b"]),
        "t_fc3_w": wT(raw["t_fc3_w"]), "t_fc3_b": row(raw["t_fc3_b"]),
        "lnf_w": row(raw["lnf_w"]), "lnf_b": row(raw["lnf_b"]),
        "vision_proj": jnp.asarray(raw["vision_proj"], jnp.bfloat16),
        "text_proj": jnp.asarray(raw["text_proj"], jnp.bfloat16),
        "logit_scale": raw["logit_scale"].reshape(1),
        "ln1_w": stack_row("ln1_w"), "ln1_b": stack_row("ln1_b"),
        "attn_in_w": stack_wT("attn_in_w"), "attn_in_b": stack_row("attn_in_b"),
        "attn_out_w": stack_wT("attn_out_w"), "attn_out_b": stack_row("attn_out_b"),
        "ln2_w": stack_row("ln2_w"), "ln2_b": stack_row("ln2_b"),
        "fc_w": stack_wT("fc_w"), "fc_b": stack_row("fc_b"),
        "proj_w": stack_wT("proj_w"), "proj_b": stack_row("proj_b"),
    }


if __name__ == "__main__":
    # small, module-consistent shapes
    B, T = 2, 8
    vision_width = 128
    width = 128
    heads = 4
    layers = 2
    vocab = 13
    embed = 64

    key = jax.random.PRNGKey(0)
    k_p, k_img, k_txt, k_t = jax.random.split(key, 4)

    params = prepare_params(
        init_raw_params(k_p, vision_width, width, layers, heads, vocab, embed))

    image = jax.random.normal(k_img, (B, T, vision_width), jnp.float32)
    text = jax.random.normal(k_txt, (B, 3, vocab), jnp.float32)
    padding = jnp.array([[1] * T, [1] * (T - 2) + [0] * 2], jnp.float32)
    times = jnp.cumsum(
        jnp.abs(jax.random.normal(k_t, (B, T), jnp.float32)), axis=1)

    fwd = jax.jit(functools.partial(clip_forward, n_head=heads))
    logits_per_image, logits_per_text = fwd(params, image, text, padding, times)
    jax.block_until_ready((logits_per_image, logits_per_text))

    assert logits_per_image.shape == (B, B)
    assert logits_per_text.shape == (B, B)
    print("KERNEL_OK")
</pallas_src>

<mosaic_0001>
module attributes {stable_mosaic.version = 11 : i64} {
  func.func @_head_kernel(%arg0: memref<2x128xf32, #tpu.memory_space<vmem>>, %arg1: memref<2x13xf32, #tpu.memory_space<vmem>>, %arg2: memref<1x128xf32, #tpu.memory_space<vmem>>, %arg3: memref<1x128xf32, #tpu.memory_space<vmem>>, %arg4: memref<13x52xbf16, #tpu.memory_space<vmem>>, %arg5: memref<1x52xf32, #tpu.memory_space<vmem>>, %arg6: memref<52x52xbf16, #tpu.memory_space<vmem>>, %arg7: memref<1x52xf32, #tpu.memory_space<vmem>>, %arg8: memref<52x13xbf16, #tpu.memory_space<vmem>>, %arg9: memref<1x13xf32, #tpu.memory_space<vmem>>, %arg10: memref<128x64xbf16, #tpu.memory_space<vmem>>, %arg11: memref<13x64xbf16, #tpu.memory_space<vmem>>, %arg12: memref<1xf32, #tpu.memory_space<smem>>, %arg13: memref<2x2xf32, #tpu.memory_space<vmem>>) attributes {dimension_semantics = [], scalar_prefetch = 0 : i64, scratch_operands = 0 : i64, tpu.core_type = #tpu.core_type<tc>} {
    %c0 = arith.constant 0 : index
    %c0_0 = arith.constant 0 : index
    %0 = vector.load %arg0[%c0, %c0_0] : memref<2x128xf32, #tpu.memory_space<vmem>>, vector<2x128xf32>
    %c0_1 = arith.constant 0 : index
    %c0_2 = arith.constant 0 : index
    %1 = vector.load %arg2[%c0_1, %c0_2] : memref<1x128xf32, #tpu.memory_space<vmem>>, vector<1x128xf32>
    %c0_3 = arith.constant 0 : index
    %c0_4 = arith.constant 0 : index
    %2 = vector.load %arg3[%c0_3, %c0_4] : memref<1x128xf32, #tpu.memory_space<vmem>>, vector<1x128xf32>
    %cst = arith.constant dense<0.000000e+00> : vector<2xf32>
    %3 = vector.multi_reduction <add>, %0, %cst [1] : vector<2x128xf32> to vector<2xf32>
    %4 = vector.shape_cast %3 : vector<2xf32> to vector<2x1xf32>
    %cst_5 = arith.constant 1.280000e+02 : f32
    %5 = vector.broadcast %cst_5 : f32 to vector<2x1xf32>
    %6 = arith.divf %4, %5 : vector<2x1xf32>
    %7 = vector.broadcast %6 : vector<2x1xf32> to vector<2x128xf32>
    %8 = arith.subf %0, %7 : vector<2x128xf32>
    %9 = arith.mulf %8, %8 : vector<2x128xf32>
    %cst_6 = arith.constant dense<0.000000e+00> : vector<2xf32>
    %10 = vector.multi_reduction <add>, %9, %cst_6 [1] : vector<2x128xf32> to vector<2xf32>
    %11 = vector.shape_cast %10 : vector<2xf32> to vector<2x1xf32>
    %cst_7 = arith.constant 1.280000e+02 : f32
    %12 = vector.broadcast %cst_7 : f32 to vector<2x1xf32>
    %13 = arith.divf %11, %12 : vector<2x1xf32>
    %14 = vector.broadcast %6 : vector<2x1xf32> to vector<2x128xf32>
    %15 = arith.subf %0, %14 : vector<2x128xf32>
    %cst_8 = arith.constant 9.99999974E-6 : f32
    %16 = vector.broadcast %cst_8 : f32 to vector<2x1xf32>
    %17 = arith.addf %13, %16 : vector<2x1xf32>
    %18 = math.rsqrt %17 : vector<2x1xf32>
    %19 = vector.broadcast %18 : vector<2x1xf32> to vector<2x128xf32>
    %20 = arith.mulf %15, %19 : vector<2x128xf32>
    %21 = vector.broadcast %1 : vector<1x128xf32> to vector<2x128xf32>
    %22 = arith.mulf %20, %21 : vector<2x128xf32>
    %23 = vector.broadcast %2 : vector<1x128xf32> to vector<2x128xf32>
    %24 = arith.addf %22, %23 : vector<2x128xf32>
    %25 = arith.truncf %24 : vector<2x128xf32> to vector<2x128xbf16>
    %c0_9 = arith.constant 0 : index
    %c0_10 = arith.constant 0 : index
    %26 = vector.load %arg10[%c0_9, %c0_10] : memref<128x64xbf16, #tpu.memory_space<vmem>>, vector<128x64xbf16>
    %cst_11 = arith.constant dense<0.000000e+00> : vector<2x64xf32>
    %27 = tpu.matmul %25, %26, %cst_11 {dimension_numbers = #tpu.dot_dimension_numbers<[1], [0], [0], [1], [0, 0, 1, 1], [], []>} : vector<2x128xbf16>, vector<128x64xbf16>, vector<2x64xf32> -> vector<2x64xf32>
    %28 = arith.mulf %27, %27 : vector<2x64xf32>
    %cst_12 = arith.constant dense<0.000000e+00> : vector<2xf32>
    %29 = vector.multi_reduction <add>, %28, %cst_12 [1] : vector<2x64xf32> to vector<2xf32>
    %30 = vector.shape_cast %29 : vector<2xf32> to vector<2x1xf32>
    %31 = math.rsqrt %30 : vector<2x1xf32>
    %32 = vector.broadcast %31 : vector<2x1xf32> to vector<2x64xf32>
    %33 = arith.mulf %27, %32 : vector<2x64xf32>
    %c0_13 = arith.constant 0 : index
    %c0_14 = arith.constant 0 : index
    %34 = vector.load %arg1[%c0_13, %c0_14] : memref<2x13xf32, #tpu.memory_space<vmem>>, vector<2x13xf32>
    %35 = arith.truncf %34 : vector<2x13xf32> to vector<2x13xbf16>
    %c0_15 = arith.constant 0 : index
    %c0_16 = arith.constant 0 : index
    %36 = vector.load %arg4[%c0_15, %c0_16] : memref<13x52xbf16, #tpu.memory_space<vmem>>, vector<13x52xbf16>
    %cst_17 = arith.constant dense<0.000000e+00> : vector<2x52xf32>
    %37 = tpu.matmul %35, %36, %cst_17 {dimension_numbers = #tpu.dot_dimension_numbers<[1], [0], [0], [1], [0, 0, 1, 1], [], []>} : vector<2x13xbf16>, vector<13x52xbf16>, vector<2x52xf32> -> vector<2x52xf32>
    %c0_18 = arith.constant 0 : index
    %c0_19 = arith.constant 0 : index
    %38 = vector.load %arg5[%c0_18, %c0_19] : memref<1x52xf32, #tpu.memory_space<vmem>>, vector<1x52xf32>
    %39 = vector.broadcast %38 : vector<1x52xf32> to vector<2x52xf32>
    %40 = arith.addf %37, %39 : vector<2x52xf32>
    %cst_20 = arith.constant 0.000000e+00 : f32
    %41 = vector.broadcast %cst_20 : f32 to vector<2x52xf32>
    %42 = arith.maximumf %40, %41 : vector<2x52xf32>
    %43 = arith.truncf %42 : vector<2x52xf32> to vector<2x52xbf16>
    %c0_21 = arith.constant 0 : index
    %c0_22 = arith.constant 0 : index
    %44 = vector.load %arg6[%c0_21, %c0_22] : memref<52x52xbf16, #tpu.memory_space<vmem>>, vector<52x52xbf16>
    %cst_23 = arith.constant dense<0.000000e+00> : vector<2x52xf32>
    %45 = tpu.matmul %43, %44, %cst_23 {dimension_numbers = #tpu.dot_dimension_numbers<[1], [0], [0], [1], [0, 0, 1, 1], [], []>} : vector<2x52xbf16>, vector<52x52xbf16>, vector<2x52xf32> -> vector<2x52xf32>
    %c0_24 = arith.constant 0 : index
    %c0_25 = arith.constant 0 : index
    %46 = vector.load %arg7[%c0_24, %c0_25] : memref<1x52xf32, #tpu.memory_space<vmem>>, vector<1x52xf32>
    %47 = vector.broadcast %46 : vector<1x52xf32> to vector<2x52xf32>
    %48 = arith.addf %45, %47 : vector<2x52xf32>
    %cst_26 = arith.constant 0.000000e+00 : f32
    %49 = vector.broadcast %cst_26 : f32 to vector<2x52xf32>
    %50 = arith.maximumf %48, %49 : vector<2x52xf32>
    %51 = arith.truncf %50 : vector<2x52xf32> to vector<2x52xbf16>
    %c0_27 = arith.constant 0 : index
    %c0_28 = arith.constant 0 : index
    %52 = vector.load %arg8[%c0_27, %c0_28] : memref<52x13xbf16, #tpu.memory_space<vmem>>, vector<52x13xbf16>
    %cst_29 = arith.constant dense<0.000000e+00> : vector<2x13xf32>
    %53 = tpu.matmul %51, %52, %cst_29 {dimension_numbers = #tpu.dot_dimension_numbers<[1], [0], [0], [1], [0, 0, 1, 1], [], []>} : vector<2x52xbf16>, vector<52x13xbf16>, vector<2x13xf32> -> vector<2x13xf32>
    %c0_30 = arith.constant 0 : index
    %c0_31 = arith.constant 0 : index
    %54 = vector.load %arg9[%c0_30, %c0_31] : memref<1x13xf32, #tpu.memory_space<vmem>>, vector<1x13xf32>
    %55 = vector.broadcast %54 : vector<1x13xf32> to vector<2x13xf32>
    %56 = arith.addf %53, %55 : vector<2x13xf32>
    %57 = arith.truncf %56 : vector<2x13xf32> to vector<2x13xbf16>
    %c0_32 = arith.constant 0 : index
    %c0_33 = arith.constant 0 : index
    %58 = vector.load %arg11[%c0_32, %c0_33] : memref<13x64xbf16, #tpu.memory_space<vmem>>, vector<13x64xbf16>
    %cst_34 = arith.constant dense<0.000000e+00> : vector<2x64xf32>
    %59 = tpu.matmul %57, %58, %cst_34 {dimension_numbers = #tpu.dot_dimension_numbers<[1], [0], [0], [1], [0, 0, 1, 1], [], []>} : vector<2x13xbf16>, vector<13x64xbf16>, vector<2x64xf32> -> vector<2x64xf32>
    %60 = arith.mulf %59, %59 : vector<2x64xf32>
    %cst_35 = arith.constant dense<0.000000e+00> : vector<2xf32>
    %61 = vector.multi_reduction <add>, %60, %cst_35 [1] : vector<2x64xf32> to vector<2xf32>
    %62 = vector.shape_cast %61 : vector<2xf32> to vector<2x1xf32>
    %63 = math.rsqrt %62 : vector<2x1xf32>
    %64 = vector.broadcast %63 : vector<2x1xf32> to vector<2x64xf32>
    %65 = arith.mulf %59, %64 : vector<2x64xf32>
    %c0_36 = arith.constant 0 : index
    %66 = memref.load %arg12[%c0_36] : memref<1xf32, #tpu.memory_space<smem>>
    %cst_37 = arith.constant dense<0.000000e+00> : vector<2x2xf32>
    %67 = tpu.matmul %33, %65, %cst_37 {dimension_numbers = #tpu.dot_dimension_numbers<[1], [1], [0], [0], [0, 0, 1, 0], [], []>} : vector<2x64xf32>, vector<2x64xf32>, vector<2x2xf32> -> vector<2x2xf32>
    %68 = vector.broadcast %66 : f32 to vector<2x2xf32>
    %69 = arith.mulf %68, %67 : vector<2x2xf32>
    %c0_38 = arith.constant 0 : index
    %c0_39 = arith.constant 0 : index
    %70 = vector.load %arg13[%c0_38, %c0_39] : memref<2x2xf32, #tpu.memory_space<vmem>>, vector<2x2xf32>
    tpu.vector_store %arg13[%c0_38, %c0_39], %69 {strides = array<i32>} : memref<2x2xf32, #tpu.memory_space<vmem>>, vector<2x2xf32>,
    return
  }
}

module attributes {stable_mosaic.version = 11 : i64} {
  func.func @_transformer_kernel(%arg0: i32, %arg1: i32, %arg2: memref<2x8x128xbf16, #tpu.memory_space<vmem>>, %arg3: memref<2x8x128xf32, #tpu.memory_space<vmem>>, %arg4: memref<2x1x8xf32, #tpu.memory_space<vmem>>, %arg5: memref<128x128xbf16, #tpu.memory_space<vmem>>, %arg6: memref<1x128xf32, #tpu.memory_space<vmem>>, %arg7: memref<1x1x128xf32, #tpu.memory_space<vmem>>, %arg8: memref<1x1x128xf32, #tpu.memory_space<vmem>>, %arg9: memref<1x128x384xbf16, #tpu.memory_space<vmem>>, %arg10: memref<1x1x384xf32, #tpu.memory_space<vmem>>, %arg11: memref<1x128x128xbf16, #tpu.memory_space<vmem>>, %arg12: memref<1x1x128xf32, #tpu.memory_space<vmem>>, %arg13: memref<1x1x128xf32, #tpu.memory_space<vmem>>, %arg14: memref<1x1x128xf32, #tpu.memory_space<vmem>>, %arg15: memref<1x128x512xbf16, #tpu.memory_space<vmem>>, %arg16: memref<1x1x512xf32, #tpu.memory_space<vmem>>, %arg17: memref<1x512x128xbf16, #tpu.memory_space<vmem>>, %arg18: memref<1x1x128xf32, #tpu.memory_space<vmem>>, %arg19: memref<2x1x128xf32, #tpu.memory_space<vmem>>, %arg20: memref<2x8x128xf32, #tpu.memory_space<vmem>>) attributes {dimension_semantics = [#tpu.dimension_semantics<parallel>, #tpu.dimension_semantics<arbitrary>], iteration_bounds = array<i64: 1, 2>, scalar_prefetch = 0 : i64, scratch_operands = 1 : i64, tpu.core_type = #tpu.core_type<tc>, window_params = [{transform_indices = @transform_0, window_bounds = array<i64: 2, 8, 128>}, {transform_indices = @transform_1, window_bounds = array<i64: 2, 8, 128>}, {transform_indices = @transform_2, window_bounds = array<i64: 2, 1, 8>}, {pipeline_mode = #tpu.pipeline_mode<synchronous>, transform_indices = @transform_3, window_bounds = array<i64: 128, 128>}, {pipeline_mode = #tpu.pipeline_mode<synchronous>, transform_indices = @transform_4, window_bounds = array<i64: 1, 128>}, {transform_indices = @transform_5, window_bounds = array<i64: 1, 1, 128>}, {transform_indices = @transform_6, window_bounds = array<i64: 1, 1, 128>}, {transform_indices = @transform_7, window_bounds = array<i64: 1, 128, 384>}, {transform_indices = @transform_8, window_bounds = array<i64: 1, 1, 384>}, {transform_indices = @transform_9, window_bounds = array<i64: 1, 128, 128>}, {transform_indices = @transform_10, window_bounds = array<i64: 1, 1, 128>}, {transform_indices = @transform_11, window_bounds = array<i64: 1, 1, 128>}, {transform_indices = @transform_12, window_bounds = array<i64: 1, 1, 128>}, {transform_indices = @transform_13, window_bounds = array<i64: 1, 128, 512>}, {transform_indices = @transform_14, window_bounds = array<i64: 1, 1, 512>}, {transform_indices = @transform_15, window_bounds = array<i64: 1, 512, 128>}, {transform_indices = @transform_16, window_bounds = array<i64: 1, 1, 128>}, {transform_indices = @transform_17, window_bounds = array<i64: 2, 1, 128>}]} {
    %c0_i32 = arith.constant 0 : i32
    %0 = arith.cmpi eq, %arg1, %c0_i32 : i32
    %1 = arith.extui %0 : i1 to i32
    %c0_i32_0 = arith.constant 0 : i32
    %2 = arith.cmpi ne, %1, %c0_i32_0 : i32
    scf.if %2 {
      %c0_81 = arith.constant 0 : index
      %c0_82 = arith.constant 0 : index
      %c0_83 = arith.constant 0 : index
      %216 = vector.load %arg2[%c0_81, %c0_82, %c0_83] : memref<2x8x128xbf16, #tpu.memory_space<vmem>>, vector<2x8x128xbf16>
      %217 = vector.shape_cast %216 : vector<2x8x128xbf16> to vector<16x128xbf16>
      %c0_84 = arith.constant 0 : index
      %c0_85 = arith.constant 0 : index
      %218 = vector.load %arg5[%c0_84, %c0_85] : memref<128x128xbf16, #tpu.memory_space<vmem>>, vector<128x128xbf16>
      %cst_86 = arith.constant dense<0.000000e+00> : vector<16x128xf32>
      %219 = tpu.matmul %217, %218, %cst_86 {dimension_numbers = #tpu.dot_dimension_numbers<[1], [0], [0], [1], [0, 0, 1, 1], [], []>} : vector<16x128xbf16>, vector<128x128xbf16>, vector<16x128xf32> -> vector<16x128xf32>
      %c0_87 = arith.constant 0 : index
      %c0_88 = arith.constant 0 : index
      %220 = vector.load %arg6[%c0_87, %c0_88] : memref<1x128xf32, #tpu.memory_space<vmem>>, vector<1x128xf32>
      %221 = vector.broadcast %220 : vector<1x128xf32> to vector<16x128xf32>
      %222 = arith.addf %219, %221 : vector<16x128xf32>
      %223 = vector.shape_cast %222 : vector<16x128xf32> to vector<2x8x128xf32>
      %c0_89 = arith.constant 0 : index
      %c0_90 = arith.constant 0 : index
      %c0_91 = arith.constant 0 : index
      %224 = vector.load %arg3[%c0_89, %c0_90, %c0_91] : memref<2x8x128xf32, #tpu.memory_space<vmem>>, vector<2x8x128xf32>
      %225 = arith.addf %223, %224 : vector<2x8x128xf32>
      %c0_92 = arith.constant 0 : index
      %c0_93 = arith.constant 0 : index
      %c0_94 = arith.constant 0 : index
      %226 = vector.load %arg20[%c0_92, %c0_93, %c0_94] : memref<2x8x128xf32, #tpu.memory_space<vmem>>, vector<2x8x128xf32>
      tpu.vector_store %arg20[%c0_92, %c0_93, %c0_94], %225 {strides = array<i32>} : memref<2x8x128xf32, #tpu.memory_space<vmem>>, vector<2x8x128xf32>,
    } else {
    }
    %c0 = arith.constant 0 : index
    %c0_1 = arith.constant 0 : index
    %c0_2 = arith.constant 0 : index
    %3 = vector.load %arg20[%c0, %c0_1, %c0_2] : memref<2x8x128xf32, #tpu.memory_space<vmem>>, vector<2x8x128xf32>
    %4 = vector.shape_cast %3 : vector<2x8x128xf32> to vector<16x128xf32>
    %c0_3 = arith.constant 0 : index
    %c0_4 = arith.constant 0 : index
    %c0_5 = arith.constant 0 : index
    %5 = vector.load %arg7[%c0_3, %c0_4, %c0_5] : memref<1x1x128xf32, #tpu.memory_space<vmem>>, vector<1x1x128xf32>
    %6 = vector.shape_cast %5 : vector<1x1x128xf32> to vector<1x128xf32>
    %c0_6 = arith.constant 0 : index
    %c0_7 = arith.constant 0 : index
    %c0_8 = arith.constant 0 : index
    %7 = vector.load %arg8[%c0_6, %c0_7, %c0_8] : memref<1x1x128xf32, #tpu.memory_space<vmem>>, vector<1x1x128xf32>
    %8 = vector.shape_cast %7 : vector<1x1x128xf32> to vector<1x128xf32>
    %cst = arith.constant dense<0.000000e+00> : vector<16xf32>
    %9 = vector.multi_reduction <add>, %4, %cst [1] : vector<16x128xf32> to vector<16xf32>
    %10 = vector.shape_cast %9 : vector<16xf32> to vector<16x1xf32>
    %cst_9 = arith.constant 1.280000e+02 : f32
    %11 = vector.broadcast %cst_9 : f32 to vector<16x1xf32>
    %12 = arith.divf %10, %11 : vector<16x1xf32>
    %13 = vector.broadcast %12 : vector<16x1xf32> to vector<16x128xf32>
    %14 = arith.subf %4, %13 : vector<16x128xf32>
    %15 = arith.mulf %14, %14 : vector<16x128xf32>
    %cst_10 = arith.constant dense<0.000000e+00> : vector<16xf32>
    %16 = vector.multi_reduction <add>, %15, %cst_10 [1] : vector<16x128xf32> to vector<16xf32>
    %17 = vector.shape_cast %16 : vector<16xf32> to vector<16x1xf32>
    %cst_11 = arith.constant 1.280000e+02 : f32
    %18 = vector.broadcast %cst_11 : f32 to vector<16x1xf32>
    %19 = arith.divf %17, %18 : vector<16x1xf32>
    %20 = vector.broadcast %12 : vector<16x1xf32> to vector<16x128xf32>
    %21 = arith.subf %4, %20 : vector<16x128xf32>
    %cst_12 = arith.constant 9.99999974E-6 : f32
    %22 = vector.broadcast %cst_12 : f32 to vector<16x1xf32>
    %23 = arith.addf %19, %22 : vector<16x1xf32>
    %24 = math.rsqrt %23 : vector<16x1xf32>
    %25 = vector.broadcast %24 : vector<16x1xf32> to vector<16x128xf32>
    %26 = arith.mulf %21, %25 : vector<16x128xf32>
    %27 = vector.broadcast %6 : vector<1x128xf32> to vector<16x128xf32>
    %28 = arith.mulf %26, %27 : vector<16x128xf32>
    %29 = vector.broadcast %8 : vector<1x128xf32> to vector<16x128xf32>
    %30 = arith.addf %28, %29 : vector<16x128xf32>
    %31 = arith.truncf %30 : vector<16x128xf32> to vector<16x128xbf16>
    %c0_13 = arith.constant 0 : index
    %c0_14 = arith.constant 0 : index
    %c0_15 = arith.constant 0 : index
    %32 = vector.load %arg9[%c0_13, %c0_14, %c0_15] : memref<1x128x384xbf16, #tpu.memory_space<vmem>>, vector<1x128x384xbf16>
    %33 = vector.shape_cast %32 : vector<1x128x384xbf16> to vector<128x384xbf16>
    %cst_16 = arith.constant dense<0.000000e+00> : vector<16x384xf32>
    %34 = tpu.matmul %31, %33, %cst_16 {dimension_numbers = #tpu.dot_dimension_numbers<[1], [0], [0], [1], [0, 0, 1, 1], [], []>} : vector<16x128xbf16>, vector<128x384xbf16>, vector<16x384xf32> -> vector<16x384xf32>
    %c0_17 = arith.constant 0 : index
    %c0_18 = arith.constant 0 : index
    %c0_19 = arith.constant 0 : index
    %35 = vector.load %arg10[%c0_17, %c0_18, %c0_19] : memref<1x1x384xf32, #tpu.memory_space<vmem>>, vector<1x1x384xf32>
    %36 = vector.shape_cast %35 : vector<1x1x384xf32> to vector<1x384xf32>
    %37 = vector.broadcast %36 : vector<1x384xf32> to vector<16x384xf32>
    %38 = arith.addf %34, %37 : vector<16x384xf32>
    %c0_20 = arith.constant 0 : index
    %c0_21 = arith.constant 0 : index
    %c0_22 = arith.constant 0 : index
    %39 = vector.load %arg4[%c0_20, %c0_21, %c0_22] : memref<2x1x8xf32, #tpu.memory_space<vmem>>, vector<2x1x8xf32>
    %40 = vector.extract_strided_slice %38 {offsets = [0, 0], sizes = [16, 32], strides = [1, 1]} : vector<16x384xf32> to vector<16x32xf32>
    %41 = vector.extract_strided_slice %38 {offsets = [0, 128], sizes = [16, 32], strides = [1, 1]} : vector<16x384xf32> to vector<16x32xf32>
    %42 = vector.extract_strided_slice %38 {offsets = [0, 256], sizes = [16, 32], strides = [1, 1]} : vector<16x384xf32> to vector<16x32xf32>
    %43 = vector.shape_cast %40 : vector<16x32xf32> to vector<2x8x32xf32>
    %44 = arith.truncf %43 : vector<2x8x32xf32> to vector<2x8x32xbf16>
    %45 = vector.shape_cast %41 : vector<16x32xf32> to vector<2x8x32xf32>
    %46 = arith.truncf %45 : vector<2x8x32xf32> to vector<2x8x32xbf16>
    %47 = vector.shape_cast %42 : vector<16x32xf32> to vector<2x8x32xf32>
    %48 = arith.truncf %47 : vector<2x8x32xf32> to vector<2x8x32xbf16>
    "tpu.trace_start"() <{level = 10 : i32, message = "btd,bsd->bts"}> : () -> ()
    %cst_23 = arith.constant dense<0.000000e+00> : vector<2x8x8xf32>
    %49 = tpu.matmul %44, %46, %cst_23 {dimension_numbers = #tpu.dot_dimension_numbers<[2], [2], [1], [1], [0, 0, 0, 1, 1, 1], [0], [0]>} : vector<2x8x32xbf16>, vector<2x8x32xbf16>, vector<2x8x8xf32> -> vector<2x8x8xf32>
    "tpu.trace_stop"() : () -> ()
    %cst_24 = arith.constant 0.176776692 : f32
    %50 = vector.broadcast %cst_24 : f32 to vector<2x8x8xf32>
    %51 = arith.mulf %49, %50 : vector<2x8x8xf32>
    %52 = vector.broadcast %39 : vector<2x1x8xf32> to vector<2x8x8xf32>
    %53 = arith.addf %51, %52 : vector<2x8x8xf32>
    %cst_25 = arith.constant dense<0xFF800000> : vector<2x8xf32>
    %54 = vector.multi_reduction <maximumf>, %53, %cst_25 [2] : vector<2x8x8xf32> to vector<2x8xf32>
    %55 = vector.shape_cast %54 : vector<2x8xf32> to vector<2x8x1xf32>
    %56 = vector.broadcast %55 : vector<2x8x1xf32> to vector<2x8x8xf32>
    %57 = arith.subf %53, %56 : vector<2x8x8xf32>
    %58 = math.exp %57 : vector<2x8x8xf32>
    %cst_26 = arith.constant dense<0.000000e+00> : vector<2x8xf32>
    %59 = vector.multi_reduction <add>, %58, %cst_26 [2] : vector<2x8x8xf32> to vector<2x8xf32>
    %60 = vector.shape_cast %59 : vector<2x8xf32> to vector<2x8x1xf32>
    %61 = tpu.reciprocal %60 {approx = true} : vector<2x8x1xf32> -> vector<2x8x1xf32>
    %62 = vector.broadcast %61 : vector<2x8x1xf32> to vector<2x8x8xf32>
    %63 = arith.mulf %58, %62 : vector<2x8x8xf32>
    %64 = arith.truncf %63 : vector<2x8x8xf32> to vector<2x8x8xbf16>
    "tpu.trace_start"() <{level = 10 : i32, message = "bts,bsd->btd"}> : () -> ()
    %cst_27 = arith.constant dense<0.000000e+00> : vector<2x8x32xf32>
    %65 = tpu.matmul %64, %48, %cst_27 {dimension_numbers = #tpu.dot_dimension_numbers<[2], [1], [1], [2], [0, 0, 0, 1, 1, 2], [0], [0]>} : vector<2x8x8xbf16>, vector<2x8x32xbf16>, vector<2x8x32xf32> -> vector<2x8x32xf32>
    "tpu.trace_stop"() : () -> ()
    %66 = vector.shape_cast %65 : vector<2x8x32xf32> to vector<16x32xf32>
    %67 = vector.extract_strided_slice %38 {offsets = [0, 32], sizes = [16, 32], strides = [1, 1]} : vector<16x384xf32> to vector<16x32xf32>
    %68 = vector.extract_strided_slice %38 {offsets = [0, 160], sizes = [16, 32], strides = [1, 1]} : vector<16x384xf32> to vector<16x32xf32>
    %69 = vector.extract_strided_slice %38 {offsets = [0, 288], sizes = [16, 32], strides = [1, 1]} : vector<16x384xf32> to vector<16x32xf32>
    %70 = vector.shape_cast %67 : vector<16x32xf32> to vector<2x8x32xf32>
    %71 = arith.truncf %70 : vector<2x8x32xf32> to vector<2x8x32xbf16>
    %72 = vector.shape_cast %68 : vector<16x32xf32> to vector<2x8x32xf32>
    %73 = arith.truncf %72 : vector<2x8x32xf32> to vector<2x8x32xbf16>
    %74 = vector.shape_cast %69 : vector<16x32xf32> to vector<2x8x32xf32>
    %75 = arith.truncf %74 : vector<2x8x32xf32> to vector<2x8x32xbf16>
    "tpu.trace_start"() <{level = 10 : i32, message = "btd,bsd->bts"}> : () -> ()
    %cst_28 = arith.constant dense<0.000000e+00> : vector<2x8x8xf32>
    %76 = tpu.matmul %71, %73, %cst_28 {dimension_numbers = #tpu.dot_dimension_numbers<[2], [2], [1], [1], [0, 0, 0, 1, 1, 1], [0], [0]>} : vector<2x8x32xbf16>, vector<2x8x32xbf16>, vector<2x8x8xf32> -> vector<2x8x8xf32>
    "tpu.trace_stop"() : () -> ()
    %cst_29 = arith.constant 0.176776692 : f32
    %77 = vector.broadcast %cst_29 : f32 to vector<2x8x8xf32>
    %78 = arith.mulf %76, %77 : vector<2x8x8xf32>
    %79 = vector.broadcast %39 : vector<2x1x8xf32> to vector<2x8x8xf32>
    %80 = arith.addf %78, %79 : vector<2x8x8xf32>
    %cst_30 = arith.constant dense<0xFF800000> : vector<2x8xf32>
    %81 = vector.multi_reduction <maximumf>, %80, %cst_30 [2] : vector<2x8x8xf32> to vector<2x8xf32>
    %82 = vector.shape_cast %81 : vector<2x8xf32> to vector<2x8x1xf32>
    %83 = vector.broadcast %82 : vector<2x8x1xf32> to vector<2x8x8xf32>
    %84 = arith.subf %80, %83 : vector<2x8x8xf32>
    %85 = math.exp %84 : vector<2x8x8xf32>
    %cst_31 = arith.constant dense<0.000000e+00> : vector<2x8xf32>
    %86 = vector.multi_reduction <add>, %85, %cst_31 [2] : vector<2x8x8xf32> to vector<2x8xf32>
    %87 = vector.shape_cast %86 : vector<2x8xf32> to vector<2x8x1xf32>
    %88 = tpu.reciprocal %87 {approx = true} : vector<2x8x1xf32> -> vector<2x8x1xf32>
    %89 = vector.broadcast %88 : vector<2x8x1xf32> to vector<2x8x8xf32>
    %90 = arith.mulf %85, %89 : vector<2x8x8xf32>
    %91 = arith.truncf %90 : vector<2x8x8xf32> to vector<2x8x8xbf16>
    "tpu.trace_start"() <{level = 10 : i32, message = "bts,bsd->btd"}> : () -> ()
    %cst_32 = arith.constant dense<0.000000e+00> : vector<2x8x32xf32>
    %92 = tpu.matmul %91, %75, %cst_32 {dimension_numbers = #tpu.dot_dimension_numbers<[2], [1], [1], [2], [0, 0, 0, 1, 1, 2], [0], [0]>} : vector<2x8x8xbf16>, vector<2x8x32xbf16>, vector<2x8x32xf32> -> vector<2x8x32xf32>
    "tpu.trace_stop"() : () -> ()
    %93 = vector.shape_cast %92 : vector<2x8x32xf32> to vector<16x32xf32>
    %94 = vector.extract_strided_slice %38 {offsets = [0, 64], sizes = [16, 32], strides = [1, 1]} : vector<16x384xf32> to vector<16x32xf32>
    %95 = vector.extract_strided_slice %38 {offsets = [0, 192], sizes = [16, 32], strides = [1, 1]} : vector<16x384xf32> to vector<16x32xf32>
    %96 = vector.extract_strided_slice %38 {offsets = [0, 320], sizes = [16, 32], strides = [1, 1]} : vector<16x384xf32> to vector<16x32xf32>
    %97 = vector.shape_cast %94 : vector<16x32xf32> to vector<2x8x32xf32>
    %98 = arith.truncf %97 : vector<2x8x32xf32> to vector<2x8x32xbf16>
    %99 = vector.shape_cast %95 : vector<16x32xf32> to vector<2x8x32xf32>
    %100 = arith.truncf %99 : vector<2x8x32xf32> to vector<2x8x32xbf16>
    %101 = vector.shape_cast %96 : vector<16x32xf32> to vector<2x8x32xf32>
    %102 = arith.truncf %101 : vector<2x8x32xf32> to vector<2x8x32xbf16>
    "tpu.trace_start"() <{level = 10 : i32, message = "btd,bsd->bts"}> : () -> ()
    %cst_33 = arith.constant dense<0.000000e+00> : vector<2x8x8xf32>
    %103 = tpu.matmul %98, %100, %cst_33 {dimension_numbers = #tpu.dot_dimension_numbers<[2], [2], [1], [1], [0, 0, 0, 1, 1, 1], [0], [0]>} : vector<2x8x32xbf16>, vector<2x8x32xbf16>, vector<2x8x8xf32> -> vector<2x8x8xf32>
    "tpu.trace_stop"() : () -> ()
    %cst_34 = arith.constant 0.176776692 : f32
    %104 = vector.broadcast %cst_34 : f32 to vector<2x8x8xf32>
    %105 = arith.mulf %103, %104 : vector<2x8x8xf32>
    %106 = vector.broadcast %39 : vector<2x1x8xf32> to vector<2x8x8xf32>
    %107 = arith.addf %105, %106 : vector<2x8x8xf32>
    %cst_35 = arith.constant dense<0xFF800000> : vector<2x8xf32>
    %108 = vector.multi_reduction <maximumf>, %107, %cst_35 [2] : vector<2x8x8xf32> to vector<2x8xf32>
    %109 = vector.shape_cast %108 : vector<2x8xf32> to vector<2x8x1xf32>
    %110 = vector.broadcast %109 : vector<2x8x1xf32> to vector<2x8x8xf32>
    %111 = arith.subf %107, %110 : vector<2x8x8xf32>
    %112 = math.exp %111 : vector<2x8x8xf32>
    %cst_36 = arith.constant dense<0.000000e+00> : vector<2x8xf32>
    %113 = vector.multi_reduction <add>, %112, %cst_36 [2] : vector<2x8x8xf32> to vector<2x8xf32>
    %114 = vector.shape_cast %113 : vector<2x8xf32> to vector<2x8x1xf32>
    %115 = tpu.reciprocal %114 {approx = true} : vector<2x8x1xf32> -> vector<2x8x1xf32>
    %116 = vector.broadcast %115 : vector<2x8x1xf32> to vector<2x8x8xf32>
    %117 = arith.mulf %112, %116 : vector<2x8x8xf32>
    %118 = arith.truncf %117 : vector<2x8x8xf32> to vector<2x8x8xbf16>
    "tpu.trace_start"() <{level = 10 : i32, message = "bts,bsd->btd"}> : () -> ()
    %cst_37 = arith.constant dense<0.000000e+00> : vector<2x8x32xf32>
    %119 = tpu.matmul %118, %102, %cst_37 {dimension_numbers = #tpu.dot_dimension_numbers<[2], [1], [1], [2], [0, 0, 0, 1, 1, 2], [0], [0]>} : vector<2x8x8xbf16>, vector<2x8x32xbf16>, vector<2x8x32xf32> -> vector<2x8x32xf32>
    "tpu.trace_stop"() : () -> ()
    %120 = vector.shape_cast %119 : vector<2x8x32xf32> to vector<16x32xf32>
    %121 = vector.extract_strided_slice %38 {offsets = [0, 96], sizes = [16, 32], strides = [1, 1]} : vector<16x384xf32> to vector<16x32xf32>
    %122 = vector.extract_strided_slice %38 {offsets = [0, 224], sizes = [16, 32], strides = [1, 1]} : vector<16x384xf32> to vector<16x32xf32>
    %123 = vector.extract_strided_slice %38 {offsets = [0, 352], sizes = [16, 32], strides = [1, 1]} : vector<16x384xf32> to vector<16x32xf32>
    %124 = vector.shape_cast %121 : vector<16x32xf32> to vector<2x8x32xf32>
    %125 = arith.truncf %124 : vector<2x8x32xf32> to vector<2x8x32xbf16>
    %126 = vector.shape_cast %122 : vector<16x32xf32> to vector<2x8x32xf32>
    %127 = arith.truncf %126 : vector<2x8x32xf32> to vector<2x8x32xbf16>
    %128 = vector.shape_cast %123 : vector<16x32xf32> to vector<2x8x32xf32>
    %129 = arith.truncf %128 : vector<2x8x32xf32> to vector<2x8x32xbf16>
    "tpu.trace_start"() <{level = 10 : i32, message = "btd,bsd->bts"}> : () -> ()
    %cst_38 = arith.constant dense<0.000000e+00> : vector<2x8x8xf32>
    %130 = tpu.matmul %125, %127, %cst_38 {dimension_numbers = #tpu.dot_dimension_numbers<[2], [2], [1], [1], [0, 0, 0, 1, 1, 1], [0], [0]>} : vector<2x8x32xbf16>, vector<2x8x32xbf16>, vector<2x8x8xf32> -> vector<2x8x8xf32>
    "tpu.trace_stop"() : () -> ()
    %cst_39 = arith.constant 0.176776692 : f32
    %131 = vector.broadcast %cst_39 : f32 to vector<2x8x8xf32>
    %132 = arith.mulf %130, %131 : vector<2x8x8xf32>
    %133 = vector.broadcast %39 : vector<2x1x8xf32> to vector<2x8x8xf32>
    %134 = arith.addf %132, %133 : vector<2x8x8xf32>
    %cst_40 = arith.constant dense<0xFF800000> : vector<2x8xf32>
    %135 = vector.multi_reduction <maximumf>, %134, %cst_40 [2] : vector<2x8x8xf32> to vector<2x8xf32>
    %136 = vector.shape_cast %135 : vector<2x8xf32> to vector<2x8x1xf32>
    %137 = vector.broadcast %136 : vector<2x8x1xf32> to vector<2x8x8xf32>
    %138 = arith.subf %134, %137 : vector<2x8x8xf32>
    %139 = math.exp %138 : vector<2x8x8xf32>
    %cst_41 = arith.constant dense<0.000000e+00> : vector<2x8xf32>
    %140 = vector.multi_reduction <add>, %139, %cst_41 [2] : vector<2x8x8xf32> to vector<2x8xf32>
    %141 = vector.shape_cast %140 : vector<2x8xf32> to vector<2x8x1xf32>
    %142 = tpu.reciprocal %141 {approx = true} : vector<2x8x1xf32> -> vector<2x8x1xf32>
    %143 = vector.broadcast %142 : vector<2x8x1xf32> to vector<2x8x8xf32>
    %144 = arith.mulf %139, %143 : vector<2x8x8xf32>
    %145 = arith.truncf %144 : vector<2x8x8xf32> to vector<2x8x8xbf16>
    "tpu.trace_start"() <{level = 10 : i32, message = "bts,bsd->btd"}> : () -> ()
    %cst_42 = arith.constant dense<0.000000e+00> : vector<2x8x32xf32>
    %146 = tpu.matmul %145, %129, %cst_42 {dimension_numbers = #tpu.dot_dimension_numbers<[2], [1], [1], [2], [0, 0, 0, 1, 1, 2], [0], [0]>} : vector<2x8x8xbf16>, vector<2x8x32xbf16>, vector<2x8x32xf32> -> vector<2x8x32xf32>
    "tpu.trace_stop"() : () -> ()
    %147 = vector.shape_cast %146 : vector<2x8x32xf32> to vector<16x32xf32>
    %148 = tpu.concatenate %66, %93, %120, %147 in 1 : vector<16x32xf32>, vector<16x32xf32>, vector<16x32xf32>, vector<16x32xf32> -> vector<16x128xf32>
    %149 = arith.truncf %148 : vector<16x128xf32> to vector<16x128xbf16>
    %c0_43 = arith.constant 0 : index
    %c0_44 = arith.constant 0 : index
    %c0_45 = arith.constant 0 : index
    %150 = vector.load %arg11[%c0_43, %c0_44, %c0_45] : memref<1x128x128xbf16, #tpu.memory_space<vmem>>, vector<1x128x128xbf16>
    %151 = vector.shape_cast %150 : vector<1x128x128xbf16> to vector<128x128xbf16>
    %cst_46 = arith.constant dense<0.000000e+00> : vector<16x128xf32>
    %152 = tpu.matmul %149, %151, %cst_46 {dimension_numbers = #tpu.dot_dimension_numbers<[1], [0], [0], [1], [0, 0, 1, 1], [], []>} : vector<16x128xbf16>, vector<128x128xbf16>, vector<16x128xf32> -> vector<16x128xf32>
    %c0_47 = arith.constant 0 : index
    %c0_48 = arith.constant 0 : index
    %c0_49 = arith.constant 0 : index
    %153 = vector.load %arg12[%c0_47, %c0_48, %c0_49] : memref<1x1x128xf32, #tpu.memory_space<vmem>>, vector<1x1x128xf32>
    %154 = vector.shape_cast %153 : vector<1x1x128xf32> to vector<1x128xf32>
    %155 = vector.broadcast %154 : vector<1x128xf32> to vector<16x128xf32>
    %156 = arith.addf %152, %155 : vector<16x128xf32>
    %157 = arith.addf %4, %156 : vector<16x128xf32>
    %c0_50 = arith.constant 0 : index
    %c0_51 = arith.constant 0 : index
    %c0_52 = arith.constant 0 : index
    %158 = vector.load %arg13[%c0_50, %c0_51, %c0_52] : memref<1x1x128xf32, #tpu.memory_space<vmem>>, vector<1x1x128xf32>
    %159 = vector.shape_cast %158 : vector<1x1x128xf32> to vector<1x128xf32>
    %c0_53 = arith.constant 0 : index
    %c0_54 = arith.constant 0 : index
    %c0_55 = arith.constant 0 : index
    %160 = vector.load %arg14[%c0_53, %c0_54, %c0_55] : memref<1x1x128xf32, #tpu.memory_space<vmem>>, vector<1x1x128xf32>
    %161 = vector.shape_cast %160 : vector<1x1x128xf32> to vector<1x128xf32>
    %cst_56 = arith.constant dense<0.000000e+00> : vector<16xf32>
    %162 = vector.multi_reduction <add>, %157, %cst_56 [1] : vector<16x128xf32> to vector<16xf32>
    %163 = vector.shape_cast %162 : vector<16xf32> to vector<16x1xf32>
    %cst_57 = arith.constant 1.280000e+02 : f32
    %164 = vector.broadcast %cst_57 : f32 to vector<16x1xf32>
    %165 = arith.divf %163, %164 : vector<16x1xf32>
    %166 = vector.broadcast %165 : vector<16x1xf32> to vector<16x128xf32>
    %167 = arith.subf %157, %166 : vector<16x128xf32>
    %168 = arith.mulf %167, %167 : vector<16x128xf32>
    %cst_58 = arith.constant dense<0.000000e+00> : vector<16xf32>
    %169 = vector.multi_reduction <add>, %168, %cst_58 [1] : vector<16x128xf32> to vector<16xf32>
    %170 = vector.shape_cast %169 : vector<16xf32> to vector<16x1xf32>
    %cst_59 = arith.constant 1.280000e+02 : f32
    %171 = vector.broadcast %cst_59 : f32 to vector<16x1xf32>
    %172 = arith.divf %170, %171 : vector<16x1xf32>
    %173 = vector.broadcast %165 : vector<16x1xf32> to vector<16x128xf32>
    %174 = arith.subf %157, %173 : vector<16x128xf32>
    %cst_60 = arith.constant 9.99999974E-6 : f32
    %175 = vector.broadcast %cst_60 : f32 to vector<16x1xf32>
    %176 = arith.addf %172, %175 : vector<16x1xf32>
    %177 = math.rsqrt %176 : vector<16x1xf32>
    %178 = vector.broadcast %177 : vector<16x1xf32> to vector<16x128xf32>
    %179 = arith.mulf %174, %178 : vector<16x128xf32>
    %180 = vector.broadcast %159 : vector<1x128xf32> to vector<16x128xf32>
    %181 = arith.mulf %179, %180 : vector<16x128xf32>
    %182 = vector.broadcast %161 : vector<1x128xf32> to vector<16x128xf32>
    %183 = arith.addf %181, %182 : vector<16x128xf32>
    %184 = arith.truncf %183 : vector<16x128xf32> to vector<16x128xbf16>
    %c0_61 = arith.constant 0 : index
    %c0_62 = arith.constant 0 : index
    %c0_63 = arith.constant 0 : index
    %185 = vector.load %arg15[%c0_61, %c0_62, %c0_63] : memref<1x128x512xbf16, #tpu.memory_space<vmem>>, vector<1x128x512xbf16>
    %186 = vector.shape_cast %185 : vector<1x128x512xbf16> to vector<128x512xbf16>
    %cst_64 = arith.constant dense<0.000000e+00> : vector<16x512xf32>
    %187 = tpu.matmul %184, %186, %cst_64 {dimension_numbers = #tpu.dot_dimension_numbers<[1], [0], [0], [1], [0, 0, 1, 1], [], []>} : vector<16x128xbf16>, vector<128x512xbf16>, vector<16x512xf32> -> vector<16x512xf32>
    %c0_65 = arith.constant 0 : index
    %c0_66 = arith.constant 0 : index
    %c0_67 = arith.constant 0 : index
    %188 = vector.load %arg16[%c0_65, %c0_66, %c0_67] : memref<1x1x512xf32, #tpu.memory_space<vmem>>, vector<1x1x512xf32>
    %189 = vector.shape_cast %188 : vector<1x1x512xf32> to vector<1x512xf32>
    %190 = vector.broadcast %189 : vector<1x512xf32> to vector<16x512xf32>
    %191 = arith.addf %187, %190 : vector<16x512xf32>
    %cst_68 = arith.constant 1.702000e+00 : f32
    %192 = vector.broadcast %cst_68 : f32 to vector<16x512xf32>
    %193 = arith.mulf %192, %191 : vector<16x512xf32>
    %194 = arith.truncf %193 : vector<16x512xf32> to vector<16x512xbf16>
    %195 = arith.negf %194 : vector<16x512xbf16>
    %196 = math.exp %195 : vector<16x512xbf16>
    %cst_69 = arith.constant 1.000000e+00 : bf16
    %197 = vector.broadcast %cst_69 : bf16 to vector<16x512xbf16>
    %198 = arith.addf %197, %196 : vector<16x512xbf16>
    %199 = arith.divf %197, %198 : vector<16x512xbf16>
    %200 = arith.extf %199 : vector<16x512xbf16> to vector<16x512xf32>
    %201 = arith.mulf %191, %200 : vector<16x512xf32>
    %202 = arith.truncf %201 : vector<16x512xf32> to vector<16x512xbf16>
    %c0_70 = arith.constant 0 : index
    %c0_71 = arith.constant 0 : index
    %c0_72 = arith.constant 0 : index
    %203 = vector.load %arg17[%c0_70, %c0_71, %c0_72] : memref<1x512x128xbf16, #tpu.memory_space<vmem>>, vector<1x512x128xbf16>
    %204 = vector.shape_cast %203 : vector<1x512x128xbf16> to vector<512x128xbf16>
    %cst_73 = arith.constant dense<0.000000e+00> : vector<16x128xf32>
    %205 = tpu.matmul %202, %204, %cst_73 {dimension_numbers = #tpu.dot_dimension_numbers<[1], [0], [0], [1], [0, 0, 1, 1], [], []>} : vector<16x512xbf16>, vector<512x128xbf16>, vector<16x128xf32> -> vector<16x128xf32>
    %c0_74 = arith.constant 0 : index
    %c0_75 = arith.constant 0 : index
    %c0_76 = arith.constant 0 : index
    %206 = vector.load %arg18[%c0_74, %c0_75, %c0_76] : memref<1x1x128xf32, #tpu.memory_space<vmem>>, vector<1x1x128xf32>
    %207 = vector.shape_cast %206 : vector<1x1x128xf32> to vector<1x128xf32>
    %208 = vector.broadcast %207 : vector<1x128xf32> to vector<16x128xf32>
    %209 = arith.addf %205, %208 : vector<16x128xf32>
    %210 = arith.addf %157, %209 : vector<16x128xf32>
    %211 = vector.shape_cast %210 : vector<16x128xf32> to vector<2x8x128xf32>
    %c0_77 = arith.constant 0 : index
    %c0_78 = arith.constant 0 : index
    %c0_79 = arith.constant 0 : index
    %212 = vector.load %arg20[%c0_77, %c0_78, %c0_79] : memref<2x8x128xf32, #tpu.memory_space<vmem>>, vector<2x8x128xf32>
    tpu.vector_store %arg20[%c0_77, %c0_78, %c0_79], %211 {strides = array<i32>} : memref<2x8x128xf32, #tpu.memory_space<vmem>>, vector<2x8x128xf32>,
    %c1_i32 = arith.constant 1 : i32
    %213 = arith.cmpi eq, %arg1, %c1_i32 : i32
    %214 = arith.extui %213 : i1 to i32
    %c0_i32_80 = arith.constant 0 : i32
    %215 = arith.cmpi ne, %214, %c0_i32_80 : i32
    scf.if %215 {
      %216 = vector.shape_cast %210 : vector<16x128xf32> to vector<2x8x128xf32>
      %217 = vector.extract_strided_slice %216 {offsets = [0, 0, 0], sizes = [2, 1, 128], strides = [1, 1, 1]} : vector<2x8x128xf32> to vector<2x1x128xf32>
      %c0_81 = arith.constant 0 : index
      %c0_82 = arith.constant 0 : index
      %c0_83 = arith.constant 0 : index
      %218 = vector.load %arg19[%c0_81, %c0_82, %c0_83] : memref<2x1x128xf32, #tpu.memory_space<vmem>>, vector<2x1x128xf32>
      tpu.vector_store %arg19[%c0_81, %c0_82, %c0_83], %217 {strides = array<i32>} : memref<2x1x128xf32, #tpu.memory_space<vmem>>, vector<2x1x128xf32>,
    } else {
    }
    return
  }
  func.func @transform_0(%arg0: i32, %arg1: i32) -> (i32, i32, i32) {
    %c0_i32 = arith.constant 0 : i32
    %c0_i32_0 = arith.constant 0 : i32
    %c0_i32_1 = arith.constant 0 : i32
    return %arg0, %c0_i32, %c0_i32_0 : i32, i32, i32
  }
  func.func @transform_1(%arg0: i32, %arg1: i32) -> (i32, i32, i32) {
    %c0_i32 = arith.constant 0 : i32
    %c0_i32_0 = arith.constant 0 : i32
    %c0_i32_1 = arith.constant 0 : i32
    return %arg0, %c0_i32, %c0_i32_0 : i32, i32, i32
  }
  func.func @transform_2(%arg0: i32, %arg1: i32) -> (i32, i32, i32) {
    %c0_i32 = arith.constant 0 : i32
    %c0_i32_0 = arith.constant 0 : i32
    %c0_i32_1 = arith.constant 0 : i32
    return %arg0, %c0_i32, %c0_i32_0 : i32, i32, i32
  }
  func.func @transform_3(%arg0: i32, %arg1: i32) -> (i32, i32) {
    %c0_i32 = arith.constant 0 : i32
    %c0_i32_0 = arith.constant 0 : i32
    %c0_i32_1 = arith.constant 0 : i32
    return %c0_i32, %c0_i32_0 : i32, i32
  }
  func.func @transform_4(%arg0: i32, %arg1: i32) -> (i32, i32) {
    %c0_i32 = arith.constant 0 : i32
    %c0_i32_0 = arith.constant 0 : i32
    %c0_i32_1 = arith.constant 0 : i32
    return %c0_i32, %c0_i32_0 : i32, i32
  }
  func.func @transform_5(%arg0: i32, %arg1: i32) -> (i32, i32, i32) {
    %c0_i32 = arith.constant 0 : i32
    %c0_i32_0 = arith.constant 0 : i32
    %c0_i32_1 = arith.constant 0 : i32
    return %arg1, %c0_i32, %c0_i32_0 : i32, i32, i32
  }
  func.func @transform_6(%arg0: i32, %arg1: i32) -> (i32, i32, i32) {
    %c0_i32 = arith.constant 0 : i32
    %c0_i32_0 = arith.constant 0 : i32
    %c0_i32_1 = arith.constant 0 : i32
    return %arg1, %c0_i32, %c0_i32_0 : i32, i32, i32
  }
  func.func @transform_7(%arg0: i32, %arg1: i32) -> (i32, i32, i32) {
    %c0_i32 = arith.constant 0 : i32
    %c0_i32_0 = arith.constant 0 : i32
    %c0_i32_1 = arith.constant 0 : i32
    return %arg1, %c0_i32, %c0_i32_0 : i32, i32, i32
  }
  func.func @transform_8(%arg0: i32, %arg1: i32) -> (i32, i32, i32) {
    %c0_i32 = arith.constant 0 : i32
    %c0_i32_0 = arith.constant 0 : i32
    %c0_i32_1 = arith.constant 0 : i32
    return %arg1, %c0_i32, %c0_i32_0 : i32, i32, i32
  }
  func.func @transform_9(%arg0: i32, %arg1: i32) -> (i32, i32, i32) {
    %c0_i32 = arith.constant 0 : i32
    %c0_i32_0 = arith.constant 0 : i32
    %c0_i32_1 = arith.constant 0 : i32
    return %arg1, %c0_i32, %c0_i32_0 : i32, i32, i32
  }
  func.func @transform_10(%arg0: i32, %arg1: i32) -> (i32, i32, i32) {
    %c0_i32 = arith.constant 0 : i32
    %c0_i32_0 = arith.constant 0 : i32
    %c0_i32_1 = arith.constant 0 : i32
    return %arg1, %c0_i32, %c0_i32_0 : i32, i32, i32
  }
  func.func @transform_11(%arg0: i32, %arg1: i32) -> (i32, i32, i32) {
    %c0_i32 = arith.constant 0 : i32
    %c0_i32_0 = arith.constant 0 : i32
    %c0_i32_1 = arith.constant 0 : i32
    return %arg1, %c0_i32, %c0_i32_0 : i32, i32, i32
  }
  func.func @transform_12(%arg0: i32, %arg1: i32) -> (i32, i32, i32) {
    %c0_i32 = arith.constant 0 : i32
    %c0_i32_0 = arith.constant 0 : i32
    %c0_i32_1 = arith.constant 0 : i32
    return %arg1, %c0_i32, %c0_i32_0 : i32, i32, i32
  }
  func.func @transform_13(%arg0: i32, %arg1: i32) -> (i32, i32, i32) {
    %c0_i32 = arith.constant 0 : i32
    %c0_i32_0 = arith.constant 0 : i32
    %c0_i32_1 = arith.constant 0 : i32
    return %arg1, %c0_i32, %c0_i32_0 : i32, i32, i32
  }
  func.func @transform_14(%arg0: i32, %arg1: i32) -> (i32, i32, i32) {
    %c0_i32 = arith.constant 0 : i32
    %c0_i32_0 = arith.constant 0 : i32
    %c0_i32_1 = arith.constant 0 : i32
    return %arg1, %c0_i32, %c0_i32_0 : i32, i32, i32
  }
  func.func @transform_15(%arg0: i32, %arg1: i32) -> (i32, i32, i32) {
    %c0_i32 = arith.constant 0 : i32
    %c0_i32_0 = arith.constant 0 : i32
    %c0_i32_1 = arith.constant 0 : i32
    return %arg1, %c0_i32, %c0_i32_0 : i32, i32, i32
  }
  func.func @transform_16(%arg0: i32, %arg1: i32) -> (i32, i32, i32) {
    %c0_i32 = arith.constant 0 : i32
    %c0_i32_0 = arith.constant 0 : i32
    %c0_i32_1 = arith.constant 0 : i32
    return %arg1, %c0_i32, %c0_i32_0 : i32, i32, i32
  }
  func.func @transform_17(%arg0: i32, %arg1: i32) -> (i32, i32, i32) {
    %c0_i32 = arith.constant 0 : i32
    %c0_i32_0 = arith.constant 0 : i32
    %c0_i32_1 = arith.constant 0 : i32
    return %arg0, %c0_i32, %c0_i32_0 : i32, i32, i32
  }
}

</mosaic_0001>

<bundles_post_ra>
// kernel: clip_forward.3
= control target key start
LH: loop header
LB: loop body
LE: loop exit
PB: predicated region body
PF: predicated region fallthrough
CT: control target
= control target key end

     0   :  { %vm210_vm0 = vcmask 1045504   ;;  %vm211_vm1 = vcmask 1046528   ;;  %v712_v0 = vmov 0.0   ;;  %v713_v2 = vmov 65535   ;;  %s915_s4 = inlined_call_operand.vmem [shape: bf16[13,52], index: 4, kind: input, shape index: {}]   ;;  %s916_s11 = inlined_call_operand.vmem [shape: bf16[13,64], index: 11, kind: input, shape index: {}]   ;;  %s917_s1 = inlined_call_operand.vmem [shape: f32[2,13], index: 1, kind: input, shape index: {}]   ;;  %s918_s0 = inlined_call_operand.vmem [shape: f32[2,128], index: 0, kind: input, shape index: {}]   ;;  %s919_s6 = inlined_call_operand.vmem [shape: bf16[52,52], index: 6, kind: input, shape index: {}]   ;;  %s920_s8 = inlined_call_operand.vmem [shape: bf16[52,13], index: 8, kind: input, shape index: {}]   ;;  %s921_s5 = inlined_call_operand.vmem [shape: f32[1,52], index: 5, kind: input, shape index: {}]   ;;  %s922_s10 = inlined_call_operand.vmem [shape: bf16[128,64], index: 10, kind: input, shape index: {}]   ;;  %s923_s2 = inlined_call_operand.vmem [shape: f32[1,128], index: 2, kind: input, shape index: {}]   ;;  %s924_s3 = inlined_call_operand.vmem [shape: f32[1,128], index: 3, kind: input, shape index: {}]   ;;  %s925_s7 = inlined_call_operand.vmem [shape: f32[1,52], index: 7, kind: input, shape index: {}]   ;;  %s926_s9 = inlined_call_operand.vmem [shape: f32[1,13], index: 9, kind: input, shape index: {}]   ;;  %s927_s12 = inlined_call_operand.<no memory space> [shape: f32[1], index: 12, kind: input, shape index: {}]   ;;  %s928_s13 = inlined_call_operand.vmem [shape: f32[2,2], index: 13, kind: output, shape index: {}]  }
   0x1   :  { %644 = vmatprep.subr.bf16.mxu1 %v712_v0  ;;  %v688_v1 = vld [vmem:[%s915_s4] sm:$0x7f]   ;;  %624 = vmatprep.subr.bf16.mxu0 %v712_v0  ;;  %v212_v3 = vsel %vm210_vm0, 4294967295, %v713_v2  ;;  %vm714_vm2 = vmmov 0   ;;  %vm49_vm3 = vcmask 1041408   ;;  %vm206_vm4 = vcmask 105472  }
   0x2   :  { %v790_v4 = vsel %vm211_vm1, %v212_v3, 0  ;;  %v795_v5 = vld [vmem:[%s916_s11] sm:$0x7f]   ;;  %646 = vmatprep.mubr.msk.bf16.mxu1 %vm714_vm2, %v712_v0  ;;  %640 = vmatprep.mubr.msk.bf16.mxu0 %vm714_vm2, %v712_v0  ;;  %v691_v13 = vld [vmem:[%s919_s6 + $0x8] sm:$0xff]   ;;  %v692_v14 = vld [vmem:[%s919_s6 + $0x10] sm:$0xff]   ;;  %vm294_vm5 = vcmask 424960  }
   0x3   :  { %v190_v6 = vld [vmem:[%s917_s1] sm:$0x3]  ;;  %v215_v7 = vand.u32 %v688_v1, %v790_v4  ;;  %v436_v9 = vand.u32 %v795_v5, %v790_v4  ;;  %v693_v15 = vld [vmem:[%s919_s6 + $0x18] ss:$0 sps:$4 sm:$0x33]   ;;  %v695_v31 = vld [vmem:[%s920_s8 + $0x8] sm:$0xff]  }
   0x4   :  { %v46_v8 = vld [vmem:[%s918_s0] sm:$0x3]  ;;  %v191_v10 = vpack.c.bf16 %v190_v6, %v190_v6  ;;  %v299_v16 = vsel %vm49_vm3, %v693_v15, 0  ;;  %v696_v32 = vld [vmem:[%s920_s8 + $0x10] sm:$0xff]   ;;  %v699_v38 = vld [vmem:[%s922_s10 + $0x8] sm:$0xff]   ;;  %vm184_vm6 = vcmask 517120  }
   0x5   :  { %v50_v11 = vsel %vm49_vm3, %v46_v8, 0.0  ;;  %645 = vmatpush3.bf16.msra.mxu1 %v215_v7  ;;  %v690_v12 = vld [vmem:[%s919_s6] sm:$0xff]   ;;  %v697_v33 = vld [vmem:[%s920_s8 + $0x18] ss:$0 sps:$4 sm:$0x33]   ;;  %v700_v40 = vld [vmem:[%s922_s10 + $0x10] sm:$0xff]  }
   0x6   :  { %51 = vadd.xlane.f32.xlu0 %v50_v11  ;;  %650 = vmatprep.subr.bf16.mxu1 %v712_v0  ;;  %v580_v22 = vld [vmem:[%s921_s5] ss:$0 sm:$0xff]  ;;  %v382_v34 = vsel %vm49_vm3, %v697_v33, 0  ;;  %v701_v41 = vld [vmem:[%s922_s10 + $0x18] sm:$0xff]   ;;  %v703_v45 = vld [vmem:[%s922_s10 + $0x28] sm:$0xff]   ;;  %vm485_vm7 = vcmask 523264  }
   0x7   :  { %v694_v29 = vld [vmem:[%s920_s8] sm:$0xff]   ;;  %v704_v48 = vld [vmem:[%s922_s10 + $0x30] sm:$0xff]   ;;  %v705_v51 = vld [vmem:[%s922_s10 + $0x38] sm:$0xff]   ;;  %vm564_vm8 = vcmask 9216  }
   0x8   :  { %647 = vmatmul.mubr.msk.bf16.vlgmr.msra.gmra.mrb[0].mxu1 %vm206_vm4, %v191_v10  ;;  %v698_v36 = vld [vmem:[%s922_s10] sm:$0xff]  }
   0x9   :  { %651 = vmatpush3.bf16.msra.mxu1 %v690_v12  ;;  %658 = vmatprep.mubr.msk.bf16.mxu1 %vm714_vm2, %v712_v0  ;;  %v702_v43 = vld [vmem:[%s922_s10 + $0x20] sm:$0xff]  }
   0xa   :  { %652 = vmatprep.subr.bf16.mxu1 %v712_v0  ;;  %625 = vmatpush3.bf16.msra.mxu0 %v698_v36  ;;  %v570_v46 = vld [vmem:[%s923_s2] ss:$0 sm:$0xff] }
   0xb   :  { %626 = vmatprep.subr.bf16.mxu0 %v712_v0  ;;  %v571_v49 = vld [vmem:[%s924_s3] ss:$0 sm:$0xff] }
   0xc   :  { %v583_v53 = vld [vmem:[%s925_s7] ss:$0 sm:$0xff] }
   0xd   :  { %653 = vmatpush3.bf16.msra.mxu1 %v691_v13  ;;  %v589_v2 = vld [vmem:[%s926_s9] ss:$0 sm:$0xff] }
   0xe   :  { %654 = vmatprep.subr.bf16.mxu1 %v712_v0  ;;  %627 = vmatpush3.bf16.msra.mxu0 %v699_v38 }
   0xf   :  { %628 = vmatprep.subr.bf16.mxu0 %v712_v0 }
  0x11   :  { %655 = vmatpush3.bf16.msra.mxu1 %v692_v14 }
  0x12   :  { %656 = vmatprep.subr.bf16.mxu1 %v712_v0  ;;  %629 = vmatpush3.bf16.msra.mxu0 %v700_v40 }
  0x13   :  { %630 = vmatprep.subr.bf16.mxu0 %v712_v0 }
  0x15   :  { %657 = vmatpush3.bf16.msra.mxu1 %v299_v16 }
  0x16   :  { %662 = vmatprep.subr.bf16.mxu1 %v712_v0  ;;  %631 = vmatpush3.bf16.msra.mxu0 %v701_v41 }
  0x17   :  { %632 = vmatprep.subr.bf16.mxu0 %v712_v0 }
  0x1a   :  { %633 = vmatpush3.bf16.msra.mxu0 %v702_v43 }
  0x1b   :  { %634 = vmatprep.subr.bf16.mxu0 %v712_v0 }
  0x1e   :  { %635 = vmatpush3.bf16.msra.mxu0 %v703_v45 }
  0x1f   :  { %636 = vmatprep.subr.bf16.mxu0 %v712_v0 }
  0x22   :  { %637 = vmatpush3.bf16.msra.mxu0 %v704_v48 }
  0x23   :  { %638 = vmatprep.subr.bf16.mxu0 %v712_v0 }
  0x26   :  { %639 = vmatpush3.bf16.msra.mxu0 %v705_v51 }
  0x27   :  { %674 = vmatprep.subr.bf16.mxu0 %v712_v0 }
  0x93   :  { %v52_v17 = vpop.xlane.xlu0 %51 }
  0x94   :  { %v54_v18 = vmul.f32 0.0078125, %v52_v17 }
  0x96   :  { %v55_v19 = vsub.f32 %v46_v8, %v54_v18 }
  0x98   :  { %v56_v20 = vmul.f32 %v55_v19, %v55_v19 }
  0x9a   :  { %v57_v21 = vsel %vm49_vm3, %v56_v20, 0.0 }
  0x9b   :  { %58 = vadd.xlane.f32.xlu0 %v57_v21 }
  0xdb   :  { %v251_v23 = vpop.f32.mrb[0].mxu1 }
  0xdc   :  { %v252_v24 = vadd.f32 %v580_v22, %v251_v23  ;;  %v648_v25 = vpop.f32.mrb[1].mxu1  ;;  %v562_v22 = vstv %s927_s12 }
  0xdd   :  { %v254_v26 = vpop.f32.mrb[2].mxu1 }
  0xde   :  { %v257_v27 = vmax.f32 %v252_v24, 0.0  ;;  %v649_v28 = vpop.f32.mrb[3].mxu1 }
  0xe0   :  { %v258_v30 = vpack.c.bf16 %v257_v27, %v257_v27 }
  0xe2   :  { %659 = vmatmul.mubr.msk.bf16.vlgmr.msra.gmra.mrb[4].mxu1 %vm294_vm5, %v258_v30 }
  0xe3   :  { %663 = vmatpush3.bf16.msra.mxu1 %v694_v29  ;;  %670 = vmatprep.mubr.msk.bf16.mxu1 %vm714_vm2, %v712_v0 }
  0xe4   :  { %664 = vmatprep.subr.bf16.mxu1 %v712_v0 }
  0xe7   :  { %665 = vmatpush3.bf16.msra.mxu1 %v695_v31 }
  0xe8   :  { %666 = vmatprep.subr.bf16.mxu1 %v712_v0 }
  0xeb   :  { %667 = vmatpush3.bf16.msra.mxu1 %v696_v32 }
  0xec   :  { %668 = vmatprep.subr.bf16.mxu1 %v712_v0 }
  0xef   :  { %669 = vmatpush3.bf16.msra.mxu1 %v382_v34 }
  0xf0   :  { %680 = vmatprep.subr.mxu1 %v712_v0 }
 0x128   :  { %v59_v35 = vpop.xlane.xlu0 %58 }
 0x129   :  { %v60_v37 = vmul.f32 0.0078125, %v59_v35 }
 0x12b   :  { %v61_v39 = vadd.f32 1e-05, %v60_v37 }
 0x12d   :  { %706 = vrsqrt.f32 %v61_v39 }
 0x137   :  { %v707_v42 = vpop.eup %706 }
 0x138   :  { %v63_v44 = vmul.f32 %v707_v42, %v55_v19 }
 0x13a   :  { %v70_v47 = vmul.f32 %v570_v46, %v63_v44 }
 0x13c   :  { %v77_v50 = vadd.f32 %v571_v49, %v70_v47 }
 0x13e   :  { %v78_v52 = vpack.c.bf16 %v77_v50, %v77_v50 }
 0x140   :  { %641 = vmatmul.mubr.bf16.vlgmr.msra.gmra.mrb[0].mxu0 %v78_v52 }
 0x141   :  { %675 = vmatpush3.bf16.msra.mxu0 %v436_v9  ;;  %676 = vmatprep.mubr.msk.bf16.mxu0 %vm714_vm2, %v712_v0 }
 0x1b5   :  { %v335_v54 = vpop.f32.mrb[4].mxu1 }
 0x1b6   :  { %v336_v55 = vadd.f32 %v583_v53, %v335_v54  ;;  %v660_v56 = vpop.f32.mrb[5].mxu1 }
 0x1b7   :  { %v338_v57 = vpop.f32.mrb[6].mxu1 }
 0x1b8   :  { %v341_v58 = vmax.f32 %v336_v55, 0.0  ;;  %v661_v59 = vpop.f32.mrb[7].mxu1 }
 0x1ba   :  { %v342_v60 = vpack.c.bf16 %v341_v58, %v341_v58 }
 0x1bc   :  { %671 = vmatmul.mubr.msk.bf16.vlgmr.msra.gmra.mrb[8].mxu1 %vm294_vm5, %v342_v60 }
 0x1bd   :  { %682 = vmatprep.mubr.msk.f32.mxu1 %vm714_vm2, %v712_v0 }
 0x213   :  { %v177_v61 = vpop.f32.mrb[0].mxu0 }
 0x214   :  { %v642_v62 = vpop.f32.mrb[1].mxu0  ;;  %v183_v12 = vmul.f32 %v177_v61, %v177_v61 }
 0x215   :  { %v180_v63 = vpop.f32.mrb[2].mxu0 }
 0x216   :  { %v643_v1 = vpop.f32.mrb[3].mxu0  ;;  %v185_v15 = vsel %vm184_vm6, %v183_v12, 0.0 }
 0x28f   :  { %v418_v3 = vpop.f32.mrb[8].mxu1 }
 0x290   :  { %v419_v4 = vadd.f32 %v589_v2, %v418_v3  ;;  %v672_v5 = vpop.f32.mrb[9].mxu1 }
 0x291   :  { %v421_v6 = vpop.f32.mrb[10].mxu1 }
 0x292   :  { %v424_v7 = vpack.c.bf16 %v419_v4, %v419_v4  ;;  %v673_v8 = vpop.f32.mrb[11].mxu1 }
 0x294   :  { %677 = vmatmul.mubr.msk.bf16.vlgmr.msra.gmra.mrb[4].mxu0 %vm206_vm4, %v424_v7 }
 0x367   :  { %v472_v9 = vpop.f32.mrb[4].mxu0 }
 0x368   :  { %v678_v10 = vpop.f32.mrb[5].mxu0  ;;  %v478_v11 = vmul.f32 %v472_v9, %v472_v9 }
 0x369   :  { %v475_v0 = vpop.f32.mrb[6].mxu0 }
 0x36a   :  { %v679_v13 = vpop.f32.mrb[7].mxu0  ;;  %v479_v14 = vsel %vm184_vm6, %v478_v11, 0.0 }
 0x36b   :  { %480 = vadd.xlane.f32.xlu1 %v479_v14 }
 0x36f   :  { %186 = vadd.xlane.f32.xlu1 %v185_v15 }
 0x3f8   :  { %v481_v16 = vpop.xlane.xlu1 %480 }
 0x3f9   :  { %708 = vrsqrt.f32 %v481_v16 }
 0x3fc   :  { %v187_v17 = vpop.xlane.xlu1 %186 }
 0x3fd   :  { %710 = vrsqrt.f32 %v187_v17 }
 0x403   :  { %v709_v18 = vpop.eup %708 }
 0x404   :  { %v483_v19 = vmul.f32 %v709_v18, %v472_v9 }
 0x406   :  { %681 = vmatpush3.xpose.msk.msra.mxu1 %vm485_vm7, %v483_v19 }
 0x407   :  { %v711_v20 = vpop.eup %710 }
 0x408   :  { %v189_v21 = vmul.f32 %v711_v20, %v177_v61 }
 0x40a   :  { %683 = vmatmul.mubr.msk.f32.vlgmr.msra.gmra.mrb[12].mxu1 %vm485_vm7, %v189_v21 }
 0x4dd   :  { %v558_v23 = vpop.f32.mrb[12].mxu1 }
 0x4de   :  { %v563_v24 = vmul.f32 %v562_v22, %v558_v23  ;;  %v684_v25 = vpop.f32.mrb[13].mxu1 }
 0x4e0   :  { %565 = vst.msk [vmem:[%s928_s13] sm:$0x3] %vm564_vm8, %v563_v24 }

// kernel: clip_forward.2
= control target key start
LH: loop header
LB: loop body
LE: loop exit
PB: predicated region body
PF: predicated region fallthrough
CT: control target
= control target key end

     0   :  { %s6284_s0 = inlined_call_operand.hbm [shape: bf16[2,8,128], index: 0, kind: input, shape index: {}]   ;;  %s6285_s1 = inlined_call_operand.hbm [shape: f32[2,8,128], index: 1, kind: input, shape index: {}]   ;;  %s6286_s2 = inlined_call_operand.hbm [shape: f32[2,1,8], index: 2, kind: input, shape index: {}]   ;;  %s6287_s3 = inlined_call_operand.hbm [shape: bf16[128,128], index: 3, kind: input, shape index: {}]   ;;  %s6288_s4 = inlined_call_operand.hbm [shape: f32[1,128], index: 4, kind: input, shape index: {}]   ;;  %s6289_s5 = inlined_call_operand.hbm [shape: f32[2,1,128], index: 5, kind: input, shape index: {}]   ;;  %s6290_s6 = inlined_call_operand.hbm [shape: f32[2,1,128], index: 6, kind: input, shape index: {}]   ;;  %s6291_s7 = inlined_call_operand.hbm [shape: bf16[2,128,384], index: 7, kind: input, shape index: {}]   ;;  %s6292_s8 = inlined_call_operand.hbm [shape: f32[2,1,384], index: 8, kind: input, shape index: {}]   ;;  %s6293_s9 = inlined_call_operand.hbm [shape: bf16[2,128,128], index: 9, kind: input, shape index: {}]   ;;  %s6294_s10 = inlined_call_operand.hbm [shape: f32[2,1,128], index: 10, kind: input, shape index: {}]   ;;  %s6295_s11 = inlined_call_operand.hbm [shape: f32[2,1,128], index: 11, kind: input, shape index: {}]   ;;  %s6296_s12 = inlined_call_operand.hbm [shape: f32[2,1,128], index: 12, kind: input, shape index: {}]   ;;  %s6297_s13 = inlined_call_operand.hbm [shape: bf16[2,128,512], index: 13, kind: input, shape index: {}]   ;;  %s6298_s14 = inlined_call_operand.hbm [shape: f32[2,1,512], index: 14, kind: input, shape index: {}]   ;;  %s6299_s15 = inlined_call_operand.hbm [shape: bf16[2,512,128], index: 15, kind: input, shape index: {}]   ;;  %s6300_s16 = inlined_call_operand.hbm [shape: f32[2,1,128], index: 16, kind: input, shape index: {}]   ;;  %s6301_s17 = inlined_call_operand.hbm [shape: f32[2,1,128], index: 17, kind: output, shape index: {}]  }
   0x1   :  { %6343 = sst [smem:[#allocation47_spill]] %s6284_s0 }
   0x2   :  { %6344 = sst [smem:[#allocation48_spill]] %s6285_s1 }
   0x3   :  { %6345 = sst [smem:[#allocation49_spill]] %s6286_s2 }
   0x4   :  { %6346 = sst [smem:[#allocation50_spill]] %s6287_s3 }
   0x5   :  { %6347 = sst [smem:[#allocation51_spill]] %s6288_s4 }
   0x6   :  { %6348 = sst [smem:[#allocation52_spill]] %s6289_s5 }
   0x7   :  { %6349 = sst [smem:[#allocation53_spill]] %s6291_s7 }
   0x8   :  { %6350 = sst [smem:[#allocation54_spill]] %s6292_s8 }
   0x9   :  { %6351 = sst [smem:[#allocation55_spill]] %s6293_s9 }
   0xa   :  { %6352 = sst [smem:[#allocation56_spill]] %s6294_s10 }
   0xb   :  { %6353 = sst [smem:[#allocation57_spill]] %s6295_s11 }
   0xc   :  { %6354 = sst [smem:[#allocation58_spill]] %s6296_s12 }
   0xd   :  { %6355 = sst [smem:[#allocation59_spill]] %s6297_s13 }
   0xe   :  { %6356 = sst [smem:[#allocation60_spill]] %s6298_s14 }
   0xf   :  { %6357 = sst [smem:[#allocation61_spill]] %s6300_s16 }
  0x10   :  { %6358 = sst [smem:[#allocation62_spill]] %s6301_s17 }
  0x11   :  { %22 = vsyncpa [#allocation4], 0 }
  0x12   :  { %23 = vsyncpa [#allocation7], 0 }
  0x13   :  { %24 = vsyncpa [#allocation10], 0 }
  0x14   :  { %25 = vsyncpa [#allocation13], 0 }
  0x15   :  { %27 = vsyncpa [#allocation13 + $0x1], 0 }
  0x16   :  { %28 = vsyncpa [#allocation16], 0 }
  0x17   :  { %30 = vsyncpa [#allocation16 + $0x1], 0 }
  0x18   :  { %31 = vsyncpa [#allocation19], 0 }
  0x19   :  { %33 = vsyncpa [#allocation19 + $0x1], 0 }
  0x1a   :  { %34 = vsyncpa [#allocation22], 0 }
  0x1b   :  { %36 = vsyncpa [#allocation22 + $0x1], 0 }
  0x1c   :  { %37 = vsyncpa [#allocation25], 0 }
  0x1d   :  { %39 = vsyncpa [#allocation25 + $0x1], 0 }
  0x1e   :  { %40 = vsyncpa [#allocation28], 0 }
  0x1f   :  { %42 = vsyncpa [#allocation28 + $0x1], 0 }
  0x20   :  { %43 = vsyncpa [#allocation5], 0  ;;  %s5229_s24 = smov 0   ;;  %s5231_s25 = smov 0  }
  0x21   :  { %s5233_s26 = smov 0   ;;  %s5235_s27 = smov 0  }
  0x22   :  { %s5237_s28 = smov 0   ;;  %s5239_s29 = smov 0  }
  0x23 LB: > { %6359 = sst [smem:[#allocation41_spill]] %s5084_s25  ;;  %s5258_s0 = sadd.s32 4294967295, %s5100_s29   ;;  %s5100_s29 = sphi %s5239_s29, %s49_s29   ;;  %s5096_s28 = sphi %s5237_s28, %s6432_s28   ;;  %s5092_s27 = sphi %s5235_s27, %s6431_s27   ;;  %s5088_s26 = sphi %s5233_s26, %s6430_s26   ;;  %s5084_s25 = sphi %s5231_s25, %s6429_s25   ;;  %s5080_s24 = sphi %s5229_s24, %s6427_s24  }
  0x24   : > { %6360 = sst [smem:[#allocation42_spill]] %s5092_s27  ;;  %p195_p0 = scmp.ne.s32.totalorder %s5088_s26, %s5084_s25 }
  0x25   : > { %6361 = sst [smem:[#allocation43_spill]] %s5258_s0  ;;  %p196_p1 = scmp.eq.s32.totalorder %s5100_s29, 0 }
  0x26   : > { %p201_p2 = scmp.ne.s32.totalorder %s5084_s25, %s5080_s24  ;;  %p6312_p3 = scmp.eq.s32.totalorder %s5258_s0, 0 }
  0x27   : > { %p197_p4 = por %p196_p1, %p195_p0  ;;  %p3653_p5 = scmp.ge.s32.totalorder %s5100_s29, 1 }
  0x28   : > { %p5269_p6 = por %p6312_p3, %p201_p2  ;;  %p524_p7 = scmp.lt.s32.totalorder %s5100_s29, 3 }
  0x29   : > { %s5102_s1 = smov [#allocation6]   ;;  %p4205_p10 = scmp.lt.s32.totalorder %s5100_s29, 2 }
  0x2a   : > { %s6362_s18 = scalar_select %p5269_p6, 1, 0 }
  0x2b   : > { %p5274_p8 = pnand %p3653_p5, %p524_p7  ;;  %s555_s20 = sshll.u32 %s5102_s1, 4  ;;  %s556_s20 = int_to_ptr.vmem [resolvable:$true] %s555_s20 }
  0x2c   : > { %6363 = sst [smem:[#allocation44_spill]] %s6362_s18  ;;  %s5288_s22 = sand.u32 1, %s5088_s26  }
  0x2d   : > { %s6364_s19 = scalar_select %p5274_p8, 1, 0 }
  0x2e   : > { %p4147_p9 = pneg %p5274_p8  ;;  %p5290_p12 = pnand %p4205_p10, %p197_p4 }
  0x2f   : > { %6365 = sst [smem:[#allocation45_spill]] %s6364_s19  ;;  %s6368_s17 = sld [smem:[#allocation48_spill]] }
  0x30   : > { %p5283_p11 = pnand %p4147_p9, %p6312_p3 }
  0x31   : > { %s6367_s23 = scalar_select %p5290_p12, 1, 0 }
  0x32   : > { %s6366_s21 = scalar_select %p5283_p11, 1, 0 }
  0x33   : > { %p5302_p0 = pneg %p5283_p11 }
  0x35   : > { %s4488_s1 = scalar_lea.hbm %s6368_s17, 256 }
  0x36   : > { %p4489_p13 = scmp.ne.s32.totalorder %s6368_s17, %s4488_s1  ;;  %p4495_p4 = scmp.lt.u32.totalorder %s4488_s1, %s6368_s17 }
  0x37   : > { %s6369_s25 = scalar_select %p5302_p0, 1, 0 }
  0x38   : > { %p4491_p1 = pnand %p5302_p0, %p4489_p13 }
  0x3a   : > { %p4492_p2 = pneg %p4491_p1 }
  0x3c   : > { %p4497_p5 = pnand %p4495_p4, %p4492_p2 }
  0x3e   : > { %4500 = shalt.err (!%p4497_p5)
}
  0x3f   : > { %s4501_s30 = scalar_lea.vmem %s556_s20, 256  ;;  %p4509_p3 = scmp.lt.s32.totalorder %s556_s20, %s556_s20 }
  0x40   : > { %p4502_p7 = scmp.ne.s32.totalorder %s556_s20, %s4501_s30  ;;  %p4510_p6 = scmp.lt.s32.totalorder %s4501_s30, %s4501_s30 }
  0x42   : > { %p4504_p9 = pnand %p4502_p7, %p5302_p0  ;;  %p4511_p8 = por %p4510_p6, %p4509_p3 }
  0x44   : > { %p4505_p10 = pneg %p4504_p9 }
  0x46   : > { %p4512_p12 = pnand %p4511_p8, %p4505_p10 }
  0x48   : > { %4515 = shalt.err (!%p4512_p12)
}
  0x49   : > { %s5103_s27 = smov 128   ;;  %s5104_s18 = smov 8  }
  0x4a   : > { %4153 = dma.hbm_to_vmem [thread:$0]  (!%p5283_p11), %s6368_s17, 256, %s556_s20, [#allocation7], %s5103_s27, %s5103_s27, %s5104_s18  }
  0x4b   : > { %s5105_s24 = smov [#allocation9]   ;;  %s6370_s3 = sld [smem:[#allocation50_spill]] }
  0x4c   : > { %s584_s1 = sshll.u32 %s5105_s24, 4  ;;  %s585_s1 = int_to_ptr.vmem [resolvable:$true] %s584_s1 }
  0x51   : > { %s4516_s12 = scalar_lea.hbm %s6370_s3, 1024 }
  0x52   : > { %p4517_p3 = scmp.ne.s32.totalorder %s6370_s3, %s4516_s12  ;;  %p4523_p12 = scmp.lt.u32.totalorder %s4516_s12, %s6370_s3 }
  0x54   : > { %p4519_p6 = pnand %p4517_p3, %p5302_p0 }
  0x56   : > { %p4520_p8 = pneg %p4519_p6 }
  0x58   : > { %p4525_p13 = pnand %p4523_p12, %p4520_p8 }
  0x5a   : > { %4528 = shalt.err (!%p4525_p13)
}
  0x5b   : > { %s4529_s20 = scalar_lea.vmem %s585_s1, 1024  ;;  %p4537_p5 = scmp.lt.s32.totalorder %s585_s1, %s585_s1 }
  0x5c   : > { %p4530_p1 = scmp.ne.s32.totalorder %s585_s1, %s4529_s20  ;;  %p4538_p7 = scmp.lt.s32.totalorder %s4529_s20, %s4529_s20 }
  0x5e   : > { %p4532_p2 = pnand %p4530_p1, %p5302_p0  ;;  %p4539_p9 = por %p4538_p7, %p4537_p5 }
  0x60   : > { %p4533_p4 = pneg %p4532_p2 }
  0x62   : > { %p4540_p10 = pnand %p4539_p9, %p4533_p4 }
  0x64   : > { %4543 = shalt.err (!%p4540_p10)
}
  0x65   : > { %s6322_s10 = smov 64   ;;  %s6324_s4 = smov 4  }
  0x66   : > { %4159 = dma.hbm_to_vmem [thread:$0]  (!%p5283_p11), %s6370_s3, 1024, %s585_s1, [#allocation10], %s6322_s10, %s6322_s10, %s6324_s4  }
  0x67   : > { %s58_s14 = sadd.s32 1, %s5096_s28  ;;  %s5341_s16 = sand.u32 1, %s5100_s29  }
  0x68   : > { %p59_p3 = scmp.ge.s32.totalorder %s58_s14, 2  ;;  %s5344_s27 = sshll.u32 %s5096_s28, 4 }
  0x69   : > { %s6372_s5 = sld [smem:[#allocation52_spill]]  ;;  %s612_s24 = scalar_lea.vmem [#allocation12], %s5288_s22 }
  0x6a   : > { %s6434_s14 = smov (%p59_p3, %s58_s14), 0  ;;  %s619_s1 = sshll.u32 %s612_s24, 4  ;;  %s5357_s1 = int_to_ptr.vmem [resolvable:$true] %s619_s1 }
  0x6b   : > { %6371 = sst [smem:[#allocation46_spill]] %s6434_s14  ;;  %s185_s30 = ssub.s32 %s5096_s28, %s6434_s14 }
  0x6c   : > { %p5359_p6 = scmp.eq.s32.totalorder %s185_s30, 0  ;;  %p6374_p12 = scmp.ne.s32.totalorder %s6367_s23, 0 }
  0x6e   : > { %s6373_s20 = scalar_select %p5359_p6, 1, 0 }
  0x6f   : > { %s5352_s19 = scalar_lea.hbm %s6372_s5, %s5344_s27  ;;  %p5368_p13 = pneg %p6374_p12 }
  0x70   : > { %s4544_s12 = scalar_lea.hbm %s5352_s19, 16  ;;  %s4549_s10 = scalar_lea.hbm %s6372_s5, 32 }
  0x71   : > { %p4545_p8 = scmp.ne.s32.totalorder %s5352_s19, %s4544_s12  ;;  %p4550_p4 = scmp.lt.u32.totalorder %s5352_s19, %s6372_s5 }
  0x72   : > { %s6375_s18 = scalar_select %p5368_p13, 1, 0 }
  0x73   : > { %p4547_p1 = pnand %p5368_p13, %p4545_p8  ;;  %p4551_p5 = scmp.lt.u32.totalorder %s4549_s10, %s4544_s12 }
  0x74   : > { %p4553_p9 = scmp.lt.u32.totalorder %s4544_s12, %s5352_s19 }
  0x75   : > { %p4548_p2 = pneg %p4547_p1  ;;  %p4552_p7 = por %p4551_p5, %p4550_p4 }
  0x77   : > { %p4554_p10 = por %p4553_p9, %p4552_p7 }
  0x79   : > { %p4555_p3 = pnand %p4554_p10, %p4548_p2 }
  0x7b   : > { %4558 = shalt.err (!%p4555_p3)
}
  0x7c   : > { %s4559_s8 = scalar_lea.vmem %s5357_s1, 16  ;;  %s5108_s0 = smov [#allocation12]  }
  0x7d   : > { %p4560_p8 = scmp.ne.s32.totalorder %s5357_s1, %s4559_s8  ;;  %s4564_s24 = sshll.u32 %s5108_s0, 4  ;;  %s4565_s24 = int_to_ptr.vmem [resolvable:$false] %s4564_s24 }
  0x7e   : > { %s4566_s4 = scalar_lea.vmem %s4565_s24, 32  ;;  %p4567_p0 = scmp.lt.s32.totalorder %s5357_s1, %s4565_s24 }
  0x7f   : > { %p4562_p1 = pnand %p4560_p8, %p5368_p13  ;;  %p4568_p6 = scmp.lt.s32.totalorder %s4566_s4, %s4559_s8 }
  0x81   : > { %p4563_p11 = pneg %p4562_p1  ;;  %p4569_p4 = por %p4568_p6, %p4567_p0 }
  0x83   : > { %p4570_p5 = pnand %p4569_p4, %p4563_p11 }
  0x85   : > { %4573 = shalt.err (!%p4570_p5)
}
  0x86   : > { %s6376_s10 = scalar_lea.sflag [#allocation13], %s5341_s16  ;;  %s6377_s12 = sadd.s32 1, %s5088_s26 }
  0x87   : > { %4166 = dma.hbm_to_vmem [thread:$0]  (!%p6374_p12), %s5352_s19, 16, %s5357_s1, %s6376_s10  }
  0x88   : > { %p6378_p2 = scmp.ne.s32.totalorder %s6373_s20, 0  ;;  %s4093_s30 = smul.u32 192, %s5288_s22 }
  0x89   : > { %s4094_s0 = smul.u32 3072, %s5096_s28  ;;  %s6379_s7 = sld [smem:[#allocation53_spill]] }
  0x8a   : > { %s5398_s8 = scalar_select %p6378_p2, %s5088_s26, %s6377_s12  }
  0x8b   : > { %s647_s5 = scalar_lea.vmem [#allocation15], %s4093_s30  ;;  %s3664_s19 = sshll.u32 %s5288_s22, 6 }
  0x8c   : > { %s654_s17 = sshll.u32 %s647_s5, 4  ;;  %s6333_s1 = scalar_lea.sflag [#allocation16], %s5341_s16  ;;  %s5407_s17 = int_to_ptr.vmem [resolvable:$true] %s654_s17 }
  0x8f   : > { %s5405_s3 = scalar_lea.hbm %s6379_s7, %s4094_s0  ;;  %s4579_s0 = scalar_lea.hbm %s6379_s7, 6144 }
  0x90   : > { %s4574_s20 = scalar_lea.hbm %s5405_s3, 3072  ;;  %p4580_p7 = scmp.lt.u32.totalorder %s5405_s3, %s6379_s7 }
  0x91   : > { %p4575_p11 = scmp.ne.s32.totalorder %s5405_s3, %s4574_s20  ;;  %p4581_p9 = scmp.lt.u32.totalorder %s4579_s0, %s4574_s20 }
  0x92   : > { %p4583_p3 = scmp.lt.u32.totalorder %s4574_s20, %s5405_s3 }
  0x93   : > { %p4577_p0 = pnand %p4575_p11, %p5368_p13  ;;  %p4582_p10 = por %p4581_p9, %p4580_p7 }
  0x95   : > { %p4578_p6 = pneg %p4577_p0  ;;  %p4584_p8 = por %p4583_p3, %p4582_p10 }
  0x97   : > { %p4585_p1 = pnand %p4584_p8, %p4578_p6 }
  0x99   : > { %4588 = shalt.err (!%p4585_p1)
}
  0x9a   : > { %s4589_s5 = scalar_lea.vmem %s5407_s17, 3072  ;;  %s5109_s30 = smov [#allocation15]  }
  0x9b   : > { %p4590_p4 = scmp.ne.s32.totalorder %s5407_s17, %s4589_s5  ;;  %s4594_s10 = sshll.u32 %s5109_s30, 4  ;;  %s4595_s10 = int_to_ptr.vmem [resolvable:$false] %s4594_s10 }
  0x9c   : > { %s4596_s12 = scalar_lea.vmem %s4595_s10, 6144  ;;  %p4597_p11 = scmp.lt.s32.totalorder %s5407_s17, %s4595_s10 }
  0x9d   : > { %p4592_p5 = pnand %p4590_p4, %p5368_p13  ;;  %p4598_p0 = scmp.lt.s32.totalorder %s4596_s12, %s4589_s5 }
  0x9f   : > { %p4593_p2 = pneg %p4592_p5  ;;  %p4599_p7 = por %p4598_p0, %p4597_p11 }
  0xa1   : > { %p4600_p9 = pnand %p4599_p7, %p4593_p2 }
  0xa3   : > { %4603 = shalt.err (!%p4600_p9)
}
  0xa4   : > { %s5110_s20 = smov 192   ;;  %s5111_s0 = smov 12  }
  0xa5   : > { %4172 = dma.hbm_to_vmem [thread:$0]  (!%p6374_p12), %s5405_s3, 3072, %s5407_s17, %s6333_s1, %s5110_s20, %s5110_s20, %s5111_s0  }
  0xa6   : > { %s3830_s24 = sshll.u32 %s5096_s28, 10  ;;  %s6380_s9 = sld [smem:[#allocation55_spill]] }
  0xa7   : > { %s687_s10 = scalar_lea.vmem [#allocation18], %s3664_s19  ;;  %s6332_s7 = scalar_lea.sflag [#allocation19], %s5341_s16 }
  0xa8   : > { %s694_s12 = sshll.u32 %s687_s10, 4  ;;  %s5442_s12 = int_to_ptr.vmem [resolvable:$true] %s694_s12 }
  0xac   : > { %s5438_s5 = scalar_lea.hbm %s6380_s9, %s3830_s24  ;;  %s4609_s20 = scalar_lea.hbm %s6380_s9, 2048 }
  0xad   : > { %s4604_s14 = scalar_lea.hbm %s5438_s5, 1024  ;;  %p4610_p8 = scmp.lt.u32.totalorder %s5438_s5, %s6380_s9 }
  0xae   : > { %p4605_p6 = scmp.ne.s32.totalorder %s5438_s5, %s4604_s14  ;;  %p4611_p1 = scmp.lt.u32.totalorder %s4609_s20, %s4604_s14 }
  0xaf   : > { %p4613_p5 = scmp.lt.u32.totalorder %s4604_s14, %s5438_s5 }
  0xb0   : > { %p4607_p10 = pnand %p4605_p6, %p5368_p13  ;;  %p4612_p4 = por %p4611_p1, %p4610_p8 }
  0xb2   : > { %p4608_p3 = pneg %p4607_p10  ;;  %p4614_p2 = por %p4613_p5, %p4612_p4 }
  0xb4   : > { %p4615_p11 = pnand %p4614_p2, %p4608_p3 }
  0xb6   : > { %4618 = shalt.err (!%p4615_p11)
}
  0xb7   : > { %s4619_s19 = scalar_lea.vmem %s5442_s12, 1024  ;;  %s5112_s4 = smov [#allocation18]  }
  0xb8   : > { %p4620_p0 = scmp.ne.s32.totalorder %s5442_s12, %s4619_s19  ;;  %s4624_s30 = sshll.u32 %s5112_s4, 4  ;;  %s4625_s30 = int_to_ptr.vmem [resolvable:$false] %s4624_s30 }
  0xb9   : > { %s4626_s10 = scalar_lea.vmem %s4625_s30, 2048  ;;  %p4627_p6 = scmp.lt.s32.totalorder %s5442_s12, %s4625_s30 }
  0xba   : > { %p4622_p7 = pnand %p4620_p0, %p5368_p13  ;;  %p4628_p10 = scmp.lt.s32.totalorder %s4626_s10, %s4619_s19 }
  0xbc   : > { %p4623_p9 = pneg %p4622_p7  ;;  %p4629_p8 = por %p4628_p10, %p4627_p6 }
  0xbe   : > { %p4630_p1 = pnand %p4629_p8, %p4623_p9 }
  0xc0   : > { %4633 = shalt.err (!%p4630_p1)
}
  0xc1   : > { %s6381_s14 = smov 4   ;;  %s6382_s3 = smov 64  }
  0xc2   : > { %4178 = dma.hbm_to_vmem [thread:$0]  (!%p6374_p12), %s5438_s5, 1024, %s5442_s12, %s6332_s7, %s6382_s3, %s6382_s3, %s6381_s14  }
  0xc3   : > { %s6383_s11 = sld [smem:[#allocation57_spill]]  ;;  %s724_s24 = scalar_lea.vmem [#allocation21], %s5288_s22 }
  0xc4   : > { %s731_s19 = sshll.u32 %s724_s24, 4  ;;  %s6335_s4 = scalar_lea.sflag [#allocation22], %s5341_s16  ;;  %s732_s19 = int_to_ptr.vmem [resolvable:$true] %s731_s19 }
  0xc9   : > { %s5475_s0 = scalar_lea.hbm %s6383_s11, %s5344_s27  ;;  %s4639_s12 = scalar_lea.hbm %s6383_s11, 32 }
  0xca   : > { %s4634_s30 = scalar_lea.hbm %s5475_s0, 16  ;;  %p4640_p2 = scmp.lt.u32.totalorder %s5475_s0, %s6383_s11 }
  0xcb   : > { %p4635_p3 = scmp.ne.s32.totalorder %s5475_s0, %s4634_s30  ;;  %p4641_p11 = scmp.lt.u32.totalorder %s4639_s12, %s4634_s30 }
  0xcc   : > { %p4643_p7 = scmp.lt.u32.totalorder %s4634_s30, %s5475_s0 }
  0xcd   : > { %p4637_p4 = pnand %p4635_p3, %p5368_p13  ;;  %p4642_p0 = por %p4641_p11, %p4640_p2 }
  0xcf   : > { %p4638_p5 = pneg %p4637_p4  ;;  %p4644_p9 = por %p4643_p7, %p4642_p0 }
  0xd1   : > { %p4645_p6 = pnand %p4644_p9, %p4638_p5 }
  0xd3   : > { %4648 = shalt.err (!%p4645_p6)
}
  0xd4   : > { %s4649_s24 = scalar_lea.vmem %s732_s19, 16  ;;  %s5113_s7 = smov [#allocation21]  }
  0xd5   : > { %p4650_p10 = scmp.ne.s32.totalorder %s732_s19, %s4649_s24  ;;  %s4654_s1 = sshll.u32 %s5113_s7, 4  ;;  %s4655_s1 = int_to_ptr.vmem [resolvable:$false] %s4654_s1 }
  0xd6   : > { %s4656_s10 = scalar_lea.vmem %s4655_s1, 32  ;;  %p4657_p3 = scmp.lt.s32.totalorder %s732_s19, %s4655_s1 }
  0xd7   : > { %p4652_p8 = pnand %p4650_p10, %p5368_p13  ;;  %p4658_p4 = scmp.lt.s32.totalorder %s4656_s10, %s4649_s24 }
  0xd9   : > { %p4653_p1 = pneg %p4652_p8  ;;  %p4659_p12 = por %p4658_p4, %p4657_p3 }
  0xdb   : > { %p4660_p2 = pnand %p4659_p12, %p4653_p1 }
  0xdd   : > { %4663 = shalt.err (!%p4660_p2)
}
  0xde   : > { %p6384_p11 = scmp.ne.s32.totalorder %s6367_s23, 0  ;;  %s3670_s7 = sshll.u32 %s5288_s22, 8 }
  0xdf   : > { %s3831_s30 = sshll.u32 %s5096_s28, 12  ;;  %s6385_s13 = sld [smem:[#allocation59_spill]] }
  0xe0   : > { %4184 = dma.hbm_to_vmem [thread:$0]  (!%p6384_p11), %s5475_s0, 16, %s732_s19, %s6335_s4  }
  0xe1   : > { %s759_s17 = scalar_lea.vmem [#allocation24], %s3670_s7  ;;  %s6336_s24 = scalar_lea.sflag [#allocation25], %s5341_s16 }
  0xe2   : > { %s766_s20 = sshll.u32 %s759_s17, 4  ;;  %s5509_s20 = int_to_ptr.vmem [resolvable:$true] %s766_s20 }
  0xe5   : > { %s5505_s12 = scalar_lea.hbm %s6385_s13, %s3831_s30  ;;  %s4669_s1 = scalar_lea.hbm %s6385_s13, 8192 }
  0xe6   : > { %s4664_s10 = scalar_lea.hbm %s5505_s12, 4096  ;;  %p4670_p7 = scmp.lt.u32.totalorder %s5505_s12, %s6385_s13 }
  0xe7   : > { %p4665_p12 = scmp.ne.s32.totalorder %s5505_s12, %s4664_s10  ;;  %p4671_p9 = scmp.lt.u32.totalorder %s4669_s1, %s4664_s10 }
  0xe8   : > { %p4673_p10 = scmp.lt.u32.totalorder %s4664_s10, %s5505_s12 }
  0xe9   : > { %p4667_p5 = pnand %p4665_p12, %p5368_p13  ;;  %p4672_p6 = por %p4671_p9, %p4670_p7 }
  0xeb   : > { %p4668_p0 = pneg %p4667_p5  ;;  %p4674_p8 = por %p4673_p10, %p4672_p6 }
  0xed   : > { %p4675_p1 = pnand %p4674_p8, %p4668_p0 }
  0xef   : > { %4678 = shalt.err (!%p4675_p1)
}
  0xf0   : > { %s4679_s17 = scalar_lea.vmem %s5509_s20, 4096  ;;  %s5114_s0 = smov [#allocation24]  }
  0xf1   : > { %p4680_p3 = scmp.ne.s32.totalorder %s5509_s20, %s4679_s17  ;;  %s4684_s19 = sshll.u32 %s5114_s0, 4  ;;  %s4685_s19 = int_to_ptr.vmem [resolvable:$false] %s4684_s19 }
  0xf2   : > { %s4686_s4 = scalar_lea.vmem %s4685_s19, 8192  ;;  %p4687_p12 = scmp.lt.s32.totalorder %s5509_s20, %s4685_s19 }
  0xf3   : > { %p4682_p4 = pnand %p4680_p3, %p5368_p13  ;;  %p4688_p5 = scmp.lt.s32.totalorder %s4686_s4, %s4679_s17 }
  0xf5   : > { %p4683_p2 = pneg %p4682_p4  ;;  %p4689_p7 = por %p4688_p5, %p4687_p12 }
  0xf7   : > { %p4690_p9 = pnand %p4689_p7, %p4683_p2 }
  0xf9   : > { %4693 = shalt.err (!%p4690_p9)
}
  0xfa   : > { %s5115_s10 = smov 256   ;;  %s6337_s1 = smov 16  }
  0xfb   : > { %4190 = dma.hbm_to_vmem [thread:$0]  (!%p6384_p11), %s5505_s12, 4096, %s5509_s20, %s6336_s24, %s5115_s10, %s5115_s10, %s6337_s1  }
  0xfc   : > { %s5541_s0 = scalar_lea.hbm %s6299_s15, %s3831_s30  ;;  %s799_s19 = scalar_lea.vmem [#allocation27], %s3670_s7 }
  0xfd   : > { %s806_s4 = sshll.u32 %s799_s19, 4  ;;  %s6339_s9 = scalar_lea.sflag [#allocation28], %s5341_s16  ;;  %s5545_s4 = int_to_ptr.vmem [resolvable:$true] %s806_s4 }
  0xfe   : > { %s4694_s11 = scalar_lea.hbm %s5541_s0, 4096  ;;  %s4699_s30 = scalar_lea.hbm %s6299_s15, 8192 }
  0xff   : > { %p4695_p0 = scmp.ne.s32.totalorder %s5541_s0, %s4694_s11  ;;  %p4700_p8 = scmp.lt.u32.totalorder %s5541_s0, %s6299_s15 }
 0x100   : > { %p4701_p1 = scmp.lt.u32.totalorder %s4699_s30, %s4694_s11  ;;  %p4703_p4 = scmp.lt.u32.totalorder %s4694_s11, %s5541_s0 }
 0x101   : > { %p4697_p6 = pnand %p4695_p0, %p5368_p13 }
 0x102   : > { %p4702_p3 = por %p4701_p1, %p4700_p8 }
 0x103   : > { %p4698_p10 = pneg %p4697_p6 }
 0x104   : > { %p4704_p2 = por %p4703_p4, %p4702_p3 }
 0x106   : > { %p4705_p12 = pnand %p4704_p2, %p4698_p10 }
 0x108   : > { %4708 = shalt.err (!%p4705_p12)
}
 0x109   : > { %s4709_s7 = scalar_lea.vmem %s5545_s4, 4096  ;;  %s5117_s17 = smov [#allocation27]  }
 0x10a   : > { %p4710_p5 = scmp.ne.s32.totalorder %s5545_s4, %s4709_s7  ;;  %s4714_s19 = sshll.u32 %s5117_s17, 4  ;;  %s4715_s19 = int_to_ptr.vmem [resolvable:$false] %s4714_s19 }
 0x10b   : > { %s4716_s12 = scalar_lea.vmem %s4715_s19, 8192  ;;  %p4717_p0 = scmp.lt.s32.totalorder %s5545_s4, %s4715_s19 }
 0x10c   : > { %p4712_p7 = pnand %p4710_p5, %p5368_p13  ;;  %p4718_p6 = scmp.lt.s32.totalorder %s4716_s12, %s4709_s7 }
 0x10e   : > { %p4713_p9 = pneg %p4712_p7  ;;  %p4719_p8 = por %p4718_p6, %p4717_p0 }
 0x110   : > { %p4720_p1 = pnand %p4719_p8, %p4713_p9 }
 0x112   : > { %4723 = shalt.err (!%p4720_p1)
}
 0x113   : > { %4196 = dma.hbm_to_vmem [thread:$0]  (!%p6384_p11), %s5541_s0, 4096, %s5545_s4, %s6339_s9, %s6382_s3, %s6382_s3, %s6381_s14  }
 0x114   : > { %s5118_s11 = smov [#allocation3]   ;;  %s5119_s30 = smov [#allocation8]  }
 0x115   : > { %s539_s20 = sshll.u32 %s5118_s11, 4  ;;  %s571_s10 = sshll.u32 %s5119_s30, 4  ;;  %s540_s20 = int_to_ptr.vmem [resolvable:$true] %s539_s20  ;;  %s5574_s10 = int_to_ptr.vmem [resolvable:$true] %s571_s10 }
 0x116   : > { %s6386_s17 = sld [smem:[#allocation47_spill]]  ;;  %p6387_p3 = scmp.ne.s32.totalorder %s6369_s25, 0 }
 0x11c   : > { %s4724_s19 = scalar_lea.hbm %s6386_s17, 128 }
 0x11d   : > { %p4725_p10 = scmp.ne.s32.totalorder %s6386_s17, %s4724_s19  ;;  %p4731_p12 = scmp.lt.u32.totalorder %s4724_s19, %s6386_s17 }
 0x11f   : > { %p4727_p4 = pnand %p4725_p10, %p6387_p3 }
 0x121   : > { %p4728_p2 = pneg %p4727_p4 }
 0x123   : > { %p4733_p5 = pnand %p4731_p12, %p4728_p2 }
 0x125   : > { %4736 = shalt.err (!%p4733_p5)
}
 0x126   : > { %s4737_s4 = scalar_lea.vmem %s540_s20, 128  ;;  %p4745_p6 = scmp.lt.s32.totalorder %s540_s20, %s540_s20 }
 0x127   : > { %p4738_p7 = scmp.ne.s32.totalorder %s540_s20, %s4737_s4  ;;  %p4746_p8 = scmp.lt.s32.totalorder %s4737_s4, %s4737_s4 }
 0x129   : > { %p4740_p9 = pnand %p4738_p7, %p6387_p3  ;;  %p4747_p1 = por %p4746_p8, %p4745_p6 }
 0x12b   : > { %p4741_p0 = pneg %p4740_p9 }
 0x12d   : > { %p4748_p11 = pnand %p4747_p1, %p4741_p0 }
 0x12f   : > { %4751 = shalt.err (!%p4748_p11)
}
 0x130   : > { %p6388_p10 = scmp.ne.s32.totalorder %s6366_s21, 0  ;;  %s6389_s2 = sld [smem:[#allocation49_spill]] }
 0x132   : > { %4150 = dma.hbm_to_vmem [thread:$0]  (!%p6388_p10), %s6386_s17, 128, %s540_s20, [#allocation4], %s6382_s3, %s6382_s3, %s6381_s14  }
 0x136   : > { %s4752_s5 = scalar_lea.hbm %s6389_s2, 32 }
 0x137   : > { %p4753_p4 = scmp.ne.s32.totalorder %s6389_s2, %s4752_s5  ;;  %p4759_p12 = scmp.lt.u32.totalorder %s4752_s5, %s6389_s2 }
 0x139   : > { %p4755_p11 = pnand %p4753_p4, %p6387_p3 }
 0x13b   : > { %p4756_p2 = pneg %p4755_p11 }
 0x13d   : > { %p4761_p5 = pnand %p4759_p12, %p4756_p2 }
 0x13f   : > { %4764 = shalt.err (!%p4761_p5)
}
 0x140   : > { %s4765_s14 = scalar_lea.vmem %s5574_s10, 32  ;;  %p4773_p6 = scmp.lt.s32.totalorder %s5574_s10, %s5574_s10 }
 0x141   : > { %p4766_p7 = scmp.ne.s32.totalorder %s5574_s10, %s4765_s14  ;;  %p4774_p8 = scmp.lt.s32.totalorder %s4765_s14, %s4765_s14 }
 0x143   : > { %p4768_p9 = pnand %p4766_p7, %p6387_p3  ;;  %p4775_p1 = por %p4774_p8, %p4773_p6 }
 0x145   : > { %p4769_p0 = pneg %p4768_p9 }
 0x147   : > { %p4776_p4 = pnand %p4775_p1, %p4769_p0 }
 0x149   : > { %4779 = shalt.err (!%p4776_p4)
}
 0x14a   : > { %s5120_s3 = smov 1   ;;  %s6390_s20 = smov 16  }
 0x14b   : > { %4156 = dma.hbm_to_vmem [thread:$0]  (!%p6388_p10), %s6389_s2, 32, %s5574_s10, [#allocation7], %s6390_s20, %s6390_s20, %s5120_s3  }
 0x14c   : > { %s5121_s1 = smov [#allocation11]   ;;  %s5626_s7 = scalar_lea.hbm %s6290_s6, %s5344_s27 }
 0x14d   : > { %s598_s11 = sshll.u32 %s5121_s1, 4  ;;  %s6391_s0 = sld [smem:[#allocation51_spill]]  ;;  %s599_s11 = int_to_ptr.vmem [resolvable:$true] %s598_s11 }
 0x153   : > { %s4780_s14 = scalar_lea.hbm %s6391_s0, 16 }
 0x154   : > { %p4781_p11 = scmp.ne.s32.totalorder %s6391_s0, %s4780_s14  ;;  %p4787_p5 = scmp.lt.u32.totalorder %s4780_s14, %s6391_s0 }
 0x156   : > { %p4783_p2 = pnand %p4781_p11, %p6387_p3 }
 0x158   : > { %p4784_p12 = pneg %p4783_p2 }
 0x15a   : > { %p4789_p7 = pnand %p4787_p5, %p4784_p12 }
 0x15c   : > { %4792 = shalt.err (!%p4789_p7)
}
 0x15d   : > { %s4793_s20 = scalar_lea.vmem %s599_s11, 16  ;;  %s4800_s4 = scalar_lea.vmem %s599_s11, 32 }
 0x15e   : > { %p4794_p9 = scmp.ne.s32.totalorder %s599_s11, %s4793_s20  ;;  %p4801_p8 = scmp.lt.s32.totalorder %s599_s11, %s599_s11 }
 0x15f   : > { %p4802_p1 = scmp.lt.s32.totalorder %s4800_s4, %s4793_s20 }
 0x160   : > { %p4796_p0 = pnand %p4794_p9, %p6387_p3 }
 0x161   : > { %p4803_p4 = por %p4802_p1, %p4801_p8 }
 0x162   : > { %p4797_p6 = pneg %p4796_p0 }
 0x164   : > { %p4804_p13 = pnand %p4803_p4, %p4797_p6 }
 0x166   : > { %4807 = shalt.err (!%p4804_p13)
}
 0x167   : > { %4162 = dma.hbm_to_vmem [thread:$0]  (!%p6388_p10), %s6391_s0, 16, %s599_s11, [#allocation10]  }
 0x168   : > { %s629_s25 = scalar_lea.vmem [#allocation14], %s5288_s22  ;;  %s4095_s1 = smul.u32 3, %s5288_s22 }
 0x169   : > { %s636_s24 = sshll.u32 %s629_s25, 4  ;;  %s4096_s30 = smul.u32 48, %s5096_s28  ;;  %s637_s24 = int_to_ptr.vmem [resolvable:$true] %s636_s24 }
 0x16a   : > { %s4808_s5 = scalar_lea.hbm %s5626_s7, 16  ;;  %p6392_p3 = scmp.ne.s32.totalorder %s6375_s18, 0 }
 0x16b   : > { %p4809_p13 = scmp.ne.s32.totalorder %s5626_s7, %s4808_s5  ;;  %s4813_s12 = scalar_lea.hbm %s6290_s6, 32 }
 0x16c   : > { %p4814_p12 = scmp.lt.u32.totalorder %s5626_s7, %s6290_s6  ;;  %p4815_p5 = scmp.lt.u32.totalorder %s4813_s12, %s4808_s5 }
 0x16d   : > { %p4811_p11 = pnand %p4809_p13, %p6392_p3  ;;  %p4817_p7 = scmp.lt.u32.totalorder %s4808_s5, %s5626_s7 }
 0x16e   : > { %p4816_p10 = por %p4815_p5, %p4814_p12 }
 0x16f   : > { %p4812_p2 = pneg %p4811_p11 }
 0x170   : > { %p4818_p9 = por %p4817_p7, %p4816_p10 }
 0x172   : > { %p4819_p0 = pnand %p4818_p9, %p4812_p2 }
 0x174   : > { %4822 = shalt.err (!%p4819_p0)
}
 0x175   : > { %s4823_s11 = scalar_lea.vmem %s637_s24, 16  ;;  %s5122_s3 = smov [#allocation14]  }
 0x176   : > { %p4824_p6 = scmp.ne.s32.totalorder %s637_s24, %s4823_s11  ;;  %s4828_s20 = sshll.u32 %s5122_s3, 4  ;;  %s4829_s20 = int_to_ptr.vmem [resolvable:$false] %s4828_s20 }
 0x177   : > { %s4830_s4 = scalar_lea.vmem %s4829_s20, 32  ;;  %p4831_p4 = scmp.lt.s32.totalorder %s637_s24, %s4829_s20 }
 0x178   : > { %p4826_p8 = pnand %p4824_p6, %p6392_p3  ;;  %p4832_p13 = scmp.lt.s32.totalorder %s4830_s4, %s4823_s11 }
 0x17a   : > { %p4827_p1 = pneg %p4826_p8  ;;  %p4833_p11 = por %p4832_p13, %p4831_p4 }
 0x17c   : > { %p4834_p5 = pnand %p4833_p11, %p4827_p1 }
 0x17e   : > { %4837 = shalt.err (!%p4834_p5)
}
 0x17f   : > { %p6393_p12 = scmp.ne.s32.totalorder %s6367_s23, 0  ;;  %s6394_s9 = scalar_lea.sflag [#allocation13], %s5341_s16 }
 0x180   : > { %s6395_s5 = sld [smem:[#allocation54_spill]]  ;;  %s668_s19 = scalar_lea.vmem [#allocation17], %s4095_s1 }
 0x181   : > { %4169 = dma.hbm_to_vmem [thread:$0]  (!%p6393_p12), %s5626_s7, 16, %s637_s24, %s6394_s9  }
 0x182   : > { %s676_s12 = sshll.u32 %s668_s19, 4  ;;  %s6396_s11 = sld [smem:[#allocation56_spill]]  ;;  %s677_s12 = int_to_ptr.vmem [resolvable:$true] %s676_s12 }
 0x186   : > { %s5671_s21 = scalar_lea.hbm %s6395_s5, %s4096_s30  ;;  %s4843_s30 = scalar_lea.hbm %s6395_s5, 96 }
 0x187   : > { %s4838_s20 = scalar_lea.hbm %s5671_s21, 48  ;;  %p4844_p9 = scmp.lt.u32.totalorder %s5671_s21, %s6395_s5 }
 0x188   : > { %s5679_s3 = scalar_lea.hbm %s6396_s11, %s5344_s27  ;;  %p4839_p2 = scmp.ne.s32.totalorder %s5671_s21, %s4838_s20 }
 0x189   : > { %p4845_p0 = scmp.lt.u32.totalorder %s4843_s30, %s4838_s20  ;;  %p4847_p8 = scmp.lt.u32.totalorder %s4838_s20, %s5671_s21 }
 0x18a   : > { %p4841_p10 = pnand %p4839_p2, %p6392_p3 }
 0x18b   : > { %p4846_p6 = por %p4845_p0, %p4844_p9 }
 0x18c   : > { %p4842_p7 = pneg %p4841_p10 }
 0x18d   : > { %p4848_p1 = por %p4847_p8, %p4846_p6 }
 0x18f   : > { %p4849_p4 = pnand %p4848_p1, %p4842_p7 }
 0x191   : > { %4852 = shalt.err (!%p4849_p4)
}
 0x192   : > { %s4853_s1 = scalar_lea.vmem %s677_s12, 48  ;;  %s5123_s13 = smov [#allocation17]  }
 0x193   : > { %p4854_p13 = scmp.ne.s32.totalorder %s677_s12, %s4853_s1  ;;  %s4858_s25 = sshll.u32 %s5123_s13, 4  ;;  %s4859_s25 = int_to_ptr.vmem [resolvable:$false] %s4858_s25 }
 0x194   : > { %s4860_s19 = scalar_lea.vmem %s4859_s25, 96  ;;  %p4861_p2 = scmp.lt.s32.totalorder %s677_s12, %s4859_s25 }
 0x195   : > { %p4856_p11 = pnand %p4854_p13, %p6392_p3  ;;  %p4862_p10 = scmp.lt.s32.totalorder %s4860_s19, %s4853_s1 }
 0x197   : > { %p4857_p5 = pneg %p4856_p11  ;;  %p4863_p12 = por %p4862_p10, %p4861_p2 }
 0x199   : > { %p4864_p0 = pnand %p4863_p12, %p4857_p5 }
 0x19b   : > { %4867 = shalt.err (!%p4864_p0)
}
 0x19c   : > { %p6397_p9 = scmp.ne.s32.totalorder %s6367_s23, 0  ;;  %s6398_s14 = scalar_lea.sflag [#allocation16], %s5341_s16 }
 0x19d   : > { %s707_s10 = scalar_lea.vmem [#allocation20], %s5288_s22  ;;  %s6399_s30 = sld [smem:[#allocation58_spill]] }
 0x19e   : > { %4175 = dma.hbm_to_vmem [thread:$0]  (!%p6397_p9), %s5671_s21, 48, %s677_s12, %s6398_s14  }
 0x19f   : > { %s714_s20 = sshll.u32 %s707_s10, 4  ;;  %s4868_s9 = scalar_lea.hbm %s5679_s3, 16  ;;  %s715_s20 = int_to_ptr.vmem [resolvable:$true] %s714_s20 }
 0x1a0   : > { %p4869_p12 = scmp.ne.s32.totalorder %s5679_s3, %s4868_s9  ;;  %s4873_s25 = scalar_lea.hbm %s6396_s11, 32 }
 0x1a1   : > { %p4874_p8 = scmp.lt.u32.totalorder %s5679_s3, %s6396_s11  ;;  %p4875_p1 = scmp.lt.u32.totalorder %s4873_s25, %s4868_s9 }
 0x1a2   : > { %p4871_p7 = pnand %p4869_p12, %p6392_p3  ;;  %p4877_p13 = scmp.lt.u32.totalorder %s4868_s9, %s5679_s3 }
 0x1a3   : > { %s5705_s4 = scalar_lea.hbm %s6399_s30, %s5344_s27  ;;  %p4876_p4 = por %p4875_p1, %p4874_p8 }
 0x1a4   : > { %p4872_p6 = pneg %p4871_p7 }
 0x1a5   : > { %p4878_p11 = por %p4877_p13, %p4876_p4 }
 0x1a7   : > { %p4879_p5 = pnand %p4878_p11, %p4872_p6 }
 0x1a9   : > { %4882 = shalt.err (!%p4879_p5)
}
 0x1aa   : > { %s4883_s21 = scalar_lea.vmem %s715_s20, 16  ;;  %s5124_s12 = smov [#allocation20]  }
 0x1ab   : > { %p4884_p2 = scmp.ne.s32.totalorder %s715_s20, %s4883_s21  ;;  %s4888_s14 = sshll.u32 %s5124_s12, 4  ;;  %s4889_s14 = int_to_ptr.vmem [resolvable:$false] %s4888_s14 }
 0x1ac   : > { %s4890_s10 = scalar_lea.vmem %s4889_s14, 32  ;;  %p4891_p12 = scmp.lt.s32.totalorder %s715_s20, %s4889_s14 }
 0x1ad   : > { %p4886_p10 = pnand %p4884_p2, %p6392_p3  ;;  %p4892_p7 = scmp.lt.s32.totalorder %s4890_s10, %s4883_s21 }
 0x1af   : > { %p4887_p0 = pneg %p4886_p10  ;;  %p4893_p9 = por %p4892_p7, %p4891_p12 }
 0x1b1   : > { %p4894_p1 = pnand %p4893_p9, %p4887_p0 }
 0x1b3   : > { %4897 = shalt.err (!%p4894_p1)
}
 0x1b4   : > { %p6400_p8 = scmp.ne.s32.totalorder %s6367_s23, 0  ;;  %s6401_s0 = scalar_lea.sflag [#allocation19], %s5341_s16 }
 0x1b5   : > { %s741_s7 = scalar_lea.vmem [#allocation23], %s5288_s22  ;;  %s3673_s9 = sshll.u32 %s5288_s22, 2 }
 0x1b6   : > { %4181 = dma.hbm_to_vmem [thread:$0]  (!%p6400_p8), %s5679_s3, 16, %s715_s20, %s6401_s0  }
 0x1b7   : > { %s748_s24 = sshll.u32 %s741_s7, 4  ;;  %s4898_s1 = scalar_lea.hbm %s5705_s4, 16  ;;  %s749_s24 = int_to_ptr.vmem [resolvable:$true] %s748_s24 }
 0x1b8   : > { %p4899_p9 = scmp.ne.s32.totalorder %s5705_s4, %s4898_s1  ;;  %s4903_s19 = scalar_lea.hbm %s6399_s30, 32 }
 0x1b9   : > { %p4904_p13 = scmp.lt.u32.totalorder %s5705_s4, %s6399_s30  ;;  %p4905_p11 = scmp.lt.u32.totalorder %s4903_s19, %s4898_s1 }
 0x1ba   : > { %p4901_p6 = pnand %p4899_p9, %p6392_p3  ;;  %p4907_p2 = scmp.lt.u32.totalorder %s4898_s1, %s5705_s4 }
 0x1bb   : > { %p4906_p5 = por %p4905_p11, %p4904_p13 }
 0x1bc   : > { %p4902_p4 = pneg %p4901_p6 }
 0x1bd   : > { %p4908_p10 = por %p4907_p2, %p4906_p5 }
 0x1bf   : > { %p4909_p0 = pnand %p4908_p10, %p4902_p4 }
 0x1c1   : > { %4912 = shalt.err (!%p4909_p0)
}
 0x1c2   : > { %s4913_s3 = scalar_lea.vmem %s749_s24, 16  ;;  %s5125_s20 = smov [#allocation23]  }
 0x1c3   : > { %p4914_p12 = scmp.ne.s32.totalorder %s749_s24, %s4913_s3  ;;  %s4918_s14 = sshll.u32 %s5125_s20, 4  ;;  %s4919_s14 = int_to_ptr.vmem [resolvable:$false] %s4918_s14 }
 0x1c4   : > { %s4920_s10 = scalar_lea.vmem %s4919_s14, 32  ;;  %p4921_p9 = scmp.lt.s32.totalorder %s749_s24, %s4919_s14 }
 0x1c5   : > { %p4916_p7 = pnand %p4914_p12, %p6392_p3  ;;  %p4922_p6 = scmp.lt.s32.totalorder %s4920_s10, %s4913_s3 }
 0x1c7   : > { %p4917_p1 = pneg %p4916_p7  ;;  %p4923_p8 = por %p4922_p6, %p4921_p9 }
 0x1c9   : > { %p4924_p11 = pnand %p4923_p8, %p4917_p1 }
 0x1cb   : > { %4927 = shalt.err (!%p4924_p11)
}
 0x1cc   : > { %p6402_p13 = scmp.ne.s32.totalorder %s6367_s23, 0  ;;  %s6403_s0 = scalar_lea.sflag [#allocation22], %s5341_s16 }
 0x1cd   : > { %s3832_s7 = sshll.u32 %s5096_s28, 6  ;;  %s780_s1 = scalar_lea.vmem [#allocation26], %s3673_s9 }
 0x1ce   : > { %4187 = dma.hbm_to_vmem [thread:$0]  (!%p6402_p13), %s5705_s4, 16, %s749_s24, %s6403_s0  }
 0x1cf   : > { %s788_s13 = sshll.u32 %s780_s1, 4  ;;  %s6404_s21 = sld [smem:[#allocation60_spill]]  ;;  %s789_s13 = int_to_ptr.vmem [resolvable:$true] %s788_s13 }
 0x1d5   : > { %s786_s12 = scalar_lea.hbm %s6404_s21, %s3832_s7  ;;  %s4933_s10 = scalar_lea.hbm %s6404_s21, 128 }
 0x1d6   : > { %s4928_s3 = scalar_lea.hbm %s786_s12, 64  ;;  %p4934_p2 = scmp.lt.u32.totalorder %s786_s12, %s6404_s21 }
 0x1d7   : > { %p4929_p8 = scmp.ne.s32.totalorder %s786_s12, %s4928_s3  ;;  %p4935_p10 = scmp.lt.u32.totalorder %s4933_s10, %s4928_s3 }
 0x1d8   : > { %p4937_p12 = scmp.lt.u32.totalorder %s4928_s3, %s786_s12 }
 0x1d9   : > { %p4931_p4 = pnand %p4929_p8, %p6392_p3  ;;  %p4936_p0 = por %p4935_p10, %p4934_p2 }
 0x1db   : > { %p4932_p5 = pneg %p4931_p4  ;;  %p4938_p7 = por %p4937_p12, %p4936_p0 }
 0x1dd   : > { %p4939_p1 = pnand %p4938_p7, %p4932_p5 }
 0x1df   : > { %4942 = shalt.err (!%p4939_p1)
}
 0x1e0   : > { %s4943_s24 = scalar_lea.vmem %s789_s13, 64  ;;  %s5126_s9 = smov [#allocation26]  }
 0x1e1   : > { %p4944_p9 = scmp.ne.s32.totalorder %s789_s13, %s4943_s24  ;;  %s4948_s0 = sshll.u32 %s5126_s9, 4  ;;  %s4949_s0 = int_to_ptr.vmem [resolvable:$false] %s4948_s0 }
 0x1e2   : > { %s4950_s7 = scalar_lea.vmem %s4949_s0, 128  ;;  %p4951_p8 = scmp.lt.s32.totalorder %s789_s13, %s4949_s0 }
 0x1e3   : > { %p4946_p6 = pnand %p4944_p9, %p6392_p3  ;;  %p4952_p4 = scmp.lt.s32.totalorder %s4950_s7, %s4943_s24 }
 0x1e5   : > { %p4947_p11 = pneg %p4946_p6  ;;  %p4953_p13 = por %p4952_p4, %p4951_p8 }
 0x1e7   : > { %p4954_p2 = pnand %p4953_p13, %p4947_p11 }
 0x1e9   : > { %4957 = shalt.err (!%p4954_p2)
}
 0x1ea   : > { %p6405_p10 = scmp.ne.s32.totalorder %s6367_s23, 0  ;;  %s6406_s2 = scalar_lea.sflag [#allocation25], %s5341_s16 }
 0x1eb   : > { %s6407_s19 = sld [smem:[#allocation61_spill]]  ;;  %s819_s20 = scalar_lea.vmem [#allocation29], %s5288_s22 }
 0x1ec   : > { %4193 = dma.hbm_to_vmem [thread:$0]  (!%p6405_p10), %s786_s12, 64, %s789_s13, %s6406_s2  }
 0x1ed   : > { %s826_s14 = sshll.u32 %s819_s20, 4  ;;  %s827_s14 = int_to_ptr.vmem [resolvable:$true] %s826_s14 }
 0x1f1   : > { %s5771_s3 = scalar_lea.hbm %s6407_s19, %s5344_s27  ;;  %s4963_s13 = scalar_lea.hbm %s6407_s19, 32 }
 0x1f2   : > { %s4958_s10 = scalar_lea.hbm %s5771_s3, 16  ;;  %p4964_p12 = scmp.lt.u32.totalorder %s5771_s3, %s6407_s19 }
 0x1f3   : > { %p4959_p13 = scmp.ne.s32.totalorder %s5771_s3, %s4958_s10  ;;  %p4965_p7 = scmp.lt.u32.totalorder %s4963_s13, %s4958_s10 }
 0x1f4   : > { %p4967_p9 = scmp.lt.u32.totalorder %s4958_s10, %s5771_s3 }
 0x1f5   : > { %p4961_p5 = pnand %p4959_p13, %p6392_p3  ;;  %p4966_p1 = por %p4965_p7, %p4964_p12 }
 0x1f7   : > { %p4962_p0 = pneg %p4961_p5  ;;  %p4968_p6 = por %p4967_p9, %p4966_p1 }
 0x1f9   : > { %p4969_p11 = pnand %p4968_p6, %p4962_p0 }
 0x1fb   : > { %4972 = shalt.err (!%p4969_p11)
}
 0x1fc   : > { %s4973_s22 = scalar_lea.vmem %s827_s14, 16  ;;  %s5127_s27 = smov [#allocation29]  }
 0x1fd   : > { %p4974_p8 = scmp.ne.s32.totalorder %s827_s14, %s4973_s22  ;;  %s4978_s0 = sshll.u32 %s5127_s27, 4  ;;  %s4979_s0 = int_to_ptr.vmem [resolvable:$false] %s4978_s0 }
 0x1fe   : > { %s4980_s7 = scalar_lea.vmem %s4979_s0, 32  ;;  %p4981_p13 = scmp.lt.s32.totalorder %s827_s14, %s4979_s0 }
 0x1ff   : > { %p4976_p4 = pnand %p4974_p8, %p6392_p3  ;;  %p4982_p5 = scmp.lt.s32.totalorder %s4980_s7, %s4973_s22 }
 0x201   : > { %p4977_p2 = pneg %p4976_p4  ;;  %p4983_p10 = por %p4982_p5, %p4981_p13 }
 0x203   : > { %p4984_p7 = pnand %p4983_p10, %p4977_p2 }
 0x205   : > { %4987 = shalt.err (!%p4984_p7)
}
 0x206   : > { %p6408_p12 = scmp.ne.s32.totalorder %s6367_s23, 0  ;;  %s6409_s2 = scalar_lea.sflag [#allocation28], %s5341_s16 }
 0x207   : > { %s6410_s1 = sld [smem:[#allocation45_spill]] }
 0x208   : > { %4199 = dma.hbm_to_vmem [thread:$0]  (!%p6408_p12), %s5771_s3, 16, %s827_s14, %s6409_s2  }
 0x20d   : > { %p6411_p0 = scmp.ne.s32.totalorder %s6410_s1, 0 }
 0x20e   : > { %s6412_s18 = sld [smem:[#allocation43_spill]] (!%p6411_p0) }
 0x20f   : > { %835 = sbr.rel (%p6411_p0) target bundleno = 4924 (0x133c), region = 88 }
 0x214   : > { %p6413_p3 = scmp.eq.s32.totalorder (!%p6411_p0), %s6412_s18, 0 }
 0x216   : > { %5039 = dma.done.wait (%p6413_p3), [#allocation4], 128   ;;  %p6414_p1 = pmov %p6413_p3 }
 0x218   : > { %5041 = vsyncadd (%p6414_p1), [#allocation4], 4294967168  ;;  %p6415_p9 = pmov %p6414_p1 }
 0x219   : > { %p6416_p10 = pmov %p6414_p1 }
 0x21a   : > { %5043 = dma.done.wait (%p6415_p9), [#allocation7], 288  }
 0x21b   : > { %5045 = vsyncadd (%p6416_p10), [#allocation7], 4294967008  ;;  %p6417_p6 = pmov %p6414_p1 }
 0x21c   : > { %p6418_p11 = pmov %p6414_p1 }
 0x21d   : > { %5047 = dma.done.wait (%p6417_p6), [#allocation10], 1040  }
 0x21e   : > { %5049 = vsyncadd (%p6418_p11), [#allocation10], 4294966256  ;;  %s6419_s23 = sld [smem:[#allocation41_spill]]  ;;  %s6420_s16 = sld [smem:[#allocation44_spill]] }
 0x21f   : > { %s5808_s25 = sand.u32 1, %s6412_s18  }
 0x220   : > { %s858_s20 = scalar_lea.sflag [#allocation13], %s5808_s25 }
 0x224   : > { %s5811_s3 = sand.u32 1, %s6419_s23   ;;  %p6421_p8 = scmp.ne.s32.totalorder %s6420_s16, 0 }
 0x225   : > { %s860_s14 = scalar_lea.vmem [#allocation12], %s5811_s3 }
 0x226   : > { %5051 = dma.done.wait (%p6421_p8), %s858_s20, 32  }
 0x227   : > { %5053 = vsyncadd (%p6421_p8), %s858_s20, 4294967264  ;;  %s4097_s10 = smul.u32 192, %s5811_s3  ;;  %s868_s4 = scalar_lea.vmem [#allocation14], %s5811_s3 }
 0x228   : > { %s874_s24 = scalar_lea.sflag [#allocation16], %s5808_s25 }
 0x229   : > { %s5822_s13 = scalar_lea.vmem [#allocation15], %s4097_s10 }
 0x22a   : > { %5055 = dma.done.wait (%p6421_p8), %s874_s24, 3120  }
 0x22b   : > { %5057 = vsyncadd (%p6421_p8), %s874_s24, 4294964176  ;;  %s4098_s12 = smul.u32 3, %s5811_s3  ;;  %s3686_s9 = sshll.u32 %s5811_s3, 6 }
 0x22c   : > { %s892_s27 = scalar_lea.sflag [#allocation19], %s5808_s25  ;;  %s5833_s0 = scalar_lea.vmem [#allocation18], %s3686_s9 }
 0x22d   : > { %s5830_s22 = scalar_lea.vmem [#allocation17], %s4098_s12 }
 0x22e   : > { %5059 = dma.done.wait (%p6421_p8), %s892_s27, 1040  }
 0x22f   : > { %5061 = vsyncadd (%p6421_p8), %s892_s27, 4294966256  ;;  %s903_s7 = scalar_lea.vmem [#allocation20], %s5811_s3  ;;  %s909_s2 = scalar_lea.sflag [#allocation22], %s5808_s25 }
 0x230   : > { %s911_s1 = scalar_lea.vmem [#allocation21], %s5811_s3 }
 0x231   : > { %5063 = dma.done.wait (%p6421_p8), %s909_s2, 32  }
 0x232   : > { %5065 = vsyncadd (%p6421_p8), %s909_s2, 4294967264  ;;  %s3687_s18 = sshll.u32 %s5811_s3, 8  ;;  %s925_s20 = scalar_lea.sflag [#allocation25], %s5808_s25 }
 0x233   : > { %s5849_s10 = scalar_lea.vmem [#allocation24], %s3687_s18 }
 0x234   : > { %5067 = dma.done.wait (%p6421_p8), %s925_s20, 4160  }
 0x235   : > { %5069 = vsyncadd (%p6421_p8), %s925_s20, 4294963136  ;;  %s3688_s24 = sshll.u32 %s5811_s3, 2  ;;  %s943_s9 = scalar_lea.sflag [#allocation28], %s5808_s25 }
 0x236   : > { %s5856_s12 = scalar_lea.vmem [#allocation26], %s3688_s24  ;;  %s5859_s27 = scalar_lea.vmem [#allocation27], %s3687_s18 }
 0x237   : > { %5071 = dma.done.wait (%p6421_p8), %s943_s9, 4112  }
 0x238   : > { %5073 = vsyncadd (%p6421_p8), %s943_s9, 4294963184  ;;  %s954_s2 = scalar_lea.vmem [#allocation29], %s5811_s3  ;;  %s6422_s23 = sld [smem:[#allocation42_spill]] }
 0x23e   : > { %p3690_p4 = scmp.ne.s32.totalorder %s6422_s23, 0 }
 0x23f   : > { %v4286_v0 = vld [vmem:[#allocation9] sm:$0xff] (!%p3690_p4)   ;;  %v5128_v1 = vmov (!%p3690_p4), 0.0   ;;  %v4287_v2 = vld [vmem:[#allocation9 + $0x8] sm:$0xff] (!%p3690_p4)   ;;  %vm5129_vm0 = vmmov (!%p3690_p4), 0   ;;  %v4288_v3 = vld [vmem:[#allocation9 + $0x10] sm:$0xff] (!%p3690_p4)  }
 0x240   : > { %1058 = sbr.rel (%p3690_p4) target bundleno = 827 (0x33b), region = 160  ;;  %3937 = vmatprep.subr.bf16.mxu0 (!%p3690_p4), %v5128_v1  ;;  %3953 = vmatprep.mubr.msk.bf16.mxu0 (!%p3690_p4), %vm5129_vm0, %v5128_v1  ;;  %v4289_v4 = vld [vmem:[#allocation9 + $0x18] sm:$0xff] (!%p3690_p4)   ;;  %v4290_v5 = vld [vmem:[#allocation9 + $0x20] sm:$0xff] (!%p3690_p4)   ;;  %v4291_v6 = vld [vmem:[#allocation9 + $0x28] sm:$0xff] (!%p3690_p4)  }
 0x241   : > { %3938 = vmatpush3.bf16.msra.mxu0 (!%p3690_p4), %v4286_v0  ;;  %v4292_v7 = vld [vmem:[#allocation9 + $0x30] sm:$0xff] (!%p3690_p4)   ;;  %v4293_v8 = vld [vmem:[#allocation9 + $0x38] sm:$0xff] (!%p3690_p4)   ;;  %v4294_v9 = vld [vmem:[#allocation3] sm:$0xff] (!%p3690_p4)  }
 0x242   : > { %3939 = vmatprep.subr.bf16.mxu0 (!%p3690_p4), %v5128_v1  ;;  %v3691_v10 = vld [vmem:[#allocation11] ss:$0 sm:$0xff] (!%p3690_p4)  ;;  %v1179_v12 = vld [vmem:[#allocation6] sm:$0xff] (!%p3690_p4)  ;;  %v1180_v16 = vld [vmem:[#allocation6 + $0x8] sm:$0xff] (!%p3690_p4) }
 0x245   : > { %3940 = vmatpush3.bf16.msra.mxu0 (!%p3690_p4), %v4287_v2 }
 0x246   : > { %3941 = vmatprep.subr.bf16.mxu0 (!%p3690_p4), %v5128_v1 }
 0x249   : > { %3942 = vmatpush3.bf16.msra.mxu0 %v4288_v3 }
 0x24a   : > { %3943 = vmatprep.subr.bf16.mxu0 %v5128_v1 }
 0x24d   : > { %3944 = vmatpush3.bf16.msra.mxu0 %v4289_v4 }
 0x24e   : > { %3945 = vmatprep.subr.bf16.mxu0 %v5128_v1 }
 0x251   : > { %3946 = vmatpush3.bf16.msra.mxu0 %v4290_v5 }
 0x252   : > { %3947 = vmatprep.subr.bf16.mxu0 %v5128_v1 }
 0x255   : > { %3948 = vmatpush3.bf16.msra.mxu0 %v4291_v6 }
 0x256   : > { %3949 = vmatprep.subr.bf16.mxu0 %v5128_v1 }
 0x259   : > { %3950 = vmatpush3.bf16.msra.mxu0 %v4292_v7 }
 0x25a   : > { %3951 = vmatprep.subr.bf16.mxu0 %v5128_v1 }
 0x25d   : > { %3952 = vmatpush3.bf16.msra.mxu0 %v4293_v8 }
 0x260   : > { %3954 = vmatmul.mubr.bf16.vlgmr.msra.gmra.mrb[0].mxu0 %v4294_v9 }
 0x333   : > { %v1172_v11 = vpop.f32.mrb[0].mxu0 }
 0x334   : > { %v1173_v13 = vadd.f32 %v3691_v10, %v1172_v11  ;;  %v3955_v14 = vpop.f32.mrb[1].mxu0 }
 0x335   : > { %v1175_v15 = vpop.f32.mrb[2].mxu0 }
 0x336   : > { %v1181_v17 = vadd.f32 %v1179_v12, %v1173_v13  ;;  %v1176_v18 = vadd.f32 %v3691_v10, %v1175_v15  ;;  %v3956_v19 = vpop.f32.mrb[3].mxu0 }
 0x338   : > { %1183 = vst [vmem:[#allocation2] sm:$0xff] %v1181_v17  ;;  %v1182_v20 = vadd.f32 %v1180_v16, %v1176_v18 }
 0x33a   : > { %1184 = vst [vmem:[#allocation2 + $0x8] sm:$0xff] %v1182_v20 }
 0x33b PF: > { %v4310_v23 = vld [vmem:[%s5822_s13 + $0x4] ss:$12 sps:$4 sm:$0xff]   ;;  %v4312_v24 = vld [vmem:[%s5822_s13] ss:$12 sps:$4 sm:$0xff]   ;;  %v5130_v25 = vmov 0.0   ;;  %v5131_v51 = vmov 0   ;;  %v1263_v10 = vlaneseq }
 0x33c   : > { %3957 = vmatprep.subr.bf16.mxu1 %v5130_v25  ;;  %v4313_v26 = vld [vmem:[%s5822_s13 + $0x8] ss:$12 sps:$4 sm:$0xff]   ;;  %1406 = vmatprep.subr.bf16.mxu0 %v4310_v23  ;;  %v4316_v36 = vld [vmem:[%s5822_s13 + $0x18] ss:$12 sps:$4 sm:$0xff]   ;;  %v4317_v37 = vld [vmem:[%s5822_s13 + $0x20] ss:$12 sps:$4 sm:$0xff]  }
 0x33d   : > { %v4314_v27 = vld [vmem:[%s5822_s13 + $0x1c] ss:$12 sps:$4 sm:$0xff]   ;;  %1407 = vmatpush1.bf16.msra.mxu0 %v4312_v24  ;;  %3958 = vmatpush3.bf16.msra.mxu1 %v4313_v26  ;;  %v4318_v38 = vld [vmem:[%s5822_s13 + $0x34] ss:$12 sps:$4 sm:$0xff]   ;;  %v4321_v40 = vld [vmem:[%s5822_s13 + $0x38] ss:$12 sps:$4 sm:$0xff]  }
 0x33e   : > { %1408 = vmatprep.subr.bf16.mxu0 %v4314_v27  ;;  %3959 = vmatprep.subr.bf16.mxu1 %v5130_v25  ;;  %v4320_v39 = vld [vmem:[%s5822_s13 + $0x30] ss:$12 sps:$4 sm:$0xff]   ;;  %v4322_v41 = vld [vmem:[%s5822_s13 + $0x4c] ss:$12 sps:$4 sm:$0xff]   ;;  %v4324_v42 = vld [vmem:[%s5822_s13 + $0x48] ss:$12 sps:$4 sm:$0xff]  }
 0x33f   : > { %v1185_v21 = vld [vmem:[#allocation2] sm:$0xff]  ;;  %v4328_v45 = vld [vmem:[%s5822_s13 + $0x60] ss:$12 sps:$4 sm:$0xff]   ;;  %v4330_v47 = vld [vmem:[%s5822_s13 + $0x7c] ss:$12 sps:$4 sm:$0xff]   ;;  %1438 = vmatprep.mubr.bf16.mxu0 %v5131_v51  ;;  %vm5132_vm1 = vmmov 0  }
 0x340   : > { %1189 = vadd.xlane.f32.xlu0 %v1185_v21  ;;  %v4325_v43 = vld [vmem:[%s5822_s13 + $0x50] ss:$12 sps:$4 sm:$0xff]   ;;  %v4329_v46 = vld [vmem:[%s5822_s13 + $0x68] ss:$12 sps:$4 sm:$0xff]   ;;  %v4332_v48 = vld [vmem:[%s5822_s13 + $0x78] ss:$12 sps:$4 sm:$0xff]   ;;  %3973 = vmatprep.mubr.msk.bf16.mxu1 %vm5132_vm1, %v5130_v25 }
 0x341   : > { %v1186_v22 = vld [vmem:[#allocation2 + $0x8] sm:$0xff]  ;;  %1409 = vmatpush1.bf16.msra.mxu0 %v4316_v36  ;;  %3960 = vmatpush3.bf16.msra.mxu1 %v4317_v37  ;;  %v4326_v44 = vld [vmem:[%s5822_s13 + $0x64] ss:$12 sps:$4 sm:$0xff]   ;;  %v4333_v49 = vld [vmem:[%s5822_s13 + $0x80] ss:$12 sps:$4 sm:$0xff]   ;;  %v5922_v11 = vshrl.u32 %v1263_v10, 7 }
 0x342   : > { %3961 = vmatprep.subr.bf16.mxu1 %v5130_v25  ;;  %1410 = vmatprep.subr.bf16.mxu0 %v4318_v38  ;;  %v4334_v50 = vld [vmem:[%s5822_s13 + $0x94] ss:$12 sps:$4 sm:$0xff]   ;;  %v4336_v52 = vld [vmem:[%s5822_s13 + $0x90] ss:$12 sps:$4 sm:$0xff]   ;;  %v4337_v53 = vld [vmem:[%s5822_s13 + $0x98] ss:$12 sps:$4 sm:$0xff]  }
 0x343   : > { %v4338_v54 = vld [vmem:[%s5822_s13 + $0xac] ss:$12 sps:$4 sm:$0xff]   ;;  %v4340_v55 = vld [vmem:[%s5822_s13 + $0xa8] ss:$12 sps:$4 sm:$0xff]   ;;  %v4341_v56 = vld [vmem:[%s5822_s13 + $0xb0] ss:$12 sps:$4 sm:$0xff]  }
 0x344   : > { %1191 = vadd.xlane.f32.xlu0 %v1186_v22  ;;  %v3701_v1 = vld [vmem:[%s860_s14] ss:$0 sm:$0xff]  ;;  %v1269_v12 = vsub.s32 1, %v5922_v11  ;;  %v1261_v13 = vld [vmem:[%s5830_s22] sm:$0x7]  ;;  %v1273_v14 = vsub.s32 2, %v5922_v11 }
 0x345   : > { %1411 = vmatpush1.bf16.msra.mxu0 %v4320_v39  ;;  %3962 = vmatpush3.bf16.msra.mxu1 %v4321_v40  ;;  %v3702_v5 = vld [vmem:[%s868_s4] ss:$0 sm:$0xff]  ;;  %v1265_v16 = vsub.s32 0, %v5922_v11  ;;  %vm1498_vm2 = vcmask 261120   ;;  %vm1635_vm3 = vcmask 1043456   ;;  %vm1607_vm4 = vcmask 64512  }
 0x346   : > { %3963 = vmatprep.subr.bf16.mxu1 %v5130_v25  ;;  %1412 = vmatprep.subr.bf16.mxu0 %v4322_v41  ;;  %v1270_v15 = vrot.slane %v1261_v13, %v1269_v12  ;;  %v1274_v19 = vrot.slane %v1261_v13, %v1273_v14  ;;  %s5133_s16 = smov 96   ;;  %s5134_s25 = smov 64   ;;  %vm2429_vm5 = vcmask 523264   ;;  %vm2432_vm6 = vcmask 785408  }
 0x347   : > { %s5135_s14 = smov 32   ;;  %s6423_s4 = scalar_lea.vmem [#allocation23], %s5811_s3 }
 0x348   : > { %s6424_s3 = sld [smem:[#allocation42_spill]] }
 0x349   : > { %1413 = vmatpush1.bf16.msra.mxu0 %v4324_v42  ;;  %3964 = vmatpush3.bf16.msra.mxu1 %v4325_v43  ;;  %v5963_v43 = vld [vmem:[#allocation8] ss:$0 sm:$0xff] }
 0x34a   : > { %3965 = vmatprep.subr.bf16.mxu1 %v5130_v25  ;;  %1414 = vmatprep.subr.bf16.mxu0 %v4326_v44 }
 0x34d   : > { %1415 = vmatpush1.bf16.msra.mxu0 %v4328_v45  ;;  %3966 = vmatpush3.bf16.msra.mxu1 %v4329_v46 }
 0x34e   : > { %1416 = vmatprep.subr.bf16.mxu0 %v4330_v47  ;;  %3967 = vmatprep.subr.bf16.mxu1 %v5130_v25  ;;  %p3825_p2 = scmp.ne.s32.totalorder %s6424_s3, 1 }
 0x351   : > { %1417 = vmatpush1.bf16.msra.mxu0 %v4332_v48  ;;  %3968 = vmatpush3.bf16.msra.mxu1 %v4333_v49 }
 0x352   : > { %1418 = vmatprep.subr.bf16.mxu0 %v4334_v50  ;;  %3969 = vmatprep.subr.bf16.mxu1 %v5130_v25 }
 0x355   : > { %1419 = vmatpush1.bf16.msra.mxu0 %v4336_v52  ;;  %3970 = vmatpush3.bf16.msra.mxu1 %v4337_v53  ;;  %v5967_v52 = vld [vmem:[#allocation8 + $0x1] ss:$0 sm:$0xff] }
 0x356   : > { %1420 = vmatprep.subr.bf16.mxu0 %v4338_v54  ;;  %3971 = vmatprep.subr.bf16.mxu1 %v5130_v25 }
 0x359   : > { %1421 = vmatpush1.bf16.msra.mxu0 %v4340_v55  ;;  %3972 = vmatpush3.bf16.msra.mxu1 %v4341_v56 }
 0x35a   : > { %3977 = vmatprep.subr.bf16.mxu1 %v5130_v25  ;;  %4001 = vmatprep.subr.bf16.mxu0 %v5130_v25 }
 0x3cd   : > { %v1190_v28 = vpop.xlane.xlu0 %1189 }
 0x3ce   : > { %v1194_v29 = vmul.f32 0.0078125, %v1190_v28 }
 0x3d0   : > { %v5873_v30 = vsub.f32 %v1185_v21, %v1194_v29  ;;  %v1266_v29 = vrot.slane %v1261_v13, %v1265_v16 }
 0x3d1   : > { %v1192_v31 = vpop.xlane.xlu0 %1191 }
 0x3d2   : > { %v1195_v32 = vmul.f32 0.0078125, %v1192_v31  ;;  %v1198_v33 = vmul.f32 %v5873_v30, %v5873_v30 }
 0x3d4   : > { %v5877_v34 = vsub.f32 %v1186_v22, %v1195_v32  ;;  %1200 = vadd.xlane.f32.xlu1 %v1198_v33 }
 0x3d6   : > { %v1199_v35 = vmul.f32 %v5877_v34, %v5877_v34 }
 0x3d8   : > { %1202 = vadd.xlane.f32.xlu1 %v1199_v35 }
 0x461   : > { %v1201_v57 = vpop.xlane.xlu1 %1200 }
 0x462   : > { %v1204_v58 = vmul.f32 0.0078125, %v1201_v57 }
 0x464   : > { %v1206_v59 = vadd.f32 1e-05, %v1204_v58 }
 0x465   : > { %v1203_v60 = vpop.xlane.xlu1 %1202 }
 0x466   : > { %4430 = vrsqrt.f32 %v1206_v59  ;;  %v1205_v61 = vmul.f32 0.0078125, %v1203_v60 }
 0x468   : > { %v1207_v62 = vadd.f32 1e-05, %v1205_v61 }
 0x46a   : > { %4432 = vrsqrt.f32 %v1207_v62 }
 0x470   : > { %v4431_v63 = vpop.eup %4430 }
 0x471   : > { %v1210_v0 = vmul.f32 %v4431_v63, %v5873_v30 }
 0x473   : > { %v1218_v4 = vmul.f32 %v3701_v1, %v1210_v0 }
 0x474   : > { %v4433_v2 = vpop.eup %4432 }
 0x475   : > { %v1211_v3 = vmul.f32 %v4433_v2, %v5877_v34  ;;  %v1226_v7 = vadd.f32 %v3702_v5, %v1218_v4 }
 0x477   : > { %v1219_v6 = vmul.f32 %v3701_v1, %v1211_v3 }
 0x479   : > { %v1227_v8 = vadd.f32 %v3702_v5, %v1219_v6 }
 0x47b   : > { %v1228_v9 = vpack.c.bf16 %v1227_v8, %v1226_v7 }
 0x47d   : > { %1439 = vmatmul.mubr.bf16.vlgmr.msra.gmra.mrb[0].mxu0 %v1228_v9  ;;  %3974 = vmatmul.mubr.bf16.vlgmr.msra.gmra.mrb[0].mxu1 %v1228_v9 }
 0x47e   : > { %3979 = vmatprep.mubr.msk.bf16.mxu1 %vm5132_vm1, %v5130_v25  ;;  %4003 = vmatprep.mubr.msk.bf16.mxu0 %vm5132_vm1, %v5130_v25 }
 0x550   : > { %v1440_v17 = vpop.f32.mrb[0].mxu0  ;;  %v1483_v18 = vpop.f32.mrb[0].mxu1 }
 0x551   : > { %v1442_v20 = vpop.f32.mrb[1].mxu0  ;;  %v3975_v21 = vpop.f32.mrb[1].mxu1  ;;  %v1441_v33 = vadd.f32 %v1440_v17, %v1266_v29  ;;  %v1484_v36 = vadd.f32 %v1483_v18, %v1274_v19 }
 0x552   : > { %v1443_v22 = vadd.f32 %v1442_v20, %v1270_v15  ;;  %v1444_v23 = vpop.f32.mrb[2].mxu0  ;;  %v1486_v24 = vpop.f32.mrb[2].mxu1 }
 0x553   : > { %v5932_v26 = vadd.f32 %v1486_v24, %v1274_v19  ;;  %v1446_v27 = vpop.f32.mrb[3].mxu0  ;;  %v3976_v28 = vpop.f32.mrb[3].mxu1  ;;  %v5943_v35 = vpack.c.bf16 %v1441_v33, %v1441_v33  ;;  %v1445_v38 = vadd.f32 %v1444_v23, %v1266_v29  ;;  %v5952_v39 = vpack.c.bf16 %v1484_v36, %v1484_v36 }
 0x554   : > { %v5936_v30 = vpack.c.bf16 %v1443_v22, %v1443_v22  ;;  %v1447_v31 = vadd.f32 %v1446_v27, %v1270_v15 }
 0x555   : > { %v5954_v40 = vpack.c.bf16 %v1445_v38, %v1445_v38  ;;  %v1637_v41 = vsel %vm1635_vm3, %v5952_v39, 0  ;;  %v5985_v13 = vpack.c.bf16 %v5932_v26, %v5932_v26 }
 0x556   : > { %v1503_v32 = vsel %vm1498_vm2, %v5936_v30, 0  ;;  %v5941_v34 = vpack.c.bf16 %v1447_v31, %v1447_v31 }
 0x557   : > { %3978 = vmatpush3.bf16.xpose.msra.mxu1 %v1503_v32  ;;  %v1683_v19 = vsel %vm1635_vm3, %v5985_v13, 0 }
 0x558   : > { %3983 = vmatprep.subr.bf16.mxu1 %v5130_v25  ;;  %v1549_v37 = vsel %vm1498_vm2, %v5941_v34, 0 }
 0x55e   : > { %3980 = vmatmul.mubr.msk.bf16.vlgmr.msra.gmra.mrb[4].mxu1 %vm1498_vm2, %v5943_v35 }
 0x55f   : > { %3984 = vmatpush3.bf16.xpose.msra.mxu1 %v1549_v37  ;;  %3985 = vmatprep.mubr.msk.bf16.mxu1 %vm5132_vm1, %v5130_v25 }
 0x560   : > { %3989 = vmatprep.subr.bf16.mxu1 %v5130_v25 }
 0x566   : > { %3986 = vmatmul.mubr.msk.bf16.vlgmr.msra.gmra.mrb[8].mxu1 %vm1498_vm2, %v5954_v40 }
 0x567   : > { %3990 = vmatpush3.bf16.msra.mxu1 %v1637_v41  ;;  %3991 = vmatprep.mubr.msk.bf16.mxu1 %vm5132_vm1, %v5130_v25 }
 0x568   : > { %3995 = vmatprep.subr.bf16.mxu1 %v5130_v25 }
 0x631   : > { %v1539_v42 = vpop.f32.mrb[4].mxu1 }
 0x632   : > { %v1591_v44 = vmul.f32 0.17677669, %v1539_v42  ;;  %v3981_v45 = vpop.f32.mrb[5].mxu1 }
 0x633   : > { %v1542_v46 = vpop.f32.mrb[6].mxu1 }
 0x634   : > { %v3982_v47 = vpop.f32.mrb[7].mxu1  ;;  %v1605_v48 = vadd.f32 %v5963_v43, %v1591_v44 }
 0x636   : > { %v1608_v49 = vsel %vm1607_vm4, %v1605_v48, -inf }
 0x637   : > { %1609 = vmax.xlane.f32.xlu0 %v1608_v49 }
 0x639   : > { %v1585_v50 = vpop.f32.mrb[8].mxu1 }
 0x63a   : > { %v1592_v53 = vmul.f32 0.17677669, %v1585_v50  ;;  %v3987_v54 = vpop.f32.mrb[9].mxu1 }
 0x63b   : > { %v1588_v55 = vpop.f32.mrb[10].mxu1 }
 0x63c   : > { %v3988_v56 = vpop.f32.mrb[11].mxu1  ;;  %v1606_v57 = vadd.f32 %v5967_v52, %v1592_v53 }
 0x63e   : > { %v1611_v58 = vsel %vm1607_vm4, %v1606_v57, -inf }
 0x63f   : > { %1612 = vmax.xlane.f32.xlu1 %v1611_v58 }
 0x650   : > { %1781 = vrot.lane.b32.xlu1 %v5941_v34, %s5133_s16 }
 0x6c4   : > { %v1610_v59 = vpop.xlane.xlu0 %1609 }
 0x6c5   : > { %v1614_v60 = vsub.f32 %v1605_v48, %v1610_v59 }
 0x6c7   : > { %v1616_v61 = vmul.f32 1.442695, %v1614_v60 }
 0x6c9   : > { %4434 = vpow2.f32 %v1616_v61 }
 0x6cc   : > { %v1613_v62 = vpop.xlane.xlu1 %1612 }
 0x6cd   : > { %v1615_v63 = vsub.f32 %v1606_v57, %v1613_v62 }
 0x6cf   : > { %v1618_v0 = vmul.f32 1.442695, %v1615_v63 }
 0x6d0   : > { %v1782_v6 = vpop.permute.xlu1 %1781 }
 0x6d1   : > { %4436 = vpow2.f32 %v1618_v0  ;;  %v1787_v23 = vsel %vm1498_vm2, %v1782_v6, 0 }
 0x6d3   : > { %v4435_v1 = vpop.eup %4434 }
 0x6d4   : > { %v1620_v2 = vsel %vm1607_vm4, %v4435_v1, 0.0 }
 0x6d5   : > { %1621 = vadd.xlane.f32.xlu0 %v1620_v2 }
 0x6db   : > { %v4437_v3 = vpop.eup %4436 }
 0x6dc   : > { %v1623_v4 = vsel %vm1607_vm4, %v4437_v3, 0.0 }
 0x6dd   : > { %1624 = vadd.xlane.f32.xlu1 %v1623_v4 }
 0x6eb   : > { %1729 = vrot.lane.b32.xlu0 %v5936_v30, %s5133_s16 }
 0x6ee   : > { %1726 = vrot.lane.b32.xlu1 %v5943_v35, %s5133_s16 }
 0x6f2   : > { %1778 = vrot.lane.b32.xlu1 %v5954_v40, %s5133_s16 }
 0x762   : > { %v1622_v5 = vpop.xlane.xlu0 %1621 }
 0x763   : > { %4438 = vrcp.f32 %v1622_v5 }
 0x766   : > { %v1730_v7 = vpop.permute.xlu0 %1729 }
 0x767   : > { %v1735_v8 = vsel %vm1498_vm2, %v1730_v7, 0 }
 0x768   : > { %4002 = vmatpush3.bf16.xpose.msra.mxu0 %v1735_v8 }
 0x769   : > { %4013 = vmatprep.subr.bf16.mxu0 %v5130_v25 }
 0x76a   : > { %v1625_v9 = vpop.xlane.xlu1 %1624 }
 0x76b   : > { %4440 = vrcp.f32 %v1625_v9 }
 0x76d   : > { %v4439_v10 = vpop.eup %4438 }
 0x76e   : > { %v1628_v15 = vmul.f32 %v4439_v10, %v4435_v1  ;;  %v1727_v17 = vpop.permute.xlu1 %1726 }
 0x76f   : > { %4004 = vmatmul.mubr.msk.bf16.vlgmr.msra.gmra.mrb[4].mxu0 %vm1498_vm2, %v1727_v17 }
 0x770   : > { %v1630_v18 = vpack.c.bf16 %v1628_v15, %v1628_v15  ;;  %4015 = vmatprep.mubr.msk.bf16.mxu0 %vm5132_vm1, %v5130_v25 }
 0x772   : > { %3992 = vmatmul.mubr.msk.bf16.vlgmr.msra.gmra.mrb[12].mxu1 %vm1607_vm4, %v1630_v18  ;;  %v1779_v24 = vpop.permute.xlu1 %1778 }
 0x773   : > { %3996 = vmatpush3.bf16.msra.mxu1 %v1683_v19  ;;  %3997 = vmatprep.mubr.msk.bf16.mxu1 %vm5132_vm1, %v5130_v25 }
 0x774   : > { %4007 = vmatprep.subr.bf16.mxu1 %v5130_v25 }
 0x775   : > { %v4441_v20 = vpop.eup %4440 }
 0x776   : > { %v1629_v21 = vmul.f32 %v4441_v20, %v4437_v3 }
 0x778   : > { %v1631_v22 = vpack.c.bf16 %v1629_v21, %v1629_v21 }
 0x77a   : > { %3998 = vmatmul.mubr.msk.bf16.vlgmr.msra.gmra.mrb[16].mxu1 %vm1607_vm4, %v1631_v22 }
 0x77b   : > { %4009 = vmatprep.mubr.msk.bf16.mxu1 %vm5132_vm1, %v5130_v25 }
 0x77c   : > { %4008 = vmatpush3.bf16.xpose.msra.mxu1 %v1787_v23 }
 0x77d   : > { %4019 = vmatprep.subr.bf16.mxu1 %v5130_v25 }
 0x783   : > { %4010 = vmatmul.mubr.msk.bf16.vlgmr.msra.gmra.mrb[20].mxu1 %vm1498_vm2, %v1779_v24 }
 0x784   : > { %4021 = vmatprep.mubr.msk.bf16.mxu1 %vm5132_vm1, %v5130_v25 }
 0x842   : > { %v1771_v26 = vpop.f32.mrb[4].mxu0 }
 0x843   : > { %v1829_v27 = vmul.f32 0.17677669, %v1771_v26  ;;  %v4005_v28 = vpop.f32.mrb[5].mxu0 }
 0x844   : > { %v1774_v29 = vpop.f32.mrb[6].mxu0 }
 0x845   : > { %v6004_v31 = vpop.f32.mrb[12].mxu1  ;;  %v4006_v32 = vpop.f32.mrb[7].mxu0  ;;  %v1831_v33 = vadd.f32 %v5963_v43, %v1829_v27 }
 0x846   : > { %v3993_v36 = vpop.f32.mrb[13].mxu1 }
 0x847   : > { %v1676_v37 = vpop.f32.mrb[14].mxu1  ;;  %v1833_v38 = vsel %vm1607_vm4, %v1831_v33, -inf }
 0x848   : > { %1834 = vmax.xlane.f32.xlu0 %v1833_v38  ;;  %v3994_v41 = vpop.f32.mrb[15].mxu1 }
 0x84d   : > { %v6008_v42 = vpop.f32.mrb[16].mxu1 }
 0x84e   : > { %v3999_v44 = vpop.f32.mrb[17].mxu1 }
 0x84f   : > { %v1722_v45 = vpop.f32.mrb[18].mxu1 }
 0x850   : > { %v4000_v46 = vpop.f32.mrb[19].mxu1 }
 0x856   : > { %v1823_v47 = vpop.f32.mrb[20].mxu1 }
 0x857   : > { %v1830_v48 = vmul.f32 0.17677669, %v1823_v47  ;;  %v4011_v49 = vpop.f32.mrb[21].mxu1 }
 0x858   : > { %v1826_v50 = vpop.f32.mrb[22].mxu1 }
 0x859   : > { %v4012_v53 = vpop.f32.mrb[23].mxu1  ;;  %v1832_v54 = vadd.f32 %v5967_v52, %v1830_v48 }
 0x85b   : > { %v1836_v55 = vsel %vm1607_vm4, %v1832_v54, -inf }
 0x85c   : > { %1837 = vmax.xlane.f32.xlu1 %v1836_v55 }
 0x86d   : > { %1907 = vrot.lane.b32.xlu1 %v5985_v13, %s5133_s16 }
 0x871   : > { %1957 = vrot.lane.b32.xlu1 %v5936_v30, %s5134_s25 }
 0x875   : > { %2007 = vrot.lane.b32.xlu1 %v5941_v34, %s5134_s25 }
 0x879   : > { %2005 = vrot.lane.b32.xlu1 %v5954_v40, %s5134_s25 }
 0x8d5   : > { %v1835_v56 = vpop.xlane.xlu0 %1834 }
 0x8d6   : > { %v1839_v57 = vsub.f32 %v1831_v33, %v1835_v56 }
 0x8d8   : > { %v1841_v58 = vmul.f32 1.442695, %v1839_v57 }
 0x8da   : > { %4442 = vpow2.f32 %v1841_v58 }
 0x8e4   : > { %v4443_v59 = vpop.eup %4442 }
 0x8e5   : > { %v1845_v60 = vsel %vm1607_vm4, %v4443_v59, 0.0 }
 0x8e6   : > { %1846 = vadd.xlane.f32.xlu0 %v1845_v60 }
 0x8e9   : > { %v1838_v61 = vpop.xlane.xlu1 %1837 }
 0x8ea   : > { %v1840_v62 = vsub.f32 %v1832_v54, %v1838_v61 }
 0x8ec   : > { %v1843_v63 = vmul.f32 1.442695, %v1840_v62 }
 0x8ed   : > { %v1908_v0 = vpop.permute.xlu1 %1907 }
 0x8ee   : > { %4444 = vpow2.f32 %v1843_v63  ;;  %v1913_v1 = vsel %vm1635_vm3, %v1908_v0, 0 }
 0x8ef   : > { %4020 = vmatpush3.bf16.msra.mxu1 %v1913_v1 }
 0x8f0   : > { %4031 = vmatprep.subr.bf16.mxu1 %v5130_v25 }
 0x8f1   : > { %v1958_v10 = vpop.permute.xlu1 %1957 }
 0x8f2   : > { %v1963_v20 = vsel %vm1498_vm2, %v1958_v10, 0 }
 0x8f5   : > { %v2008_v19 = vpop.permute.xlu1 %2007 }
 0x8f6   : > { %v2013_v22 = vsel %vm1498_vm2, %v2008_v19, 0 }
 0x8f8   : > { %v4445_v2 = vpop.eup %4444 }
 0x8f9   : > { %v1848_v3 = vsel %vm1607_vm4, %v4445_v2, 0.0  ;;  %v2006_v24 = vpop.permute.xlu1 %2005 }
 0x8fa   : > { %1849 = vadd.xlane.f32.xlu0 %v1848_v3 }
 0x910   : > { %1858 = vrot.lane.b32.xlu0 %v5952_v39, %s5133_s16 }
 0x914   : > { %1955 = vrot.lane.b32.xlu0 %v5943_v35, %s5134_s25 }
 0x973   : > { %v1847_v4 = vpop.xlane.xlu0 %1846 }
 0x974   : > { %4446 = vrcp.f32 %v1847_v4 }
 0x97e   : > { %v4447_v5 = vpop.eup %4446 }
 0x97f   : > { %v1853_v7 = vmul.f32 %v4447_v5, %v4443_v59 }
 0x981   : > { %v1855_v15 = vpack.c.bf16 %v1853_v7, %v1853_v7 }
 0x987   : > { %v1850_v6 = vpop.xlane.xlu0 %1849 }
 0x988   : > { %4448 = vrcp.f32 %v1850_v6 }
 0x98b   : > { %v1859_v8 = vpop.permute.xlu0 %1858 }
 0x98c   : > { %v1864_v9 = vsel %vm1635_vm3, %v1859_v8, 0 }
 0x98d   : > { %4014 = vmatpush3.bf16.msra.mxu0 %v1864_v9 }
 0x98e   : > { %4025 = vmatprep.subr.bf16.mxu0 %v5130_v25 }
 0x98f   : > { %v1956_v23 = vpop.permute.xlu0 %1955 }
 0x990   : > { %4016 = vmatmul.mubr.msk.bf16.vlgmr.msra.gmra.mrb[8].mxu0 %vm1607_vm4, %v1855_v15 }
 0x991   : > { %4027 = vmatprep.mubr.msk.bf16.mxu0 %vm5132_vm1, %v5130_v25 }
 0x992   : > { %v4449_v17 = vpop.eup %4448 }
 0x993   : > { %v1854_v18 = vmul.f32 %v4449_v17, %v4445_v2 }
 0x995   : > { %v1856_v21 = vpack.c.bf16 %v1854_v18, %v1854_v18 }
 0x996   : > { %4026 = vmatpush3.bf16.xpose.msra.mxu0 %v1963_v20 }
 0x997   : > { %4022 = vmatmul.mubr.msk.bf16.vlgmr.msra.gmra.mrb[24].mxu1 %vm1607_vm4, %v1856_v21  ;;  %4037 = vmatprep.subr.bf16.mxu0 %v5130_v25 }
 0x998   : > { %4032 = vmatpush3.bf16.xpose.msra.mxu1 %v2013_v22  ;;  %4033 = vmatprep.mubr.msk.bf16.mxu1 %vm5132_vm1, %v5130_v25 }
 0x999   : > { %4043 = vmatprep.subr.bf16.mxu1 %v5130_v25 }
 0x99d   : > { %4028 = vmatmul.mubr.msk.bf16.vlgmr.msra.gmra.mrb[12].mxu0 %vm1498_vm2, %v1956_v23 }
 0x99e   : > { %4039 = vmatprep.mubr.msk.bf16.mxu0 %vm5132_vm1, %v5130_v25 }
 0x99f   : > { %4034 = vmatmul.mubr.msk.bf16.vlgmr.msra.gmra.mrb[28].mxu1 %vm1498_vm2, %v2006_v24 }
 0x9a0   : > { %4045 = vmatprep.mubr.msk.bf16.mxu1 %vm5132_vm1, %v5130_v25 }
 0xa63   : > { %v6046_v26 = vpop.f32.mrb[8].mxu0 }
 0xa64   : > { %v4017_v27 = vpop.f32.mrb[9].mxu0 }
 0xa65   : > { %v1903_v28 = vpop.f32.mrb[10].mxu0 }
 0xa66   : > { %v4018_v29 = vpop.f32.mrb[11].mxu0 }
 0xa6a   : > { %v6048_v32 = vpop.f32.mrb[24].mxu1 }
 0xa6b   : > { %v4295_v33 = vpack.i.bf16 %v6048_v32, %v6046_v26  ;;  %v4023_v36 = vpop.f32.mrb[25].mxu1 }
 0xa6c   : > { %v1952_v37 = vpop.f32.mrb[26].mxu1 }
 0xa6d   : > { %v4024_v38 = vpop.f32.mrb[27].mxu1 }
 0xa70   : > { %v1999_v41 = vpop.f32.mrb[12].mxu0 }
 0xa71   : > { %v2055_v44 = vmul.f32 0.17677669, %v1999_v41  ;;  %v4029_v45 = vpop.f32.mrb[13].mxu0 }
 0xa72   : > { %v2002_v46 = vpop.f32.mrb[14].mxu0  ;;  %v2049_v47 = vpop.f32.mrb[28].mxu1 }
 0xa73   : > { %v2056_v48 = vmul.f32 0.17677669, %v2049_v47  ;;  %v4030_v49 = vpop.f32.mrb[15].mxu0  ;;  %v4035_v50 = vpop.f32.mrb[29].mxu1  ;;  %v2057_v53 = vadd.f32 %v5963_v43, %v2055_v44 }
 0xa74   : > { %v2052_v54 = vpop.f32.mrb[30].mxu1 }
 0xa75   : > { %v4036_v55 = vpop.f32.mrb[31].mxu1  ;;  %v2059_v56 = vsel %vm1607_vm4, %v2057_v53, -inf  ;;  %v2058_v57 = vadd.f32 %v5967_v52, %v2056_v48 }
 0xa76   : > { %2060 = vmax.xlane.f32.xlu0 %v2059_v56 }
 0xa77   : > { %v2062_v58 = vsel %vm1607_vm4, %v2058_v57, -inf }
 0xa78   : > { %2063 = vmax.xlane.f32.xlu1 %v2062_v58 }
 0xa89   : > { %2131 = vrot.lane.b32.xlu1 %v5985_v13, %s5134_s25 }
 0xa8d   : > { %2181 = vrot.lane.b32.xlu1 %v5936_v30, %s5135_s14 }
 0xa91   : > { %2231 = vrot.lane.b32.xlu1 %v5941_v34, %s5135_s14 }
 0xa95   : > { %2229 = vrot.lane.b32.xlu1 %v5954_v40, %s5135_s14 }
 0xb03   : > { %v2061_v59 = vpop.xlane.xlu0 %2060 }
 0xb04   : > { %v2065_v60 = vsub.f32 %v2057_v53, %v2061_v59 }
 0xb05   : > { %v2064_v61 = vpop.xlane.xlu1 %2063 }
 0xb06   : > { %v2067_v62 = vmul.f32 1.442695, %v2065_v60  ;;  %v2066_v63 = vsub.f32 %v2058_v57, %v2064_v61 }
 0xb08   : > { %4450 = vpow2.f32 %v2067_v62  ;;  %v2069_v0 = vmul.f32 1.442695, %v2066_v63 }
 0xb09   : > { %v2132_v1 = vpop.permute.xlu1 %2131 }
 0xb0a   : > { %4452 = vpow2.f32 %v2069_v0  ;;  %v2137_v2 = vsel %vm1635_vm3, %v2132_v1, 0 }
 0xb0b   : > { %4044 = vmatpush3.bf16.msra.mxu1 %v2137_v2 }
 0xb0c   : > { %4055 = vmatprep.subr.bf16.mxu1 %v5130_v25 }
 0xb0d   : > { %v2182_v9 = vpop.permute.xlu1 %2181 }
 0xb11   : > { %v2232_v19 = vpop.permute.xlu1 %2231 }
 0xb12   : > { %v4451_v30 = vpop.eup %4450  ;;  %v2237_v21 = vsel %vm1498_vm2, %v2232_v19, 0  ;;  %v4347_v19 = vld [vmem:[%s5833_s0 + $0x28] sm:$0xff]  }
 0xb13   : > { %v2071_v34 = vsel %vm1607_vm4, %v4451_v30, 0.0 }
 0xb14   : > { %v4453_v3 = vpop.eup %4452  ;;  %2072 = vadd.xlane.f32.xlu0 %v2071_v34 }
 0xb15   : > { %v2074_v40 = vsel %vm1607_vm4, %v4453_v3, 0.0  ;;  %v2230_v23 = vpop.permute.xlu1 %2229 }
 0xb18   : > { %2075 = vadd.xlane.f32.xlu0 %v2074_v40 }
 0xb2e   : > { %2083 = vrot.lane.b32.xlu0 %v5952_v39, %s5134_s25 }
 0xb32   : > { %2179 = vrot.lane.b32.xlu0 %v5943_v35, %s5135_s14  ;;  %v2187_v35 = vsel %vm1498_vm2, %v2182_v9, 0  ;;  %v4342_v9 = vld [vmem:[%s5833_s0] sm:$0xff]  }
 0xba1   : > { %v2073_v4 = vpop.xlane.xlu0 %2072 }
 0xba2   : > { %4454 = vrcp.f32 %v2073_v4 }
 0xba5   : > { %v2076_v5 = vpop.xlane.xlu0 %2075 }
 0xba6   : > { %4456 = vrcp.f32 %v2076_v5 }
 0xba9   : > { %v2084_v6 = vpop.permute.xlu0 %2083 }
 0xbaa   : > { %v2089_v7 = vsel %vm1635_vm3, %v2084_v6, 0 }
 0xbab   : > { %4038 = vmatpush3.bf16.msra.mxu0 %v2089_v7 }
 0xbac   : > { %v4455_v8 = vpop.eup %4454  ;;  %4049 = vmatprep.subr.bf16.mxu0 %v5130_v25 }
 0xbad   : > { %v2079_v10 = vmul.f32 %v4455_v8, %v4451_v30  ;;  %v2180_v22 = vpop.permute.xlu0 %2179 }
 0xbaf   : > { %v2081_v15 = vpack.c.bf16 %v2079_v10, %v2079_v10  ;;  %v4343_v10 = vld [vmem:[%s5833_s0 + $0x8] sm:$0xff]  }
 0xbb0   : > { %v4457_v17 = vpop.eup %4456 }
 0xbb1   : > { %v2080_v18 = vmul.f32 %v4457_v17, %v4453_v3  ;;  %4040 = vmatmul.mubr.msk.bf16.vlgmr.msra.gmra.mrb[16].mxu0 %vm1607_vm4, %v2081_v15  ;;  %v4344_v15 = vld [vmem:[%s5833_s0 + $0x10] sm:$0xff]   ;;  %v4345_v17 = vld [vmem:[%s5833_s0 + $0x18] sm:$0xff]  }
 0xbb2   : > { %4051 = vmatprep.mubr.msk.bf16.mxu0 %vm5132_vm1, %v5130_v25 }
 0xbb3   : > { %v2082_v20 = vpack.c.bf16 %v2080_v18, %v2080_v18  ;;  %v4346_v18 = vld [vmem:[%s5833_s0 + $0x20] sm:$0xff]  }
 0xbb4   : > { %4050 = vmatpush3.bf16.xpose.msra.mxu0 %v2187_v35  ;;  %v4348_v35 = vld [vmem:[%s5833_s0 + $0x30] sm:$0xff]  }
 0xbb5   : > { %4046 = vmatmul.mubr.msk.bf16.vlgmr.msra.gmra.mrb[32].mxu1 %vm1607_vm4, %v2082_v20  ;;  %4061 = vmatprep.subr.bf16.mxu0 %v5130_v25  ;;  %v4349_v20 = vld [vmem:[%s5833_s0 + $0x38] sm:$0xff]  }
 0xbb6   : > { %4056 = vmatpush3.bf16.xpose.msra.mxu1 %v2237_v21  ;;  %4057 = vmatprep.mubr.msk.bf16.mxu1 %vm5132_vm1, %v5130_v25 }
 0xbb7   : > { %4067 = vmatprep.subr.bf16.mxu1 %v5130_v25 }
 0xbbb   : > { %4052 = vmatmul.mubr.msk.bf16.vlgmr.msra.gmra.mrb[20].mxu0 %vm1498_vm2, %v2180_v22 }
 0xbbc   : > { %4063 = vmatprep.mubr.msk.bf16.mxu0 %vm5132_vm1, %v5130_v25 }
 0xbbd   : > { %4058 = vmatmul.mubr.msk.bf16.vlgmr.msra.gmra.mrb[36].mxu1 %vm1498_vm2, %v2230_v23 }
 0xbbe   : > { %4069 = vmatprep.mubr.msk.bf16.mxu1 %vm5132_vm1, %v5130_v25 }
 0xc84   : > { %v2125_v24 = vpop.f32.mrb[16].mxu0 }
 0xc85   : > { %v4041_v27 = vpop.f32.mrb[17].mxu0 }
 0xc86   : > { %v2128_v28 = vpop.f32.mrb[18].mxu0 }
 0xc87   : > { %v4042_v29 = vpop.f32.mrb[19].mxu0 }
 0xc88   : > { %v2173_v36 = vpop.f32.mrb[32].mxu1 }
 0xc89   : > { %v4300_v37 = vpack.i.bf16 %v2173_v36, %v2125_v24  ;;  %v4047_v38 = vpop.f32.mrb[33].mxu1 }
 0xc8a   : > { %v2176_v41 = vpop.f32.mrb[34].mxu1 }
 0xc8b   : > { %v4048_v44 = vpop.f32.mrb[35].mxu1 }
 0xc8e   : > { %v2223_v45 = vpop.f32.mrb[20].mxu0 }
 0xc8f   : > { %v2279_v46 = vmul.f32 0.17677669, %v2223_v45  ;;  %v4053_v47 = vpop.f32.mrb[21].mxu0 }
 0xc90   : > { %v2226_v48 = vpop.f32.mrb[22].mxu0  ;;  %v2273_v49 = vpop.f32.mrb[36].mxu1 }
 0xc91   : > { %v2280_v50 = vmul.f32 0.17677669, %v2273_v49  ;;  %v4054_v53 = vpop.f32.mrb[23].mxu0  ;;  %v4059_v54 = vpop.f32.mrb[37].mxu1  ;;  %v2281_v55 = vadd.f32 %v5963_v43, %v2279_v46 }
 0xc92   : > { %v2276_v56 = vpop.f32.mrb[38].mxu1 }
 0xc93   : > { %v4060_v57 = vpop.f32.mrb[39].mxu1  ;;  %v2283_v58 = vsel %vm1607_vm4, %v2281_v55, -inf  ;;  %v2282_v59 = vadd.f32 %v5967_v52, %v2280_v50 }
 0xc94   : > { %2284 = vmax.xlane.f32.xlu0 %v2283_v58 }
 0xc95   : > { %v2286_v60 = vsel %vm1607_vm4, %v2282_v59, -inf }
 0xc96   : > { %2287 = vmax.xlane.f32.xlu1 %v2286_v60 }
 0xca7   : > { %2355 = vrot.lane.b32.xlu1 %v5985_v13, %s5135_s14 }
 0xcab   : > { %4296 = vrot.lane.b32.xlu1 %v4295_v33, %s5135_s14 }
 0xcaf   : > { %4301 = vrot.lane.b32.xlu1 %v4300_v37, %s5134_s25 }
 0xd21   : > { %v2285_v43 = vpop.xlane.xlu0 %2284 }
 0xd22   : > { %v2289_v61 = vsub.f32 %v2281_v55, %v2285_v43 }
 0xd23   : > { %v2288_v62 = vpop.xlane.xlu1 %2287 }
 0xd24   : > { %v2291_v63 = vmul.f32 1.442695, %v2289_v61  ;;  %v2290_v0 = vsub.f32 %v2282_v59, %v2288_v62  ;;  %v3745_v59 = vld [vmem:[%s903_s7] ss:$0 sm:$0xff] }
 0xd25   : > { %v4486_v61 = vld [vmem:[#allocation2] sm:$0xff] }
 0xd26   : > { %4458 = vpow2.f32 %v2291_v63  ;;  %v2293_v52 = vmul.f32 1.442695, %v2290_v0 }
 0xd27   : > { %v2356_v1 = vpop.permute.xlu1 %2355 }
 0xd28   : > { %4460 = vpow2.f32 %v2293_v52  ;;  %v2361_v2 = vsel %vm1635_vm3, %v2356_v1, 0  ;;  %v4487_v52 = vld [vmem:[#allocation2 + $0x8] sm:$0xff] }
 0xd29   : > { %4068 = vmatpush3.bf16.msra.mxu1 %v2361_v2  ;;  %v4352_v2 = vld [vmem:[%s5849_s10 + $0x4] ss:$16 sps:$4 sm:$0xff]  }
 0xd2a   : > { %2805 = vmatprep.subr.bf16.mxu1 %v4352_v2  ;;  %v4400_v2 = vld [vmem:[%s5859_s27] sm:$0xff]  }
 0xd2b   : > { %v4297_v38 = vpop.permute.xlu1 %4296 }
 0xd2c   : > { %v4299_v44 = vunpack.i.h.bf16 %v4297_v38  ;;  %v4298_v45 = vunpack.i.l.bf16 %v4297_v38  ;;  %v4391_v38 = vld [vmem:[%s5849_s10 + $0xcc] ss:$16 sps:$4 sm:$0xff]  }
 0xd2e   : > { %v2428_v48 = vsel %vm1498_vm2, %v6008_v42, %v4299_v44  ;;  %v2427_v49 = vsel %vm1498_vm2, %v6004_v31, %v4298_v45  ;;  %v4389_v44 = vld [vmem:[%s5849_s10 + $0xc8] ss:$16 sps:$4 sm:$0xff]   ;;  %v4394_v45 = vld [vmem:[%s5849_s10 + $0xe4] ss:$16 sps:$4 sm:$0xff]  }
 0xd2f   : > { %v4302_v41 = vpop.permute.xlu1 %4301 }
 0xd30   : > { %v4459_v13 = vpop.eup %4458  ;;  %v4304_v46 = vunpack.i.h.bf16 %v4302_v41 }
 0xd31   : > { %v2295_v30 = vsel %vm1607_vm4, %v4459_v13, 0.0 }
 0xd32   : > { %v4461_v34 = vpop.eup %4460  ;;  %2296 = vadd.xlane.f32.xlu0 %v2295_v30  ;;  %v2431_v55 = vsel %vm2429_vm5, %v2428_v48, %v4304_v46  ;;  %v4355_v30 = vld [vmem:[%s5849_s10 + $0xc] ss:$16 sps:$4 sm:$0xff]  }
 0xd33   : > { %v2298_v26 = vsel %vm1607_vm4, %v4461_v34, 0.0  ;;  %v4397_v46 = vld [vmem:[%s5849_s10 + $0xec] ss:$16 sps:$4 sm:$0xff]  }
 0xd36   : > { %2299 = vadd.xlane.f32.xlu0 %v2298_v26  ;;  %v4361_v26 = vld [vmem:[%s5849_s10 + $0x2c] ss:$16 sps:$4 sm:$0xff]  }
 0xd4c   : > { %2307 = vrot.lane.b32.xlu0 %v5952_v39, %s5135_s14 }
 0xdbf   : > { %v2297_v32 = vpop.xlane.xlu0 %2296 }
 0xdc0   : > { %4462 = vrcp.f32 %v2297_v32  ;;  %v4356_v32 = vld [vmem:[%s5849_s10 + $0x20] ss:$16 sps:$4 sm:$0xff]  }
 0xdc3   : > { %v2300_v33 = vpop.xlane.xlu0 %2299 }
 0xdc4   : > { %4464 = vrcp.f32 %v2300_v33  ;;  %v4359_v33 = vld [vmem:[%s5849_s10 + $0x28] ss:$16 sps:$4 sm:$0xff]  }
 0xdc7   : > { %v2308_v3 = vpop.permute.xlu0 %2307 }
 0xdc8   : > { %v2313_v40 = vsel %vm1635_vm3, %v2308_v3, 0 }
 0xdc9   : > { %4062 = vmatpush3.bf16.msra.mxu0 %v2313_v40 }
 0xdca   : > { %v4463_v4 = vpop.eup %4462  ;;  %4073 = vmatprep.subr.bf16.mxu0 %v5130_v25 }
 0xdcb   : > { %v2303_v5 = vmul.f32 %v4463_v4, %v4459_v13  ;;  %v4353_v13 = vld [vmem:[%s5849_s10 + $0x8] ss:$16 sps:$4 sm:$0xff]  }
 0xdcd   : > { %v2305_v6 = vpack.c.bf16 %v2303_v5, %v2303_v5 }
 0xdce   : > { %v4465_v7 = vpop.eup %4464 }
 0xdcf   : > { %v2304_v8 = vmul.f32 %v4465_v7, %v4461_v34  ;;  %4064 = vmatmul.mubr.msk.bf16.vlgmr.msra.gmra.mrb[24].mxu0 %vm1607_vm4, %v2305_v6  ;;  %v4358_v34 = vld [vmem:[%s5849_s10 + $0x24] ss:$16 sps:$4 sm:$0xff]  }
 0xdd0   : > { %4089 = vmatprep.mubr.msk.bf16.mxu0 %vm5132_vm1, %v5130_v25  ;;  %4074 = vmatpush3.bf16.msra.mxu0 %v4342_v9  ;;  %v4364_v9 = vld [vmem:[%s5849_s10 + $0x44] ss:$16 sps:$4 sm:$0xff]  }
 0xdd1   : > { %v2306_v39 = vpack.c.bf16 %v2304_v8, %v2304_v8  ;;  %4075 = vmatprep.subr.bf16.mxu0 %v5130_v25 }
 0xdd3   : > { %4070 = vmatmul.mubr.msk.bf16.vlgmr.msra.gmra.mrb[40].mxu1 %vm1607_vm4, %v2306_v39 }
 0xdd4   : > { %2837 = vmatprep.mubr.bf16.mxu1 %v5131_v51  ;;  %4076 = vmatpush3.bf16.msra.mxu0 %v4343_v10  ;;  %v4367_v10 = vld [vmem:[%s5849_s10 + $0x4c] ss:$16 sps:$4 sm:$0xff]  }
 0xdd5   : > { %4077 = vmatprep.subr.bf16.mxu0 %v5130_v25 }
 0xdd8   : > { %4078 = vmatpush3.bf16.msra.mxu0 %v4344_v15  ;;  %v4362_v15 = vld [vmem:[%s5849_s10 + $0x40] ss:$16 sps:$4 sm:$0xff]  }
 0xdd9   : > { %4079 = vmatprep.subr.bf16.mxu0 %v5130_v25 }
 0xddc   : > { %4080 = vmatpush3.bf16.msra.mxu0 %v4345_v17  ;;  %v4365_v17 = vld [vmem:[%s5849_s10 + $0x48] ss:$16 sps:$4 sm:$0xff]  }
 0xddd   : > { %4081 = vmatprep.subr.bf16.mxu0 %v5130_v25 }
 0xde0   : > { %4082 = vmatpush3.bf16.msra.mxu0 %v4346_v18  ;;  %v4370_v18 = vld [vmem:[%s5849_s10 + $0x64] ss:$16 sps:$4 sm:$0xff]  }
 0xde1   : > { %4083 = vmatprep.subr.bf16.mxu0 %v5130_v25 }
 0xde4   : > { %4084 = vmatpush3.bf16.msra.mxu0 %v4347_v19  ;;  %v4373_v19 = vld [vmem:[%s5849_s10 + $0x6c] ss:$16 sps:$4 sm:$0xff]  }
 0xde5   : > { %4085 = vmatprep.subr.bf16.mxu0 %v5130_v25 }
 0xde8   : > { %4086 = vmatpush3.bf16.msra.mxu0 %v4348_v35  ;;  %v4368_v35 = vld [vmem:[%s5849_s10 + $0x60] ss:$16 sps:$4 sm:$0xff]  }
 0xde9   : > { %4087 = vmatprep.subr.bf16.mxu0 %v5130_v25  ;;  %v4303_v25 = vunpack.i.l.bf16 %v4302_v41  ;;  %v4386_v41 = vld [vmem:[%s5849_s10 + $0xc0] ss:$16 sps:$4 sm:$0xff]  }
 0xdeb   : > { %v2430_v54 = vsel %vm2429_vm5, %v2427_v49, %v4303_v25  ;;  %v4392_v25 = vld [vmem:[%s5849_s10 + $0xe0] ss:$16 sps:$4 sm:$0xff]  }
 0xdec   : > { %4088 = vmatpush3.bf16.msra.mxu0 %v4349_v20  ;;  %v4371_v20 = vld [vmem:[%s5849_s10 + $0x68] ss:$16 sps:$4 sm:$0xff]  }
 0xded   : > { %2848 = vmatprep.subr.bf16.mxu0 %v4355_v30  ;;  %v4402_v30 = vld [vmem:[%s5859_s27 + $0x48] sm:$0xff]  }
 0xea2   : > { %v2349_v21 = vpop.f32.mrb[24].mxu0 }
 0xea3   : > { %v4065_v22 = vpop.f32.mrb[25].mxu0 }
 0xea4   : > { %v2352_v23 = vpop.f32.mrb[26].mxu0  ;;  %v4379_v22 = vld [vmem:[%s5849_s10 + $0x8c] ss:$16 sps:$4 sm:$0xff]  }
 0xea5   : > { %v4066_v24 = vpop.f32.mrb[27].mxu0  ;;  %v4374_v23 = vld [vmem:[%s5849_s10 + $0x80] ss:$16 sps:$4 sm:$0xff]  }
 0xea6   : > { %v2397_v27 = vpop.f32.mrb[40].mxu1  ;;  %v4377_v24 = vld [vmem:[%s5849_s10 + $0x88] ss:$16 sps:$4 sm:$0xff]  }
 0xea7   : > { %v4305_v28 = vpack.i.bf16 %v2397_v27, %v2349_v21  ;;  %v4071_v29 = vpop.f32.mrb[41].mxu1  ;;  %v4376_v21 = vld [vmem:[%s5849_s10 + $0x84] ss:$16 sps:$4 sm:$0xff]  }
 0xea8   : > { %v2400_v36 = vpop.f32.mrb[42].mxu1  ;;  %v4382_v27 = vld [vmem:[%s5849_s10 + $0xa4] ss:$16 sps:$4 sm:$0xff]   ;;  %v4380_v29 = vld [vmem:[%s5849_s10 + $0xa0] ss:$16 sps:$4 sm:$0xff]  }
 0xea9   : > { %4306 = vrot.lane.b32.xlu0 %v4305_v28, %s5133_s16  ;;  %v4072_v37 = vpop.f32.mrb[43].mxu1  ;;  %v4385_v28 = vld [vmem:[%s5849_s10 + $0xac] ss:$16 sps:$4 sm:$0xff]   ;;  %v4383_v36 = vld [vmem:[%s5849_s10 + $0xa8] ss:$16 sps:$4 sm:$0xff]  }
 0xeaa   : > { %v4388_v37 = vld [vmem:[%s5849_s10 + $0xc4] ss:$16 sps:$4 sm:$0xff]  }
 0xf1b   : > { %v4307_v47 = vpop.permute.xlu0 %4306 }
 0xf1c   : > { %v4309_v50 = vunpack.i.h.bf16 %v4307_v47  ;;  %v4308_v53 = vunpack.i.l.bf16 %v4307_v47  ;;  %v4395_v47 = vld [vmem:[%s5849_s10 + $0xe8] ss:$16 sps:$4 sm:$0xff]  }
 0xf1e   : > { %v2434_v56 = vsel %vm2432_vm6, %v2431_v55, %v4309_v50  ;;  %v2433_v57 = vsel %vm2432_vm6, %v2430_v54, %v4308_v53 }
 0xf1f   : > { %v2435_v58 = vpack.c.bf16 %v2434_v56, %v2433_v57 }
 0xf21   : > { %4090 = vmatmul.mubr.bf16.vlgmr.msra.gmra.mrb[28].mxu0 %v2435_v58  ;;  %v3754_v58 = vld [vmem:[%s911_s1] ss:$0 sm:$0xff] }
 0xf22   : > { %2880 = vmatprep.mubr.bf16.mxu0 %v5131_v51  ;;  %v4350_v51 = vld [vmem:[%s5849_s10] ss:$16 sps:$4 sm:$0xff]   ;;  %2849 = vmatpush1.bf16.msra.mxu0 %v4353_v13  ;;  %v4401_v13 = vld [vmem:[%s5859_s27 + $0x80] sm:$0xff]  }
 0xf23   : > { %2806 = vmatpush1.bf16.msra.mxu1 %v4350_v51  ;;  %2850 = vmatprep.subr.bf16.mxu0 %v4361_v26  ;;  %v4399_v51 = vld [vmem:[%s5859_s27 + $0xc0] sm:$0xff]   ;;  %v4404_v26 = vld [vmem:[%s5859_s27 + $0x8] sm:$0xff]  }
 0xf24   : > { %2807 = vmatprep.subr.bf16.mxu1 %v4358_v34  ;;  %v4403_v34 = vld [vmem:[%s5859_s27 + $0xc8] sm:$0xff]  }
 0xf26   : > { %2851 = vmatpush1.bf16.msra.mxu0 %v4359_v33  ;;  %v4406_v33 = vld [vmem:[%s5859_s27 + $0x50] sm:$0xff]  }
 0xf27   : > { %2808 = vmatpush1.bf16.msra.mxu1 %v4356_v32  ;;  %2852 = vmatprep.subr.bf16.mxu0 %v4367_v10  ;;  %v4405_v32 = vld [vmem:[%s5859_s27 + $0x88] sm:$0xff]   ;;  %v4416_v10 = vld [vmem:[%s5859_s27 + $0x20] sm:$0xff]  }
 0xf28   : > { %2809 = vmatprep.subr.bf16.mxu1 %v4364_v9  ;;  %v4415_v9 = vld [vmem:[%s5859_s27 + $0xe0] sm:$0xff]  }
 0xf2a   : > { %2853 = vmatpush1.bf16.msra.mxu0 %v4365_v17  ;;  %v4418_v17 = vld [vmem:[%s5859_s27 + $0x68] sm:$0xff]  }
 0xf2b   : > { %2810 = vmatpush1.bf16.msra.mxu1 %v4362_v15  ;;  %2854 = vmatprep.subr.bf16.mxu0 %v4373_v19  ;;  %v4417_v15 = vld [vmem:[%s5859_s27 + $0xa0] sm:$0xff]   ;;  %v4420_v19 = vld [vmem:[%s5859_s27 + $0x28] sm:$0xff]  }
 0xf2c   : > { %2811 = vmatprep.subr.bf16.mxu1 %v4370_v18  ;;  %v4419_v18 = vld [vmem:[%s5859_s27 + $0xe8] sm:$0xff]  }
 0xf2e   : > { %2855 = vmatpush1.bf16.msra.mxu0 %v4371_v20  ;;  %v4422_v20 = vld [vmem:[%s5859_s27 + $0x70] sm:$0xff]  }
 0xf2f   : > { %2812 = vmatpush1.bf16.msra.mxu1 %v4368_v35  ;;  %2856 = vmatprep.subr.bf16.mxu0 %v4379_v22  ;;  %v4421_v35 = vld [vmem:[%s5859_s27 + $0xa8] sm:$0xff]   ;;  %v4424_v22 = vld [vmem:[%s5859_s27 + $0x30] sm:$0xff]  }
 0xf30   : > { %2813 = vmatprep.subr.bf16.mxu1 %v4376_v21  ;;  %v4423_v21 = vld [vmem:[%s5859_s27 + $0xf0] sm:$0xff]  }
 0xf32   : > { %2857 = vmatpush1.bf16.msra.mxu0 %v4377_v24  ;;  %v4426_v24 = vld [vmem:[%s5859_s27 + $0x78] sm:$0xff]  }
 0xf33   : > { %2814 = vmatpush1.bf16.msra.mxu1 %v4374_v23  ;;  %2858 = vmatprep.subr.bf16.mxu0 %v4385_v28  ;;  %v4425_v23 = vld [vmem:[%s5859_s27 + $0xb0] sm:$0xff]   ;;  %v4428_v28 = vld [vmem:[%s5859_s27 + $0x38] sm:$0xff]  }
 0xf34   : > { %2815 = vmatprep.subr.bf16.mxu1 %v4382_v27  ;;  %v4427_v27 = vld [vmem:[%s5859_s27 + $0xf8] sm:$0xff]  }
 0xf36   : > { %2859 = vmatpush1.bf16.msra.mxu0 %v4383_v36  ;;  %v2623_v36 = vld [vmem:[%s5856_s12] sm:$0xf] }
 0xf37   : > { %2816 = vmatpush1.bf16.msra.mxu1 %v4380_v29  ;;  %2860 = vmatprep.subr.bf16.mxu0 %v4391_v38  ;;  %v4429_v29 = vld [vmem:[%s5859_s27 + $0xb8] sm:$0xff]   ;;  %v2628_v38 = vrot.slane %v2623_v36, %v1265_v16 }
 0xf38   : > { %2817 = vmatprep.subr.bf16.mxu1 %v4388_v37  ;;  %v2639_v37 = vsub.s32 3, %v5922_v11 }
 0xf3a   : > { %2861 = vmatpush1.bf16.msra.mxu0 %v4389_v44  ;;  %v2632_v44 = vrot.slane %v2623_v36, %v1269_v12 }
 0xf3b   : > { %2818 = vmatpush1.bf16.msra.mxu1 %v4386_v41  ;;  %2862 = vmatprep.subr.bf16.mxu0 %v4397_v46  ;;  %v2636_v41 = vrot.slane %v2623_v36, %v1273_v14 }
 0xf3c   : > { %2819 = vmatprep.subr.bf16.mxu1 %v4394_v45  ;;  %v2640_v45 = vrot.slane %v2623_v36, %v2639_v37 }
 0xf3e   : > { %2863 = vmatpush1.bf16.msra.mxu0 %v4395_v47 }
 0xf3f   : > { %2820 = vmatpush1.bf16.msra.mxu1 %v4392_v25  ;;  %3915 = vmatprep.subr.bf16.mxu0 %v4399_v51 }
 0xff4   : > { %v2541_v42 = vpop.f32.mrb[28].mxu0 }
 0xff5   : > { %v2542_v60 = vadd.f32 %v3745_v59, %v2541_v42  ;;  %v4091_v31 = vpop.f32.mrb[29].mxu0 }
 0xff6   : > { %v2544_v43 = vpop.f32.mrb[30].mxu0  ;;  %v3755_v31 = vld [vmem:[%s6423_s4] ss:$0 sm:$0xff] }
 0xff7   : > { %v6136_v62 = vadd.f32 %v4486_v61, %v2542_v60  ;;  %v2545_v63 = vadd.f32 %v3745_v59, %v2544_v43  ;;  %v4092_v0 = vpop.f32.mrb[31].mxu0 }
 0xff9   : > { %v6138_v1 = vadd.f32 %v4487_v52, %v2545_v63  ;;  %2552 = vadd.xlane.f32.xlu1 %v6136_v62  ;;  %v4398_v52 = vld [vmem:[%s5859_s27 + $0x40] sm:$0xff]  }
 0xffa   : > { %3893 = vmatprep.subr.bf16.mxu1 %v4398_v52 }
 0xffb   : > { %2554 = vadd.xlane.f32.xlu0 %v6138_v1 }
0x1086   : > { %v2553_v3 = vpop.xlane.xlu1 %2552 }
0x1087   : > { %v2556_v40 = vmul.f32 0.0078125, %v2553_v3  ;;  %v4407_v3 = vld [vmem:[%s5859_s27 + $0xd0] sm:$0xff]  }
0x1088   : > { %v2555_v4 = vpop.xlane.xlu0 %2554 }
0x1089   : > { %v6151_v5 = vsub.f32 %v6136_v62, %v2556_v40  ;;  %v2557_v6 = vmul.f32 0.0078125, %v2555_v4  ;;  %v4408_v40 = vld [vmem:[%s5859_s27 + $0x10] sm:$0xff]  }
0x108a   : > { %v4409_v4 = vld [vmem:[%s5859_s27 + $0x90] sm:$0xff]  }
0x108b   : > { %v6154_v7 = vsub.f32 %v6138_v1, %v2557_v6  ;;  %v2560_v8 = vmul.f32 %v6151_v5, %v6151_v5  ;;  %v4411_v6 = vld [vmem:[%s5859_s27 + $0xd8] sm:$0xff]  }
0x108d   : > { %2562 = vadd.xlane.f32.xlu0 %v2560_v8  ;;  %v2561_v39 = vmul.f32 %v6154_v7, %v6154_v7  ;;  %v4413_v8 = vld [vmem:[%s5859_s27 + $0x98] sm:$0xff]  }
0x1091   : > { %2564 = vadd.xlane.f32.xlu0 %v2561_v39  ;;  %v4414_v39 = vld [vmem:[%s5859_s27 + $0x60] sm:$0xff]  }
0x111a   : > { %v2563_v48 = vpop.xlane.xlu0 %2562 }
0x111b   : > { %v2566_v49 = vmul.f32 0.0078125, %v2563_v48 }
0x111d   : > { %v2568_v50 = vadd.f32 1e-05, %v2566_v49 }
0x111e   : > { %v2565_v53 = vpop.xlane.xlu0 %2564 }
0x111f   : > { %4466 = vrsqrt.f32 %v2568_v50  ;;  %v2567_v54 = vmul.f32 0.0078125, %v2565_v53 }
0x1121   : > { %v2569_v55 = vadd.f32 1e-05, %v2567_v54 }
0x1123   : > { %4468 = vrsqrt.f32 %v2569_v55 }
0x1129   : > { %v4467_v56 = vpop.eup %4466 }
0x112a   : > { %v2572_v57 = vmul.f32 %v4467_v56, %v6151_v5  ;;  %v4410_v5 = vld [vmem:[%s5859_s27 + $0x58] sm:$0xff]  }
0x112c   : > { %v2580_v60 = vmul.f32 %v3754_v58, %v2572_v57 }
0x112d   : > { %v4469_v59 = vpop.eup %4468 }
0x112e   : > { %v2573_v42 = vmul.f32 %v4469_v59, %v6154_v7  ;;  %v2588_v61 = vadd.f32 %v3755_v31, %v2580_v60  ;;  %v4412_v7 = vld [vmem:[%s5859_s27 + $0x18] sm:$0xff]  }
0x1130   : > { %v2581_v43 = vmul.f32 %v3754_v58, %v2573_v42 }
0x1132   : > { %v2589_v63 = vadd.f32 %v3755_v31, %v2581_v43 }
0x1134   : > { %v2590_v0 = vpack.c.bf16 %v2589_v63, %v2588_v61 }
0x1136   : > { %2838 = vmatmul.mubr.bf16.vlgmr.msra.gmra.mrb[44].mxu1 %v2590_v0  ;;  %2881 = vmatmul.mubr.bf16.vlgmr.msra.gmra.mrb[32].mxu0 %v2590_v0 }
0x1137   : > { %3894 = vmatpush3.bf16.msra.mxu1 %v4400_v2  ;;  %3916 = vmatpush3.bf16.msra.mxu0 %v4401_v13 }
0x1138   : > { %3895 = vmatprep.subr.bf16.mxu1 %v4402_v30  ;;  %3917 = vmatprep.subr.bf16.mxu0 %v4403_v34 }
0x113b   : > { %3896 = vmatpush3.bf16.msra.mxu1 %v4404_v26  ;;  %3918 = vmatpush3.bf16.msra.mxu0 %v4405_v32 }
0x113c   : > { %3897 = vmatprep.subr.bf16.mxu1 %v4406_v33  ;;  %3919 = vmatprep.subr.bf16.mxu0 %v4407_v3 }
0x113f   : > { %3898 = vmatpush3.bf16.msra.mxu1 %v4408_v40  ;;  %3920 = vmatpush3.bf16.msra.mxu0 %v4409_v4 }
0x1140   : > { %3899 = vmatprep.subr.bf16.mxu1 %v4410_v5  ;;  %3921 = vmatprep.subr.bf16.mxu0 %v4411_v6 }
0x1143   : > { %3900 = vmatpush3.bf16.msra.mxu1 %v4412_v7  ;;  %3922 = vmatpush3.bf16.msra.mxu0 %v4413_v8 }
0x1144   : > { %3901 = vmatprep.subr.bf16.mxu1 %v4414_v39  ;;  %3923 = vmatprep.subr.bf16.mxu0 %v4415_v9 }
0x1147   : > { %3902 = vmatpush3.bf16.msra.mxu1 %v4416_v10  ;;  %3924 = vmatpush3.bf16.msra.mxu0 %v4417_v15 }
0x1148   : > { %3903 = vmatprep.subr.bf16.mxu1 %v4418_v17  ;;  %3925 = vmatprep.subr.bf16.mxu0 %v4419_v18 }
0x114b   : > { %3904 = vmatpush3.bf16.msra.mxu1 %v4420_v19  ;;  %3926 = vmatpush3.bf16.msra.mxu0 %v4421_v35 }
0x114c   : > { %3905 = vmatprep.subr.bf16.mxu1 %v4422_v20  ;;  %3927 = vmatprep.subr.bf16.mxu0 %v4423_v21 }
0x114f   : > { %3906 = vmatpush3.bf16.msra.mxu1 %v4424_v22  ;;  %3928 = vmatpush3.bf16.msra.mxu0 %v4425_v23 }
0x1150   : > { %3907 = vmatprep.subr.bf16.mxu1 %v4426_v24  ;;  %3929 = vmatprep.subr.bf16.mxu0 %v4427_v27 }
0x1153   : > { %3908 = vmatpush3.bf16.msra.mxu1 %v4428_v28  ;;  %3930 = vmatpush3.bf16.msra.mxu0 %v4429_v29 }
0x1209   : > { %v2839_v46 = vpop.f32.mrb[44].mxu1  ;;  %v2882_v25 = vpop.f32.mrb[32].mxu0 }
0x120a   : > { %v2840_v47 = vadd.f32 %v2839_v46, %v2628_v38  ;;  %v2883_v48 = vadd.f32 %v2882_v25, %v2636_v41  ;;  %v2841_v49 = vpop.f32.mrb[45].mxu1  ;;  %v2884_v50 = vpop.f32.mrb[33].mxu0 }
0x120b   : > { %v6230_v53 = vadd.f32 %v2841_v49, %v2632_v44  ;;  %v6232_v54 = vadd.f32 %v2884_v50, %v2640_v45  ;;  %v2843_v55 = vpop.f32.mrb[46].mxu1  ;;  %v2886_v56 = vpop.f32.mrb[34].mxu0 }
0x120c   : > { %v2844_v16 = vadd.f32 %v2843_v55, %v2628_v38  ;;  %v2887_v57 = vadd.f32 %v2886_v56, %v2636_v41  ;;  %v2845_v58 = vpop.f32.mrb[47].mxu1  ;;  %v2888_v14 = vpop.f32.mrb[35].mxu0  ;;  %v2891_v59 = vmul.f32 1.702, %v2840_v47  ;;  %v2893_v11 = vmul.f32 1.702, %v2883_v48 }
0x120d   : > { %v2846_v12 = vadd.f32 %v2845_v58, %v2632_v44  ;;  %v2889_v42 = vadd.f32 %v2888_v14, %v2640_v45  ;;  %v2892_v60 = vmul.f32 1.702, %v6230_v53  ;;  %v2894_v61 = vmul.f32 1.702, %v6232_v54 }
0x120e   : > { %v2895_v31 = vmul.f32 1.702, %v2844_v16  ;;  %v2897_v43 = vmul.f32 1.702, %v2887_v57 }
0x120f   : > { %v2896_v63 = vmul.f32 1.702, %v2846_v12  ;;  %v2898_v0 = vmul.f32 1.702, %v2889_v42 }
0x1210   : > { %v2899_v52 = vpack.c.bf16 %v2895_v31, %v2891_v59  ;;  %v2901_v51 = vpack.c.bf16 %v2897_v43, %v2893_v11 }
0x1211   : > { %v2900_v2 = vpack.c.bf16 %v2896_v63, %v2892_v60  ;;  %v2902_v13 = vpack.c.bf16 %v2898_v0, %v2894_v61 }
0x1212   : > { %v3788_v30 = vmul.bf16 3216621497, %v2899_v52  ;;  %v3790_v34 = vmul.bf16 3216621497, %v2901_v51 }
0x1213   : > { %v3789_v26 = vmul.bf16 3216621497, %v2900_v2  ;;  %v3791_v32 = vmul.bf16 3216621497, %v2902_v13 }
0x1214   : > { %4470 = vpow.bf16 %v3788_v30 }
0x1215   : > { %4472 = vpow.bf16 %v3790_v34 }
0x1216   : > { %4474 = vpow.bf16 %v3789_v26 }
0x1217   : > { %4476 = vpow.bf16 %v3791_v32 }
0x121f   : > { %v4471_v33 = vpop.eup %4470 }
0x1220   : > { %v4473_v3 = vpop.eup %4472  ;;  %v2919_v40 = vadd.bf16 1065369472, %v4471_v33 }
0x1221   : > { %v4475_v4 = vpop.eup %4474  ;;  %v2921_v5 = vadd.bf16 1065369472, %v4473_v3 }
0x1222   : > { %v4477_v6 = vpop.eup %4476  ;;  %4478 = vrcp.bf16 %v2919_v40  ;;  %v2920_v7 = vadd.bf16 1065369472, %v4475_v4 }
0x1223   : > { %4480 = vrcp.bf16 %v2921_v5  ;;  %v2922_v8 = vadd.bf16 1065369472, %v4477_v6 }
0x1224   : > { %4482 = vrcp.bf16 %v2920_v7 }
0x1225   : > { %4484 = vrcp.bf16 %v2922_v8 }
0x122d   : > { %v4479_v39 = vpop.eup %4478 }
0x122e   : > { %v4481_v9 = vpop.eup %4480  ;;  %v2924_v10 = vmul.bf16 1065369472, %v4479_v39 }
0x122f   : > { %v4483_v15 = vpop.eup %4482  ;;  %v2928_v17 = vmul.bf16 1065369472, %v4481_v9 }
0x1230   : > { %v4485_v18 = vpop.eup %4484  ;;  %v2931_v19 = vunpack.c.l.bf16 %v2924_v10  ;;  %v2935_v35 = vunpack.c.h.bf16 %v2924_v10  ;;  %v2926_v20 = vmul.bf16 1065369472, %v4483_v15 }
0x1231   : > { %v2933_v21 = vunpack.c.l.bf16 %v2928_v17  ;;  %v2937_v22 = vunpack.c.h.bf16 %v2928_v17  ;;  %v2930_v23 = vmul.bf16 1065369472, %v4485_v18 }
0x1232   : > { %v2939_v24 = vmul.f32 %v2931_v19, %v2840_v47  ;;  %v2943_v27 = vmul.f32 %v2935_v35, %v2844_v16  ;;  %v2936_v28 = vunpack.c.h.bf16 %v2926_v20  ;;  %v2932_v29 = vunpack.c.l.bf16 %v2926_v20  ;;  %v3792_v16 = vld [vmem:[%s954_s2] ss:$0 sm:$0xff] }
0x1233   : > { %v2941_v36 = vmul.f32 %v2933_v21, %v2883_v48  ;;  %v2945_v37 = vmul.f32 %v2937_v22, %v2887_v57  ;;  %v2938_v38 = vunpack.c.h.bf16 %v2930_v23  ;;  %v2934_v41 = vunpack.c.l.bf16 %v2930_v23 }
0x1234   : > { %v2947_v44 = vpack.c.bf16 %v2943_v27, %v2939_v24  ;;  %v2944_v45 = vmul.f32 %v2936_v28, %v2846_v12  ;;  %v2940_v46 = vmul.f32 %v2932_v29, %v6230_v53 }
0x1235   : > { %v2949_v25 = vpack.c.bf16 %v2945_v37, %v2941_v36  ;;  %v2946_v49 = vmul.f32 %v2938_v38, %v2889_v42  ;;  %v2942_v50 = vmul.f32 %v2934_v41, %v6232_v54 }
0x1236   : > { %v2948_v55 = vpack.c.bf16 %v2944_v45, %v2940_v46 }
0x1237   : > { %v2950_v56 = vpack.c.bf16 %v2946_v49, %v2942_v50 }
0x1238   : > { %3246 = vmatprep.mubr.bf16.mxu1 %v2948_v55 }
0x1239   : > { %3287 = vmatprep.mubr.bf16.mxu0 %v2950_v56  ;;  %3247 = vmatmul.mubr.bf16.vlgmr.msra.gmra.mrb[48].mxu1 %v2947_v44 }
0x123a   : > { %3288 = vmatmul.mubr.bf16.vlgmr.msra.gmra.mrb[36].mxu0 %v2949_v25 }
0x130c   : > { %v3909_v47 = vpop.f32.mrb[48].mxu1 }
0x130d   : > { %v3931_v48 = vpop.f32.mrb[36].mxu0  ;;  %v3910_v57 = vpop.f32.mrb[49].mxu1 }
0x130e   : > { %v3911_v58 = vadd.f32 %v3910_v57, %v3909_v47  ;;  %v3932_v14 = vpop.f32.mrb[37].mxu0  ;;  %v3912_v59 = vpop.f32.mrb[50].mxu1 }
0x130f   : > { %v3933_v11 = vadd.f32 %v3932_v14, %v3931_v48  ;;  %v3934_v53 = vpop.f32.mrb[38].mxu0  ;;  %v3913_v12 = vpop.f32.mrb[51].mxu1 }
0x1310   : > { %v3249_v42 = vadd.f32 %v3911_v58, %v3792_v16  ;;  %v3914_v60 = vadd.f32 %v3913_v12, %v3912_v59  ;;  %v3935_v54 = vpop.f32.mrb[39].mxu0 }
0x1311   : > { %v3936_v31 = vadd.f32 %v3935_v54, %v3934_v53 }
0x1312   : > { %v3290_v43 = vadd.f32 %v3933_v11, %v3249_v42  ;;  %v3252_v61 = vadd.f32 %v3914_v60, %v3792_v16  ;;  %3303 = sbr.rel (%p3825_p2) target bundleno = 4889 (0x1319), region = 164 }
0x1314   : > { %v3296_v63 = vadd.f32 %v3290_v43, %v6136_v62  ;;  %v3293_v0 = vadd.f32 %v3936_v31, %v3252_v61 }
0x1316   : > { %3298 = vst [vmem:[#allocation2] sm:$0xff] %v3296_v63  ;;  %v3297_v52 = vadd.f32 %v3293_v0, %v6138_v1  ;;  %3304 = vst [vmem:[#allocation30] sm:$0x1] (!%p3825_p2), %v3296_v63 }
0x1318   : > { %3299 = vst [vmem:[#allocation2 + $0x8] sm:$0xff] %v3297_v52  ;;  %3305 = vst [vmem:[#allocation30 + $0x1] sm:$0x1] (!%p3825_p2), %v3297_v52 }
0x1319 PF: > { %s6425_s13 = sld [smem:[#allocation43_spill]]  ;;  %s5136_s22 = smov [#allocation30]  }
0x131a   : > { %s3315_s0 = sshll.u32 %s5136_s22, 4  ;;  %s3316_s0 = int_to_ptr.vmem [resolvable:$true] %s3315_s0 }
0x131b   : > { %s4988_s7 = scalar_lea.vmem %s3316_s0, 32  ;;  %p4995_p0 = scmp.lt.s32.totalorder %s3316_s0, %s3316_s0 }
0x131c   : > { %p4989_p5 = scmp.ne.s32.totalorder %s3316_s0, %s4988_s7  ;;  %p4996_p3 = scmp.lt.s32.totalorder %s4988_s7, %s4988_s7 }
0x131e   : > { %p4997_p1 = por %p4996_p3, %p4995_p0 }
0x131f   : > { %p4211_p13 = scmp.eq.s32.totalorder %s6425_s13, 1 }
0x1321   : > { %p4990_p7 = pnand %p4989_p5, %p4211_p13 }
0x1323   : > { %p4991_p12 = pneg %p4990_p7 }
0x1325   : > { %p4998_p9 = pnand %p4997_p1, %p4991_p12 }
0x1327   : > { %5001 = shalt.err (!%p4998_p9)
}
0x1328   : > { %s6426_s23 = sld [smem:[#allocation62_spill]] }
0x132e   : > { %s5002_s20 = scalar_lea.hbm %s6426_s23, 32 }
0x132f   : > { %p5003_p10 = scmp.ne.s32.totalorder %s6426_s23, %s5002_s20  ;;  %p5008_p8 = scmp.lt.u32.totalorder %s5002_s20, %s6426_s23 }
0x1331   : > { %p5004_p6 = pnand %p5003_p10, %p4211_p13 }
0x1333   : > { %p5005_p11 = pneg %p5004_p6 }
0x1335   : > { %p5010_p4 = pnand %p5008_p8, %p5005_p11 }
0x1337   : > { %5013 = shalt.err (!%p5010_p4)
}
0x1338   : > { %s5137_s27 = smov 16   ;;  %s5138_s2 = smov 1  }
0x1339   : > { %4144 = dma.vmem_to_hbm [thread:$0]  (%p4211_p13), %s3316_s0, 32, %s6426_s23, [#allocation5], %s5137_s27, %s5137_s27, %s5138_s2  }
0x133a   : > { %5075 = dma.done.wait (%p4211_p13), [#allocation5], 32  }
0x133b   : > { %5077 = vsyncadd (%p4211_p13), [#allocation5], 4294967264 }
0x133c PF: > { %s49_s29 = sadd.s32 1, %s5100_s29   ;;  %s6427_s24 = sld [smem:[#allocation41_spill]] }
0x133d   : > { %p46_p2 = scmp.ge.s32.totalorder %s49_s29, 4   ;;  %s6428_s14 = sld [smem:[#allocation46_spill]] }
0x133e   : > { %s6429_s25 = smov %s5088_s26  ;;  %s6430_s26 = smov %s5398_s8 }
0x133f   : > { %s6431_s27 = smov %s5096_s28  ;;  %48 = sbr.rel (!%p46_p2) target bundleno = 35 (0x23), region = 289 }
0x1343   : > { %s6432_s28 = smov %s6428_s14 }
0x1346   :  { %3331 = vsyncpa [#allocation4], 1 }
0x1347   :  { %3333 = vsyncpa [#allocation4 + $0x1], 1 }
0x1348   :  { %3334 = vsyncpa [#allocation7], 1 }
0x1349   :  { %3335 = vsyncpa [#allocation10], 1 }
0x134a   :  { %3336 = vsyncpa [#allocation13], 1 }
0x134b   :  { %3338 = vsyncpa [#allocation13 + $0x1], 1 }
0x134c   :  { %3339 = vsyncpa [#allocation16], 1 }
0x134d   :  { %3341 = vsyncpa [#allocation16 + $0x1], 1 }
0x134e   :  { %3342 = vsyncpa [#allocation19], 1 }
0x134f   :  { %3344 = vsyncpa [#allocation19 + $0x1], 1 }
0x1350   :  { %3345 = vsyncpa [#allocation22], 1 }
0x1351   :  { %3347 = vsyncpa [#allocation22 + $0x1], 1 }
0x1352   :  { %3348 = vsyncpa [#allocation25], 1 }
0x1353   :  { %3350 = vsyncpa [#allocation25 + $0x1], 1 }
0x1354   :  { %3351 = vsyncpa [#allocation28], 1 }
0x1355   :  { %3353 = vsyncpa [#allocation28 + $0x1], 1 }
0x1356   :  { %3354 = vsyncpa [#allocation5], 1 }
0x1357   :  { %3356 = vsyncpa [#allocation5 + $0x1], 1 }

</bundles_post_ra>
